<compile_context>
chip_gen: v7x
topology: tpu7x:2x2x1
jax: 0.10.0
libtpu: 0.0.40
codegen_flags: <defaults>
</compile_context>

<pallas_src>
import functools

import jax
import jax.numpy as jnp
import numpy as np
from jax import lax
from jax.experimental import pallas as pl
from jax.experimental.pallas import tpu as pltpu


# --------------------------------------------------------------------------
# In-kernel conv for one sample: stacked-patch, single K=27*Cin MXU matmul.
# --------------------------------------------------------------------------
def _conv_sample(x_ref, b, w2, *, D, Hp, Wp):
    """3x3x3 conv for sample `b` via the flat-shift (in-kernel im2col) trick.

    x_ref : (nb, Cin, Sf) bf16 ref; Sf = (D+4)*Hp*Wp is the sample's spatially
            zero-padded volume flattened (dpad, hp, wp) row-major with TWO pad
            depth slices on each side (the extra slice is the flat halo that
            keeps every tap window a static, in-bounds lane slice).
    w2    : (Cout, 27*Cin) bf16 value, K ordered (kd, kh, kw, cin).

    Returns (Cout, SQ) f32 with SQ = D*Hp*Wp; the H/W pad columns hold
    don't-care values and are masked / cropped by the caller.
    """
    SQ = D * Hp * Wp
    pieces = []
    for kd in range(3):
        for kh in range(3):
            for kw in range(3):
                # flat offset of input tap (kd,kh,kw) relative to output col 0
                start = (kd + 1) * Hp * Wp + (kh - 1) * Wp + (kw - 1)  # static
                pieces.append(x_ref[b, :, start:start + SQ])           # (Cin,SQ)
    patch = jnp.concatenate(pieces, axis=0)                            # (27*Cin,SQ)
    return jnp.dot(w2, patch, preferred_element_type=jnp.float32)      # (Cout,SQ)


# --------------------------------------------------------------------------
# Pass 1: conv + streaming per-channel sum / sum-of-squares
# --------------------------------------------------------------------------
def _stats_kernel(x_ref, w2_ref, mask_ref, sum_ref, sqsum_ref, *, D, Hp, Wp, nb):
    @pl.when(pl.program_id(1) == 0)     # first tile of this chunk
    def _init():
        sum_ref[...] = jnp.zeros_like(sum_ref)
        sqsum_ref[...] = jnp.zeros_like(sqsum_ref)

    w2 = w2_ref[...]                    # (Cout, 27*Cin) -- hoisted, loaded once
    m = mask_ref[...]                   # (1, SQ) valid-column mask
    cout = w2.shape[0]
    ps = jnp.zeros((cout, 1), jnp.float32)
    pq = jnp.zeros((cout, 1), jnp.float32)
    for b in range(nb):                 # static unroll over the sample batch
        y = _conv_sample(x_ref, b, w2, D=D, Hp=Hp, Wp=Wp)   # (Cout, SQ) f32
        ym = y * m                                          # zero pad columns
        ps = ps + jnp.sum(ym, axis=1, keepdims=True)
        pq = pq + jnp.sum(y * ym, axis=1, keepdims=True)
    sum_ref[...] += ps
    sqsum_ref[...] += pq


# --------------------------------------------------------------------------
# Pass 2: conv (recomputed, never hits HBM) + folded BN affine + LeakyReLU
# --------------------------------------------------------------------------
def _apply_kernel(x_ref, w2_ref, scale_ref, bias_ref, o_ref, *, D, Hp, Wp, nb):
    w2 = w2_ref[...]
    scale = scale_ref[...]              # (Cout, 1) f32
    bias = bias_ref[...]                # (Cout, 1) f32
    for b in range(nb):
        y = _conv_sample(x_ref, b, w2, D=D, Hp=Hp, Wp=Wp)   # (Cout, SQ) f32
        y = y * scale + bias                                # folded BN (f32)
        o_ref[b] = jnp.maximum(y, 0.1 * y).astype(o_ref.dtype)  # LeakyReLU(0.1)


# --------------------------------------------------------------------------
# Wrapper
# --------------------------------------------------------------------------
def cnn_block_forward(x_ncdhw, weight, gamma, beta, *, eps=1e-5,
                      out_dtype=jnp.float32):
    """Conv3d(3,1,1,bias=False) + BatchNorm3d(train batch stats) + LeakyReLU(0.1).

    x_ncdhw: [N, Cin, D, H, W]; weight: [Cout, Cin, 3, 3, 3];
    returns  [N, Cout, D, H, W] in `out_dtype` (pass bf16 to skip the upcast).
    """
    N, Cin, D, H, W = x_ncdhw.shape
    Cout = weight.shape[0]
    Hp, Wp = H + 2, W + 2
    SQ = D * Hp * Wp                   # conv columns computed per sample
    Sf = (D + 4) * Hp * Wp             # flat padded sample (2 pad depths/side)

    # ---- batching / megacore layout -----------------------------------------
    nchunk = 2                                         # always 2-way for v7x megacore
    nb = max(1, min(4, N // nchunk))                   # samples per grid step
    step = nchunk * nb
    n_pad = -(-N // step) * step                       # pad N with zero samples
    npc = n_pad // step                                # steps per chunk (pass 1)

    # ---- glue: channels-first end to end, one pad, bf16 before the pad ------
    xb = x_ncdhw.astype(jnp.bfloat16)                  # halve HBM bytes of the pad
    xp = jnp.pad(xb, ((0, n_pad - N), (0, 0), (2, 2), (1, 1), (1, 1)))
    xf = xp.reshape(n_pad, Cin, Sf)

    # (Cout, Cin, kd, kh, kw) -> (Cout, 27*Cin), K ordered (kd, kh, kw, cin).
    w2 = jnp.transpose(weight, (0, 2, 3, 4, 1)).reshape(Cout, 27 * Cin)
    w2 = w2.astype(jnp.bfloat16)

    # Static 0/1 mask of the valid (non-pad) output columns inside an SQ tile.
    j = np.arange(SQ)
    hp = (j % (Hp * Wp)) // Wp
    wp = j % Wp
    valid = (hp >= 1) & (hp <= H) & (wp >= 1) & (wp <= W)
    mask = jnp.asarray(valid.reshape(1, SQ).astype(np.float32))

    statics = dict(D=D, Hp=Hp, Wp=Wp, nb=nb)

    # ---- pass 1: streaming batch statistics ---------------------------------
    # Leading "parallel" chunk axis -> each TensorCore (v7x megacore) owns its
    # own partial-sum accumulator; trailing "arbitrary" axis streams tiles.
    sums, sqsums = pl.pallas_call(
        functools.partial(_stats_kernel, **statics),
        out_shape=(jax.ShapeDtypeStruct((nchunk, Cout, 1), jnp.float32),
                   jax.ShapeDtypeStruct((nchunk, Cout, 1), jnp.float32)),
        grid=(nchunk, npc),
        in_specs=[
            pl.BlockSpec((nb, Cin, Sf), lambda c, i: (c * npc + i, 0, 0)),
            pl.BlockSpec((Cout, 27 * Cin), lambda c, i: (0, 0)),
            pl.BlockSpec((1, SQ), lambda c, i: (0, 0)),
        ],
        out_specs=(
            pl.BlockSpec((None, Cout, 1), lambda c, i: (c, 0, 0)),
            pl.BlockSpec((None, Cout, 1), lambda c, i: (c, 0, 0)),
        ),
        compiler_params=pltpu.CompilerParams(
            dimension_semantics=("parallel", "arbitrary")),
    )(xf, w2, mask)

    # ---- glue: fold BN (train, biased var) into per-channel scale/bias ------
    # Zero-padded samples contribute exactly zero to sums, so divide by real N.
    m_count = float(N * D * H * W)
    mean = jnp.sum(sums, axis=0)[:, 0] / m_count                  # (Cout,)
    var = jnp.maximum(jnp.sum(sqsums, axis=0)[:, 0] / m_count - mean * mean, 0.0)
    scale = gamma.astype(jnp.float32) * lax.rsqrt(var + eps)
    bias = beta.astype(jnp.float32) - mean * scale
    scale_c = scale.reshape(Cout, 1)
    bias_c = bias.reshape(Cout, 1)

    # ---- pass 2: conv + affine + LeakyReLU, lane-dense NCDHW-order bf16 store
    out_pad = pl.pallas_call(
        functools.partial(_apply_kernel, **statics),
        out_shape=jax.ShapeDtypeStruct((n_pad, Cout, SQ), jnp.bfloat16),
        grid=(n_pad // nb,),
        in_specs=[
            pl.BlockSpec((nb, Cin, Sf), lambda n: (n, 0, 0)),
            pl.BlockSpec((Cout, 27 * Cin), lambda n: (0, 0)),
            pl.BlockSpec((Cout, 1), lambda n: (0, 0)),
            pl.BlockSpec((Cout, 1), lambda n: (0, 0)),
        ],
        out_specs=pl.BlockSpec((nb, Cout, SQ), lambda n: (n, 0, 0)),
        compiler_params=pltpu.CompilerParams(
            dimension_semantics=("parallel",)),
    )(xf, w2, scale_c, bias_c)

    # Output is already channel-first; drop pad samples + H/W pad columns (one
    # fused XLA slice+convert: bf16 read, out_dtype write).
    out = out_pad[:N].reshape(N, Cout, D, Hp, Wp)[:, :, :, 1:1 + H, 1:1 + W]
    return out.astype(out_dtype)


# --------------------------------------------------------------------------
# Pure-JAX reference (exact f32 conv + batch-stat BN + LeakyReLU)
# --------------------------------------------------------------------------
def _reference(x_ncdhw, weight, gamma, beta):
    y = lax.conv_general_dilated(
        x_ncdhw, weight,
        window_strides=(1, 1, 1), padding=((1, 1), (1, 1), (1, 1)),
        dimension_numbers=("NCDHW", "OIDHW", "NCDHW"),
        precision=lax.Precision.HIGHEST,
    )
    mean = jnp.mean(y, axis=(0, 2, 3, 4), keepdims=True)
    var = jnp.mean((y - mean) ** 2, axis=(0, 2, 3, 4), keepdims=True)
    g = gamma.reshape(1, -1, 1, 1, 1)
    b = beta.reshape(1, -1, 1, 1, 1)
    yb = (y - mean) * lax.rsqrt(var + 1e-5) * g + b
    return jnp.where(yb > 0, yb, 0.1 * yb)


if __name__ == "__main__":
    # Small shapes consistent with Conv3d: N=2, Cin=4, Cout=8, D=H=W=8.
    N, Cin, Cout, D, H, W = 2, 4, 8, 8, 8, 8

    key = jax.random.PRNGKey(0)
    kx, kw = jax.random.split(key)
    x = jax.random.normal(kx, (N, Cin, D, H, W), dtype=jnp.float32)
    weight = jax.random.normal(kw, (Cout, Cin, 3, 3, 3), dtype=jnp.float32) * 0.1
    gamma = jnp.ones((Cout,), dtype=jnp.float32)   # BatchNorm3d default init
    beta = jnp.zeros((Cout,), dtype=jnp.float32)

    fwd = jax.jit(cnn_block_forward)
    out = jax.block_until_ready(fwd(x, weight, gamma, beta))
    ref = jax.block_until_ready(_reference(x, weight, gamma, beta))

    assert out.shape == (N, Cout, D, H, W)
    # Tolerance sized for bf16 MXU operands (K = 108), f32 accumulation, and a
    # bf16 output store of unit-variance post-BN activations.
    np.testing.assert_allclose(np.asarray(out), np.asarray(ref),
                               rtol=3e-2, atol=3e-2)

    print("KERNEL_OK")
</pallas_src>

<mosaic_0001>
module attributes {stable_mosaic.version = 11 : i64} {
  func.func @_stats_kernel(%arg0: i32, %arg1: i32, %arg2: memref<1x4x1200xbf16, #tpu.memory_space<vmem>>, %arg3: memref<8x108xbf16, #tpu.memory_space<vmem>>, %arg4: memref<1x800xf32, #tpu.memory_space<vmem>>, %arg5: memref<1x8x1xf32, #tpu.memory_space<vmem>>, %arg6: memref<1x8x1xf32, #tpu.memory_space<vmem>>) attributes {dimension_semantics = [#tpu.dimension_semantics<parallel>, #tpu.dimension_semantics<arbitrary>], iteration_bounds = array<i64: 2, 1>, scalar_prefetch = 0 : i64, scratch_operands = 0 : i64, tpu.core_type = #tpu.core_type<tc>, window_params = [{transform_indices = @transform_0, window_bounds = array<i64: 1, 4, 1200>}, {pipeline_mode = #tpu.pipeline_mode<synchronous>, transform_indices = @transform_1, window_bounds = array<i64: 8, 108>}, {pipeline_mode = #tpu.pipeline_mode<synchronous>, transform_indices = @transform_2, window_bounds = array<i64: 1, 800>}, {transform_indices = @transform_3, window_bounds = array<i64: 1, 8, 1>}, {transform_indices = @transform_4, window_bounds = array<i64: 1, 8, 1>}]} {
    %c0_i32 = arith.constant 0 : i32
    %0 = arith.cmpi eq, %arg1, %c0_i32 : i32
    %1 = arith.extui %0 : i1 to i32
    %c0_i32_0 = arith.constant 0 : i32
    %2 = arith.cmpi ne, %1, %c0_i32_0 : i32
    scf.if %2 {
      %cst_74 = arith.constant 0.000000e+00 : f32
      %86 = vector.broadcast %cst_74 : f32 to vector<8x1xf32>
      %c0_75 = arith.constant 0 : index
      %c0_76 = arith.constant 0 : index
      %c0_77 = arith.constant 0 : index
      %87 = vector.load %arg5[%c0_75, %c0_76, %c0_77] : memref<1x8x1xf32, #tpu.memory_space<vmem>>, vector<1x8x1xf32>
      %88 = vector.shape_cast %87 : vector<1x8x1xf32> to vector<8x1xf32>
      %89 = vector.shape_cast %86 : vector<8x1xf32> to vector<1x8x1xf32>
      tpu.vector_store %arg5[%c0_75, %c0_76, %c0_77], %89 {strides = array<i32>} : memref<1x8x1xf32, #tpu.memory_space<vmem>>, vector<1x8x1xf32>,
      %cst_78 = arith.constant 0.000000e+00 : f32
      %90 = vector.broadcast %cst_78 : f32 to vector<8x1xf32>
      %c0_79 = arith.constant 0 : index
      %c0_80 = arith.constant 0 : index
      %c0_81 = arith.constant 0 : index
      %91 = vector.load %arg6[%c0_79, %c0_80, %c0_81] : memref<1x8x1xf32, #tpu.memory_space<vmem>>, vector<1x8x1xf32>
      %92 = vector.shape_cast %91 : vector<1x8x1xf32> to vector<8x1xf32>
      %93 = vector.shape_cast %90 : vector<8x1xf32> to vector<1x8x1xf32>
      tpu.vector_store %arg6[%c0_79, %c0_80, %c0_81], %93 {strides = array<i32>} : memref<1x8x1xf32, #tpu.memory_space<vmem>>, vector<1x8x1xf32>,
    } else {
    }
    %c0 = arith.constant 0 : index
    %c0_1 = arith.constant 0 : index
    %3 = vector.load %arg3[%c0, %c0_1] : memref<8x108xbf16, #tpu.memory_space<vmem>>, vector<8x108xbf16>
    %c0_2 = arith.constant 0 : index
    %c0_3 = arith.constant 0 : index
    %4 = vector.load %arg4[%c0_2, %c0_3] : memref<1x800xf32, #tpu.memory_space<vmem>>, vector<1x800xf32>
    %cst = arith.constant 0.000000e+00 : f32
    %5 = vector.broadcast %cst : f32 to vector<8x1xf32>
    %cst_4 = arith.constant 0.000000e+00 : f32
    %6 = vector.broadcast %cst_4 : f32 to vector<8x1xf32>
    %c0_5 = arith.constant 0 : index
    %c0_6 = arith.constant 0 : index
    %c89 = arith.constant 89 : index
    %7 = vector.load %arg2[%c0_5, %c0_6, %c89] : memref<1x4x1200xbf16, #tpu.memory_space<vmem>>, vector<1x4x800xbf16>
    %8 = vector.shape_cast %7 : vector<1x4x800xbf16> to vector<4x800xbf16>
    %c0_7 = arith.constant 0 : index
    %c0_8 = arith.constant 0 : index
    %c90 = arith.constant 90 : index
    %9 = vector.load %arg2[%c0_7, %c0_8, %c90] : memref<1x4x1200xbf16, #tpu.memory_space<vmem>>, vector<1x4x800xbf16>
    %10 = vector.shape_cast %9 : vector<1x4x800xbf16> to vector<4x800xbf16>
    %c0_9 = arith.constant 0 : index
    %c0_10 = arith.constant 0 : index
    %c91 = arith.constant 91 : index
    %11 = vector.load %arg2[%c0_9, %c0_10, %c91] : memref<1x4x1200xbf16, #tpu.memory_space<vmem>>, vector<1x4x800xbf16>
    %12 = vector.shape_cast %11 : vector<1x4x800xbf16> to vector<4x800xbf16>
    %c0_11 = arith.constant 0 : index
    %c0_12 = arith.constant 0 : index
    %c99 = arith.constant 99 : index
    %13 = vector.load %arg2[%c0_11, %c0_12, %c99] : memref<1x4x1200xbf16, #tpu.memory_space<vmem>>, vector<1x4x800xbf16>
    %14 = vector.shape_cast %13 : vector<1x4x800xbf16> to vector<4x800xbf16>
    %c0_13 = arith.constant 0 : index
    %c0_14 = arith.constant 0 : index
    %c100 = arith.constant 100 : index
    %15 = vector.load %arg2[%c0_13, %c0_14, %c100] : memref<1x4x1200xbf16, #tpu.memory_space<vmem>>, vector<1x4x800xbf16>
    %16 = vector.shape_cast %15 : vector<1x4x800xbf16> to vector<4x800xbf16>
    %c0_15 = arith.constant 0 : index
    %c0_16 = arith.constant 0 : index
    %c101 = arith.constant 101 : index
    %17 = vector.load %arg2[%c0_15, %c0_16, %c101] : memref<1x4x1200xbf16, #tpu.memory_space<vmem>>, vector<1x4x800xbf16>
    %18 = vector.shape_cast %17 : vector<1x4x800xbf16> to vector<4x800xbf16>
    %c0_17 = arith.constant 0 : index
    %c0_18 = arith.constant 0 : index
    %c109 = arith.constant 109 : index
    %19 = vector.load %arg2[%c0_17, %c0_18, %c109] : memref<1x4x1200xbf16, #tpu.memory_space<vmem>>, vector<1x4x800xbf16>
    %20 = vector.shape_cast %19 : vector<1x4x800xbf16> to vector<4x800xbf16>
    %c0_19 = arith.constant 0 : index
    %c0_20 = arith.constant 0 : index
    %c110 = arith.constant 110 : index
    %21 = vector.load %arg2[%c0_19, %c0_20, %c110] : memref<1x4x1200xbf16, #tpu.memory_space<vmem>>, vector<1x4x800xbf16>
    %22 = vector.shape_cast %21 : vector<1x4x800xbf16> to vector<4x800xbf16>
    %c0_21 = arith.constant 0 : index
    %c0_22 = arith.constant 0 : index
    %c111 = arith.constant 111 : index
    %23 = vector.load %arg2[%c0_21, %c0_22, %c111] : memref<1x4x1200xbf16, #tpu.memory_space<vmem>>, vector<1x4x800xbf16>
    %24 = vector.shape_cast %23 : vector<1x4x800xbf16> to vector<4x800xbf16>
    %c0_23 = arith.constant 0 : index
    %c0_24 = arith.constant 0 : index
    %c189 = arith.constant 189 : index
    %25 = vector.load %arg2[%c0_23, %c0_24, %c189] : memref<1x4x1200xbf16, #tpu.memory_space<vmem>>, vector<1x4x800xbf16>
    %26 = vector.shape_cast %25 : vector<1x4x800xbf16> to vector<4x800xbf16>
    %c0_25 = arith.constant 0 : index
    %c0_26 = arith.constant 0 : index
    %c190 = arith.constant 190 : index
    %27 = vector.load %arg2[%c0_25, %c0_26, %c190] : memref<1x4x1200xbf16, #tpu.memory_space<vmem>>, vector<1x4x800xbf16>
    %28 = vector.shape_cast %27 : vector<1x4x800xbf16> to vector<4x800xbf16>
    %c0_27 = arith.constant 0 : index
    %c0_28 = arith.constant 0 : index
    %c191 = arith.constant 191 : index
    %29 = vector.load %arg2[%c0_27, %c0_28, %c191] : memref<1x4x1200xbf16, #tpu.memory_space<vmem>>, vector<1x4x800xbf16>
    %30 = vector.shape_cast %29 : vector<1x4x800xbf16> to vector<4x800xbf16>
    %c0_29 = arith.constant 0 : index
    %c0_30 = arith.constant 0 : index
    %c199 = arith.constant 199 : index
    %31 = vector.load %arg2[%c0_29, %c0_30, %c199] : memref<1x4x1200xbf16, #tpu.memory_space<vmem>>, vector<1x4x800xbf16>
    %32 = vector.shape_cast %31 : vector<1x4x800xbf16> to vector<4x800xbf16>
    %c0_31 = arith.constant 0 : index
    %c0_32 = arith.constant 0 : index
    %c200 = arith.constant 200 : index
    %33 = vector.load %arg2[%c0_31, %c0_32, %c200] : memref<1x4x1200xbf16, #tpu.memory_space<vmem>>, vector<1x4x800xbf16>
    %34 = vector.shape_cast %33 : vector<1x4x800xbf16> to vector<4x800xbf16>
    %c0_33 = arith.constant 0 : index
    %c0_34 = arith.constant 0 : index
    %c201 = arith.constant 201 : index
    %35 = vector.load %arg2[%c0_33, %c0_34, %c201] : memref<1x4x1200xbf16, #tpu.memory_space<vmem>>, vector<1x4x800xbf16>
    %36 = vector.shape_cast %35 : vector<1x4x800xbf16> to vector<4x800xbf16>
    %c0_35 = arith.constant 0 : index
    %c0_36 = arith.constant 0 : index
    %c209 = arith.constant 209 : index
    %37 = vector.load %arg2[%c0_35, %c0_36, %c209] : memref<1x4x1200xbf16, #tpu.memory_space<vmem>>, vector<1x4x800xbf16>
    %38 = vector.shape_cast %37 : vector<1x4x800xbf16> to vector<4x800xbf16>
    %c0_37 = arith.constant 0 : index
    %c0_38 = arith.constant 0 : index
    %c210 = arith.constant 210 : index
    %39 = vector.load %arg2[%c0_37, %c0_38, %c210] : memref<1x4x1200xbf16, #tpu.memory_space<vmem>>, vector<1x4x800xbf16>
    %40 = vector.shape_cast %39 : vector<1x4x800xbf16> to vector<4x800xbf16>
    %c0_39 = arith.constant 0 : index
    %c0_40 = arith.constant 0 : index
    %c211 = arith.constant 211 : index
    %41 = vector.load %arg2[%c0_39, %c0_40, %c211] : memref<1x4x1200xbf16, #tpu.memory_space<vmem>>, vector<1x4x800xbf16>
    %42 = vector.shape_cast %41 : vector<1x4x800xbf16> to vector<4x800xbf16>
    %c0_41 = arith.constant 0 : index
    %c0_42 = arith.constant 0 : index
    %c289 = arith.constant 289 : index
    %43 = vector.load %arg2[%c0_41, %c0_42, %c289] : memref<1x4x1200xbf16, #tpu.memory_space<vmem>>, vector<1x4x800xbf16>
    %44 = vector.shape_cast %43 : vector<1x4x800xbf16> to vector<4x800xbf16>
    %c0_43 = arith.constant 0 : index
    %c0_44 = arith.constant 0 : index
    %c290 = arith.constant 290 : index
    %45 = vector.load %arg2[%c0_43, %c0_44, %c290] : memref<1x4x1200xbf16, #tpu.memory_space<vmem>>, vector<1x4x800xbf16>
    %46 = vector.shape_cast %45 : vector<1x4x800xbf16> to vector<4x800xbf16>
    %c0_45 = arith.constant 0 : index
    %c0_46 = arith.constant 0 : index
    %c291 = arith.constant 291 : index
    %47 = vector.load %arg2[%c0_45, %c0_46, %c291] : memref<1x4x1200xbf16, #tpu.memory_space<vmem>>, vector<1x4x800xbf16>
    %48 = vector.shape_cast %47 : vector<1x4x800xbf16> to vector<4x800xbf16>
    %c0_47 = arith.constant 0 : index
    %c0_48 = arith.constant 0 : index
    %c299 = arith.constant 299 : index
    %49 = vector.load %arg2[%c0_47, %c0_48, %c299] : memref<1x4x1200xbf16, #tpu.memory_space<vmem>>, vector<1x4x800xbf16>
    %50 = vector.shape_cast %49 : vector<1x4x800xbf16> to vector<4x800xbf16>
    %c0_49 = arith.constant 0 : index
    %c0_50 = arith.constant 0 : index
    %c300 = arith.constant 300 : index
    %51 = vector.load %arg2[%c0_49, %c0_50, %c300] : memref<1x4x1200xbf16, #tpu.memory_space<vmem>>, vector<1x4x800xbf16>
    %52 = vector.shape_cast %51 : vector<1x4x800xbf16> to vector<4x800xbf16>
    %c0_51 = arith.constant 0 : index
    %c0_52 = arith.constant 0 : index
    %c301 = arith.constant 301 : index
    %53 = vector.load %arg2[%c0_51, %c0_52, %c301] : memref<1x4x1200xbf16, #tpu.memory_space<vmem>>, vector<1x4x800xbf16>
    %54 = vector.shape_cast %53 : vector<1x4x800xbf16> to vector<4x800xbf16>
    %c0_53 = arith.constant 0 : index
    %c0_54 = arith.constant 0 : index
    %c309 = arith.constant 309 : index
    %55 = vector.load %arg2[%c0_53, %c0_54, %c309] : memref<1x4x1200xbf16, #tpu.memory_space<vmem>>, vector<1x4x800xbf16>
    %56 = vector.shape_cast %55 : vector<1x4x800xbf16> to vector<4x800xbf16>
    %c0_55 = arith.constant 0 : index
    %c0_56 = arith.constant 0 : index
    %c310 = arith.constant 310 : index
    %57 = vector.load %arg2[%c0_55, %c0_56, %c310] : memref<1x4x1200xbf16, #tpu.memory_space<vmem>>, vector<1x4x800xbf16>
    %58 = vector.shape_cast %57 : vector<1x4x800xbf16> to vector<4x800xbf16>
    %c0_57 = arith.constant 0 : index
    %c0_58 = arith.constant 0 : index
    %c311 = arith.constant 311 : index
    %59 = vector.load %arg2[%c0_57, %c0_58, %c311] : memref<1x4x1200xbf16, #tpu.memory_space<vmem>>, vector<1x4x800xbf16>
    %60 = vector.shape_cast %59 : vector<1x4x800xbf16> to vector<4x800xbf16>
    %61 = tpu.concatenate %8, %10, %12, %14, %16, %18, %20, %22, %24, %26, %28, %30, %32, %34, %36, %38 in 0 : vector<4x800xbf16>, vector<4x800xbf16>, vector<4x800xbf16>, vector<4x800xbf16>, vector<4x800xbf16>, vector<4x800xbf16>, vector<4x800xbf16>, vector<4x800xbf16>, vector<4x800xbf16>, vector<4x800xbf16>, vector<4x800xbf16>, vector<4x800xbf16>, vector<4x800xbf16>, vector<4x800xbf16>, vector<4x800xbf16>, vector<4x800xbf16> -> vector<64x800xbf16>
    %62 = tpu.concatenate %40, %42, %44, %46, %48, %50, %52, %54, %56, %58, %60 in 0 : vector<4x800xbf16>, vector<4x800xbf16>, vector<4x800xbf16>, vector<4x800xbf16>, vector<4x800xbf16>, vector<4x800xbf16>, vector<4x800xbf16>, vector<4x800xbf16>, vector<4x800xbf16>, vector<4x800xbf16>, vector<4x800xbf16> -> vector<44x800xbf16>
    %63 = tpu.concatenate %61, %62 in 0 : vector<64x800xbf16>, vector<44x800xbf16> -> vector<108x800xbf16>
    %cst_59 = arith.constant dense<0.000000e+00> : vector<8x800xf32>
    %64 = tpu.matmul %3, %63, %cst_59 {dimension_numbers = #tpu.dot_dimension_numbers<[1], [0], [0], [1], [0, 0, 1, 1], [], []>} : vector<8x108xbf16>, vector<108x800xbf16>, vector<8x800xf32> -> vector<8x800xf32>
    %65 = vector.broadcast %4 : vector<1x800xf32> to vector<8x800xf32>
    %66 = arith.mulf %64, %65 : vector<8x800xf32>
    %cst_60 = arith.constant dense<0.000000e+00> : vector<8xf32>
    %67 = vector.multi_reduction <add>, %66, %cst_60 [1] : vector<8x800xf32> to vector<8xf32>
    %68 = vector.shape_cast %67 : vector<8xf32> to vector<8x1xf32>
    %69 = arith.addf %5, %68 : vector<8x1xf32>
    %70 = arith.mulf %64, %66 : vector<8x800xf32>
    %cst_61 = arith.constant dense<0.000000e+00> : vector<8xf32>
    %71 = vector.multi_reduction <add>, %70, %cst_61 [1] : vector<8x800xf32> to vector<8xf32>
    %72 = vector.shape_cast %71 : vector<8xf32> to vector<8x1xf32>
    %73 = arith.addf %6, %72 : vector<8x1xf32>
    %c0_62 = arith.constant 0 : index
    %c0_63 = arith.constant 0 : index
    %c0_64 = arith.constant 0 : index
    %74 = vector.load %arg5[%c0_62, %c0_63, %c0_64] : memref<1x8x1xf32, #tpu.memory_space<vmem>>, vector<1x8x1xf32>
    %75 = vector.shape_cast %74 : vector<1x8x1xf32> to vector<8x1xf32>
    %76 = arith.addf %75, %69 : vector<8x1xf32>
    %c0_65 = arith.constant 0 : index
    %c0_66 = arith.constant 0 : index
    %c0_67 = arith.constant 0 : index
    %77 = vector.load %arg5[%c0_65, %c0_66, %c0_67] : memref<1x8x1xf32, #tpu.memory_space<vmem>>, vector<1x8x1xf32>
    %78 = vector.shape_cast %77 : vector<1x8x1xf32> to vector<8x1xf32>
    %79 = vector.shape_cast %76 : vector<8x1xf32> to vector<1x8x1xf32>
    tpu.vector_store %arg5[%c0_65, %c0_66, %c0_67], %79 {strides = array<i32>} : memref<1x8x1xf32, #tpu.memory_space<vmem>>, vector<1x8x1xf32>,
    %c0_68 = arith.constant 0 : index
    %c0_69 = arith.constant 0 : index
    %c0_70 = arith.constant 0 : index
    %80 = vector.load %arg6[%c0_68, %c0_69, %c0_70] : memref<1x8x1xf32, #tpu.memory_space<vmem>>, vector<1x8x1xf32>
    %81 = vector.shape_cast %80 : vector<1x8x1xf32> to vector<8x1xf32>
    %82 = arith.addf %81, %73 : vector<8x1xf32>
    %c0_71 = arith.constant 0 : index
    %c0_72 = arith.constant 0 : index
    %c0_73 = arith.constant 0 : index
    %83 = vector.load %arg6[%c0_71, %c0_72, %c0_73] : memref<1x8x1xf32, #tpu.memory_space<vmem>>, vector<1x8x1xf32>
    %84 = vector.shape_cast %83 : vector<1x8x1xf32> to vector<8x1xf32>
    %85 = vector.shape_cast %82 : vector<8x1xf32> to vector<1x8x1xf32>
    tpu.vector_store %arg6[%c0_71, %c0_72, %c0_73], %85 {strides = array<i32>} : memref<1x8x1xf32, #tpu.memory_space<vmem>>, vector<1x8x1xf32>,
    return
  }
  func.func @transform_0(%arg0: i32, %arg1: i32) -> (i32, i32, i32) {
    %c1_i32 = arith.constant 1 : i32
    %0 = arith.muli %arg0, %c1_i32 : i32
    %1 = arith.addi %0, %arg1 : i32
    %c0_i32 = arith.constant 0 : i32
    %c0_i32_0 = arith.constant 0 : i32
    %c0_i32_1 = arith.constant 0 : i32
    return %1, %c0_i32, %c0_i32_0 : i32, i32, i32
  }
  func.func @transform_1(%arg0: i32, %arg1: i32) -> (i32, i32) {
    %c0_i32 = arith.constant 0 : i32
    %c0_i32_0 = arith.constant 0 : i32
    %c0_i32_1 = arith.constant 0 : i32
    return %c0_i32, %c0_i32_0 : i32, i32
  }
  func.func @transform_2(%arg0: i32, %arg1: i32) -> (i32, i32) {
    %c0_i32 = arith.constant 0 : i32
    %c0_i32_0 = arith.constant 0 : i32
    %c0_i32_1 = arith.constant 0 : i32
    return %c0_i32, %c0_i32_0 : i32, i32
  }
  func.func @transform_3(%arg0: i32, %arg1: i32) -> (i32, i32, i32) {
    %c0_i32 = arith.constant 0 : i32
    %c0_i32_0 = arith.constant 0 : i32
    %c0_i32_1 = arith.constant 0 : i32
    return %arg0, %c0_i32, %c0_i32_0 : i32, i32, i32
  }
  func.func @transform_4(%arg0: i32, %arg1: i32) -> (i32, i32, i32) {
    %c0_i32 = arith.constant 0 : i32
    %c0_i32_0 = arith.constant 0 : i32
    %c0_i32_1 = arith.constant 0 : i32
    return %arg0, %c0_i32, %c0_i32_0 : i32, i32, i32
  }
}

module attributes {stable_mosaic.version = 11 : i64} {
  func.func @_apply_kernel(%arg0: i32, %arg1: memref<1x4x1200xbf16, #tpu.memory_space<vmem>>, %arg2: memref<8x108xbf16, #tpu.memory_space<vmem>>, %arg3: memref<8x1xf32, #tpu.memory_space<vmem>>, %arg4: memref<8x1xf32, #tpu.memory_space<vmem>>, %arg5: memref<1x8x800xbf16, #tpu.memory_space<vmem>>) attributes {dimension_semantics = [#tpu.dimension_semantics<parallel>], iteration_bounds = array<i64: 2>, scalar_prefetch = 0 : i64, scratch_operands = 0 : i64, tpu.core_type = #tpu.core_type<tc>, window_params = [{transform_indices = @transform_0, window_bounds = array<i64: 1, 4, 1200>}, {pipeline_mode = #tpu.pipeline_mode<synchronous>, transform_indices = @transform_1, window_bounds = array<i64: 8, 108>}, {pipeline_mode = #tpu.pipeline_mode<synchronous>, transform_indices = @transform_2, window_bounds = array<i64: 8, 1>}, {pipeline_mode = #tpu.pipeline_mode<synchronous>, transform_indices = @transform_3, window_bounds = array<i64: 8, 1>}, {transform_indices = @transform_4, window_bounds = array<i64: 1, 8, 800>}]} {
    %c0 = arith.constant 0 : index
    %c0_0 = arith.constant 0 : index
    %0 = vector.load %arg2[%c0, %c0_0] : memref<8x108xbf16, #tpu.memory_space<vmem>>, vector<8x108xbf16>
    %c0_1 = arith.constant 0 : index
    %c0_2 = arith.constant 0 : index
    %1 = vector.load %arg3[%c0_1, %c0_2] : memref<8x1xf32, #tpu.memory_space<vmem>>, vector<8x1xf32>
    %c0_3 = arith.constant 0 : index
    %c0_4 = arith.constant 0 : index
    %2 = vector.load %arg4[%c0_3, %c0_4] : memref<8x1xf32, #tpu.memory_space<vmem>>, vector<8x1xf32>
    %c0_5 = arith.constant 0 : index
    %c0_6 = arith.constant 0 : index
    %c89 = arith.constant 89 : index
    %3 = vector.load %arg1[%c0_5, %c0_6, %c89] : memref<1x4x1200xbf16, #tpu.memory_space<vmem>>, vector<1x4x800xbf16>
    %4 = vector.shape_cast %3 : vector<1x4x800xbf16> to vector<4x800xbf16>
    %c0_7 = arith.constant 0 : index
    %c0_8 = arith.constant 0 : index
    %c90 = arith.constant 90 : index
    %5 = vector.load %arg1[%c0_7, %c0_8, %c90] : memref<1x4x1200xbf16, #tpu.memory_space<vmem>>, vector<1x4x800xbf16>
    %6 = vector.shape_cast %5 : vector<1x4x800xbf16> to vector<4x800xbf16>
    %c0_9 = arith.constant 0 : index
    %c0_10 = arith.constant 0 : index
    %c91 = arith.constant 91 : index
    %7 = vector.load %arg1[%c0_9, %c0_10, %c91] : memref<1x4x1200xbf16, #tpu.memory_space<vmem>>, vector<1x4x800xbf16>
    %8 = vector.shape_cast %7 : vector<1x4x800xbf16> to vector<4x800xbf16>
    %c0_11 = arith.constant 0 : index
    %c0_12 = arith.constant 0 : index
    %c99 = arith.constant 99 : index
    %9 = vector.load %arg1[%c0_11, %c0_12, %c99] : memref<1x4x1200xbf16, #tpu.memory_space<vmem>>, vector<1x4x800xbf16>
    %10 = vector.shape_cast %9 : vector<1x4x800xbf16> to vector<4x800xbf16>
    %c0_13 = arith.constant 0 : index
    %c0_14 = arith.constant 0 : index
    %c100 = arith.constant 100 : index
    %11 = vector.load %arg1[%c0_13, %c0_14, %c100] : memref<1x4x1200xbf16, #tpu.memory_space<vmem>>, vector<1x4x800xbf16>
    %12 = vector.shape_cast %11 : vector<1x4x800xbf16> to vector<4x800xbf16>
    %c0_15 = arith.constant 0 : index
    %c0_16 = arith.constant 0 : index
    %c101 = arith.constant 101 : index
    %13 = vector.load %arg1[%c0_15, %c0_16, %c101] : memref<1x4x1200xbf16, #tpu.memory_space<vmem>>, vector<1x4x800xbf16>
    %14 = vector.shape_cast %13 : vector<1x4x800xbf16> to vector<4x800xbf16>
    %c0_17 = arith.constant 0 : index
    %c0_18 = arith.constant 0 : index
    %c109 = arith.constant 109 : index
    %15 = vector.load %arg1[%c0_17, %c0_18, %c109] : memref<1x4x1200xbf16, #tpu.memory_space<vmem>>, vector<1x4x800xbf16>
    %16 = vector.shape_cast %15 : vector<1x4x800xbf16> to vector<4x800xbf16>
    %c0_19 = arith.constant 0 : index
    %c0_20 = arith.constant 0 : index
    %c110 = arith.constant 110 : index
    %17 = vector.load %arg1[%c0_19, %c0_20, %c110] : memref<1x4x1200xbf16, #tpu.memory_space<vmem>>, vector<1x4x800xbf16>
    %18 = vector.shape_cast %17 : vector<1x4x800xbf16> to vector<4x800xbf16>
    %c0_21 = arith.constant 0 : index
    %c0_22 = arith.constant 0 : index
    %c111 = arith.constant 111 : index
    %19 = vector.load %arg1[%c0_21, %c0_22, %c111] : memref<1x4x1200xbf16, #tpu.memory_space<vmem>>, vector<1x4x800xbf16>
    %20 = vector.shape_cast %19 : vector<1x4x800xbf16> to vector<4x800xbf16>
    %c0_23 = arith.constant 0 : index
    %c0_24 = arith.constant 0 : index
    %c189 = arith.constant 189 : index
    %21 = vector.load %arg1[%c0_23, %c0_24, %c189] : memref<1x4x1200xbf16, #tpu.memory_space<vmem>>, vector<1x4x800xbf16>
    %22 = vector.shape_cast %21 : vector<1x4x800xbf16> to vector<4x800xbf16>
    %c0_25 = arith.constant 0 : index
    %c0_26 = arith.constant 0 : index
    %c190 = arith.constant 190 : index
    %23 = vector.load %arg1[%c0_25, %c0_26, %c190] : memref<1x4x1200xbf16, #tpu.memory_space<vmem>>, vector<1x4x800xbf16>
    %24 = vector.shape_cast %23 : vector<1x4x800xbf16> to vector<4x800xbf16>
    %c0_27 = arith.constant 0 : index
    %c0_28 = arith.constant 0 : index
    %c191 = arith.constant 191 : index
    %25 = vector.load %arg1[%c0_27, %c0_28, %c191] : memref<1x4x1200xbf16, #tpu.memory_space<vmem>>, vector<1x4x800xbf16>
    %26 = vector.shape_cast %25 : vector<1x4x800xbf16> to vector<4x800xbf16>
    %c0_29 = arith.constant 0 : index
    %c0_30 = arith.constant 0 : index
    %c199 = arith.constant 199 : index
    %27 = vector.load %arg1[%c0_29, %c0_30, %c199] : memref<1x4x1200xbf16, #tpu.memory_space<vmem>>, vector<1x4x800xbf16>
    %28 = vector.shape_cast %27 : vector<1x4x800xbf16> to vector<4x800xbf16>
    %c0_31 = arith.constant 0 : index
    %c0_32 = arith.constant 0 : index
    %c200 = arith.constant 200 : index
    %29 = vector.load %arg1[%c0_31, %c0_32, %c200] : memref<1x4x1200xbf16, #tpu.memory_space<vmem>>, vector<1x4x800xbf16>
    %30 = vector.shape_cast %29 : vector<1x4x800xbf16> to vector<4x800xbf16>
    %c0_33 = arith.constant 0 : index
    %c0_34 = arith.constant 0 : index
    %c201 = arith.constant 201 : index
    %31 = vector.load %arg1[%c0_33, %c0_34, %c201] : memref<1x4x1200xbf16, #tpu.memory_space<vmem>>, vector<1x4x800xbf16>
    %32 = vector.shape_cast %31 : vector<1x4x800xbf16> to vector<4x800xbf16>
    %c0_35 = arith.constant 0 : index
    %c0_36 = arith.constant 0 : index
    %c209 = arith.constant 209 : index
    %33 = vector.load %arg1[%c0_35, %c0_36, %c209] : memref<1x4x1200xbf16, #tpu.memory_space<vmem>>, vector<1x4x800xbf16>
    %34 = vector.shape_cast %33 : vector<1x4x800xbf16> to vector<4x800xbf16>
    %c0_37 = arith.constant 0 : index
    %c0_38 = arith.constant 0 : index
    %c210 = arith.constant 210 : index
    %35 = vector.load %arg1[%c0_37, %c0_38, %c210] : memref<1x4x1200xbf16, #tpu.memory_space<vmem>>, vector<1x4x800xbf16>
    %36 = vector.shape_cast %35 : vector<1x4x800xbf16> to vector<4x800xbf16>
    %c0_39 = arith.constant 0 : index
    %c0_40 = arith.constant 0 : index
    %c211 = arith.constant 211 : index
    %37 = vector.load %arg1[%c0_39, %c0_40, %c211] : memref<1x4x1200xbf16, #tpu.memory_space<vmem>>, vector<1x4x800xbf16>
    %38 = vector.shape_cast %37 : vector<1x4x800xbf16> to vector<4x800xbf16>
    %c0_41 = arith.constant 0 : index
    %c0_42 = arith.constant 0 : index
    %c289 = arith.constant 289 : index
    %39 = vector.load %arg1[%c0_41, %c0_42, %c289] : memref<1x4x1200xbf16, #tpu.memory_space<vmem>>, vector<1x4x800xbf16>
    %40 = vector.shape_cast %39 : vector<1x4x800xbf16> to vector<4x800xbf16>
    %c0_43 = arith.constant 0 : index
    %c0_44 = arith.constant 0 : index
    %c290 = arith.constant 290 : index
    %41 = vector.load %arg1[%c0_43, %c0_44, %c290] : memref<1x4x1200xbf16, #tpu.memory_space<vmem>>, vector<1x4x800xbf16>
    %42 = vector.shape_cast %41 : vector<1x4x800xbf16> to vector<4x800xbf16>
    %c0_45 = arith.constant 0 : index
    %c0_46 = arith.constant 0 : index
    %c291 = arith.constant 291 : index
    %43 = vector.load %arg1[%c0_45, %c0_46, %c291] : memref<1x4x1200xbf16, #tpu.memory_space<vmem>>, vector<1x4x800xbf16>
    %44 = vector.shape_cast %43 : vector<1x4x800xbf16> to vector<4x800xbf16>
    %c0_47 = arith.constant 0 : index
    %c0_48 = arith.constant 0 : index
    %c299 = arith.constant 299 : index
    %45 = vector.load %arg1[%c0_47, %c0_48, %c299] : memref<1x4x1200xbf16, #tpu.memory_space<vmem>>, vector<1x4x800xbf16>
    %46 = vector.shape_cast %45 : vector<1x4x800xbf16> to vector<4x800xbf16>
    %c0_49 = arith.constant 0 : index
    %c0_50 = arith.constant 0 : index
    %c300 = arith.constant 300 : index
    %47 = vector.load %arg1[%c0_49, %c0_50, %c300] : memref<1x4x1200xbf16, #tpu.memory_space<vmem>>, vector<1x4x800xbf16>
    %48 = vector.shape_cast %47 : vector<1x4x800xbf16> to vector<4x800xbf16>
    %c0_51 = arith.constant 0 : index
    %c0_52 = arith.constant 0 : index
    %c301 = arith.constant 301 : index
    %49 = vector.load %arg1[%c0_51, %c0_52, %c301] : memref<1x4x1200xbf16, #tpu.memory_space<vmem>>, vector<1x4x800xbf16>
    %50 = vector.shape_cast %49 : vector<1x4x800xbf16> to vector<4x800xbf16>
    %c0_53 = arith.constant 0 : index
    %c0_54 = arith.constant 0 : index
    %c309 = arith.constant 309 : index
    %51 = vector.load %arg1[%c0_53, %c0_54, %c309] : memref<1x4x1200xbf16, #tpu.memory_space<vmem>>, vector<1x4x800xbf16>
    %52 = vector.shape_cast %51 : vector<1x4x800xbf16> to vector<4x800xbf16>
    %c0_55 = arith.constant 0 : index
    %c0_56 = arith.constant 0 : index
    %c310 = arith.constant 310 : index
    %53 = vector.load %arg1[%c0_55, %c0_56, %c310] : memref<1x4x1200xbf16, #tpu.memory_space<vmem>>, vector<1x4x800xbf16>
    %54 = vector.shape_cast %53 : vector<1x4x800xbf16> to vector<4x800xbf16>
    %c0_57 = arith.constant 0 : index
    %c0_58 = arith.constant 0 : index
    %c311 = arith.constant 311 : index
    %55 = vector.load %arg1[%c0_57, %c0_58, %c311] : memref<1x4x1200xbf16, #tpu.memory_space<vmem>>, vector<1x4x800xbf16>
    %56 = vector.shape_cast %55 : vector<1x4x800xbf16> to vector<4x800xbf16>
    %57 = tpu.concatenate %4, %6, %8, %10, %12, %14, %16, %18, %20, %22, %24, %26, %28, %30, %32, %34 in 0 : vector<4x800xbf16>, vector<4x800xbf16>, vector<4x800xbf16>, vector<4x800xbf16>, vector<4x800xbf16>, vector<4x800xbf16>, vector<4x800xbf16>, vector<4x800xbf16>, vector<4x800xbf16>, vector<4x800xbf16>, vector<4x800xbf16>, vector<4x800xbf16>, vector<4x800xbf16>, vector<4x800xbf16>, vector<4x800xbf16>, vector<4x800xbf16> -> vector<64x800xbf16>
    %58 = tpu.concatenate %36, %38, %40, %42, %44, %46, %48, %50, %52, %54, %56 in 0 : vector<4x800xbf16>, vector<4x800xbf16>, vector<4x800xbf16>, vector<4x800xbf16>, vector<4x800xbf16>, vector<4x800xbf16>, vector<4x800xbf16>, vector<4x800xbf16>, vector<4x800xbf16>, vector<4x800xbf16>, vector<4x800xbf16> -> vector<44x800xbf16>
    %59 = tpu.concatenate %57, %58 in 0 : vector<64x800xbf16>, vector<44x800xbf16> -> vector<108x800xbf16>
    %cst = arith.constant dense<0.000000e+00> : vector<8x800xf32>
    %60 = tpu.matmul %0, %59, %cst {dimension_numbers = #tpu.dot_dimension_numbers<[1], [0], [0], [1], [0, 0, 1, 1], [], []>} : vector<8x108xbf16>, vector<108x800xbf16>, vector<8x800xf32> -> vector<8x800xf32>
    %61 = vector.broadcast %1 : vector<8x1xf32> to vector<8x800xf32>
    %62 = arith.mulf %60, %61 : vector<8x800xf32>
    %63 = vector.broadcast %2 : vector<8x1xf32> to vector<8x800xf32>
    %64 = arith.addf %62, %63 : vector<8x800xf32>
    %cst_59 = arith.constant 1.000000e-01 : f32
    %65 = vector.broadcast %cst_59 : f32 to vector<8x800xf32>
    %66 = arith.mulf %65, %64 : vector<8x800xf32>
    %67 = arith.maximumf %64, %66 : vector<8x800xf32>
    %68 = arith.truncf %67 : vector<8x800xf32> to vector<8x800xbf16>
    %c0_60 = arith.constant 0 : index
    %c0_61 = arith.constant 0 : index
    %c0_62 = arith.constant 0 : index
    %69 = vector.load %arg5[%c0_60, %c0_61, %c0_62] : memref<1x8x800xbf16, #tpu.memory_space<vmem>>, vector<1x8x800xbf16>
    %70 = vector.shape_cast %69 : vector<1x8x800xbf16> to vector<8x800xbf16>
    %71 = vector.shape_cast %68 : vector<8x800xbf16> to vector<1x8x800xbf16>
    tpu.vector_store %arg5[%c0_60, %c0_61, %c0_62], %71 {strides = array<i32>} : memref<1x8x800xbf16, #tpu.memory_space<vmem>>, vector<1x8x800xbf16>,
    return
  }
  func.func @transform_0(%arg0: i32) -> (i32, i32, i32) {
    %c0_i32 = arith.constant 0 : i32
    %c0_i32_0 = arith.constant 0 : i32
    %c0_i32_1 = arith.constant 0 : i32
    return %arg0, %c0_i32, %c0_i32_0 : i32, i32, i32
  }
  func.func @transform_1(%arg0: i32) -> (i32, i32) {
    %c0_i32 = arith.constant 0 : i32
    %c0_i32_0 = arith.constant 0 : i32
    %c0_i32_1 = arith.constant 0 : i32
    return %c0_i32, %c0_i32_0 : i32, i32
  }
  func.func @transform_2(%arg0: i32) -> (i32, i32) {
    %c0_i32 = arith.constant 0 : i32
    %c0_i32_0 = arith.constant 0 : i32
    %c0_i32_1 = arith.constant 0 : i32
    return %c0_i32, %c0_i32_0 : i32, i32
  }
  func.func @transform_3(%arg0: i32) -> (i32, i32) {
    %c0_i32 = arith.constant 0 : i32
    %c0_i32_0 = arith.constant 0 : i32
    %c0_i32_1 = arith.constant 0 : i32
    return %c0_i32, %c0_i32_0 : i32, i32
  }
  func.func @transform_4(%arg0: i32) -> (i32, i32, i32) {
    %c0_i32 = arith.constant 0 : i32
    %c0_i32_0 = arith.constant 0 : i32
    %c0_i32_1 = arith.constant 0 : i32
    return %arg0, %c0_i32, %c0_i32_0 : i32, i32, i32
  }
}

</mosaic_0001>

<bundles_post_ra>
// kernel: cnn_block_forward.3
= control target key start
LH: loop header
LB: loop body
LE: loop exit
PB: predicated region body
PF: predicated region fallthrough
CT: control target
= control target key end

     0   :  { %s2057_s15 = smov 0   ;;  %s3690_s0 = inlined_call_operand.vmem [shape: bf16[2,4,1200], index: 0, kind: input, shape index: {}]   ;;  %s3691_s1 = inlined_call_operand.vmem [shape: bf16[8,108], index: 1, kind: input, shape index: {}]   ;;  %s3692_s2 = inlined_call_operand.vmem [shape: f32[8,1], index: 2, kind: input, shape index: {}]   ;;  %s3693_s3 = inlined_call_operand.vmem [shape: f32[8,1], index: 3, kind: input, shape index: {}]   ;;  %s3694_s4 = inlined_call_operand.vmem [shape: bf16[2,8,800], index: 4, kind: output, shape index: {}]  }
   0x1 LB: > { %s1894_s16 = sadd.s32 4294967295, %s2003_s15   ;;  %p1898_p0 = scmp.ge.s32.totalorder %s2003_s15, 1  ;;  %s2003_s15 = sphi %s2057_s15, %s14_s15  }
   0x2   : > { %p162_p1 = scmp.lt.s32.totalorder %s2003_s15, 3 }
   0x4   : > { %p163_p2 = pnand %p1898_p0, %p162_p1 }
   0x6   : > { %166 = sbr.rel (%p163_p2) target bundleno = 883 (0x373), region = 36 }
   0xd   : > { %p188_p3 = scmp.lt.s32.totalorder %s1894_s16, 1  ;;  %v215_v0 = vlaneseq  ;;  %v2005_v1 = vmov 1983009808   ;;  %s2006_s21 = smov 127   ;;  %vm276_vm0 = vcmask 1039360   ;;  %vm301_vm1 = vcmask 1031168  }
   0xe   : > { %v213_v2 = vunpack.c.l.s4 %v2005_v1  ;;  %s2007_s22 = smov 126   ;;  %s2008_s23 = smov 118   ;;  %vm689_vm2 = vcmask 1041408   ;;  %vm711_vm3 = vcmask 1043456   ;;  %vm343_vm4 = vcmask 965632  }
   0xf   : > { %s3930_s16 = smov (!%p188_p3, %s1894_s16), 1  ;;  %v216_v3 = vshrl.u32 %v215_v0, 7  ;;  %s2009_s24 = smov 117   ;;  %vm726_vm5 = vcmask 1045504   ;;  %vm958_vm6 = vcmask 400384   ;;  %vm997_vm7 = vcmask 392192  }
  0x10   : > { %v214_v4 = vunpack.c.0.s8 %v213_v2  ;;  %s1944_s17 = smul.u32 20, %s3930_s16  ;;  %s2010_s25 = smov 116   ;;  %vm3751_vm8 = vcmask 318464   ;;  %vm1065_vm9 = vcmask 310272   ;;  %vm1021_vm10 = vcmask 384000  }
  0x11   : > { %s2011_s26 = smov 49   ;;  %s2012_s27 = smov 48   ;;  %vm1086_vm11 = vcmask 302080   ;;  %vm532_vm12 = vcmask 228352   ;;  %vm573_vm13 = vcmask 220160   ;;  %vm1107_vm14 = vcmask 236544  }
  0x12   : > { %v2068_v5 = vsub.s32 %v214_v4, %v216_v3  ;;  %s2073_s20 = scalar_lea.vmem %s3690_s0, %s1944_s17  ;;  %s2013_s28 = smov 47   ;;  %vm402_vm15 = vcmask 949248  }
  0x13   : > { %v203_v6 = vld [vmem:[%s2073_s20 + $0x8] sm:$0x3f]  ;;  %v202_v8 = vld [vmem:[%s2073_s20] sm:$0xff]  ;;  %s2014_s29 = smov 39   ;;  %s2015_s30 = smov 38  }
  0x14   : > { %3753 = vst [vmem:[#allocation2_spill] sm:$0xff] %v2068_v5  ;;  %v2077_v7 = vrot.slane %v203_v6, %v2068_v5  ;;  %v2081_v9 = vrot.slane %v202_v8, %v2068_v5  ;;  %v244_v10 = vcombine.low %v202_v8, %v202_v8  ;;  %v253_v11 = vcombine.low %v203_v6, %v203_v6  ;;  %v204_v25 = vld [vmem:[%s2073_s20 + $0x8] sm:$0xff]  ;;  %s2016_s5 = smov 37   ;;  %s2017_s6 = smov 29  }
  0x15   : > { %v211_v16 = vcombine.high %v202_v8, %v202_v8  ;;  %v228_v21 = vcombine.high %v203_v6, %v203_v6  ;;  %v310_v27 = vcombine.low %v204_v25, %v204_v25  ;;  %v2139_v29 = vrot.slane %v204_v25, %v2068_v5  ;;  %v2176_v37 = vld [vmem:[%s2073_s20 + $0x2] sm:$0xff]  ;;  %v2189_v40 = vld [vmem:[%s2073_s20 + $0xa] sm:$0x3f]  ;;  %s2018_s7 = smov 28   ;;  %s2019_s8 = smov 27  }
  0x16   : > { %3754 = vst [vmem:[#allocation3_spill] sm:$0xff] %v2077_v7  ;;  %3755 = vst [vmem:[#allocation4_spill] sm:$0xff] %v2081_v9  ;;  %274 = vrot.lane.b32.xlu0 %v2077_v7, %s2006_s21  ;;  %266 = vrot.lane.b32.xlu1 %v2081_v9, %s2006_s21  ;;  %v2088_v12 = vrot.slane %v244_v10, %v2068_v5  ;;  %v2092_v13 = vcombine.high %v2081_v9, %v2081_v9  ;;  %v207_v44 = vld [vmem:[%s2073_s20 + $0x4] sm:$0xff]  ;;  %v2238_v52 = vld [vmem:[%s2073_s20 + $0xc] sm:$0x3f]  ;;  %s2020_s9 = smov 108  }
  0x17   : > { %v260_v14 = vrot.slane %v253_v11, %v2068_v5  ;;  %v2101_v15 = vcombine.low %v2081_v9, %v2081_v9  ;;  %v2108_v19 = vrot.slane %v211_v16, %v2068_v5  ;;  %v285_v22 = vcombine.low %v2077_v7, %v2077_v7  ;;  %3759 = vst [vmem:[#allocation8_spill] sm:$0xff] %v2139_v29  ;;  %s2021_s10 = smov 107   ;;  %s2022_s11 = smov 106  }
  0x18   : > { %3756 = vst [vmem:[#allocation5_spill] sm:$0xff] %v2092_v13  ;;  %v252_v17 = vcombine.high %v2088_v12, %v2088_v12  ;;  %v2121_v23 = vrot.slane %v228_v21, %v2068_v5  ;;  %v2130_v26 = vcombine.low %v2088_v12, %v2088_v12  ;;  %v2134_v28 = vrot.slane %v310_v27, %v2068_v5  ;;  %s2023_s12 = smov 26   ;;  %s2024_s13 = smov 18  }
  0x19   : > { %v261_v18 = vcombine.high %v260_v14, %v260_v14  ;;  %3757 = vst [vmem:[#allocation6_spill] sm:$0xff] %v2108_v19  ;;  %v2114_v20 = vcombine.low %v2108_v19, %v2108_v19  ;;  %v2149_v31 = vcombine.low %v2139_v29, %v2139_v29  ;;  %v2158_v32 = vcombine.high %v2108_v19, %v2108_v19  ;;  %s2025_s14 = smov 17   ;;  %s2026_s17 = smov 16  }
  0x1a   : > { %262 = vrot.lane.b32.xlu0 %v2088_v12, %s2006_s21  ;;  %268 = vrot.lane.b32.xlu1 %v2092_v13, %s2006_s21  ;;  %3758 = vst [vmem:[#allocation7_spill] sm:$0xff] %v2121_v23  ;;  %v286_v24 = vcombine.low %v2121_v23, %v2121_v23  ;;  %v2143_v30 = vcombine.low %v2134_v28, %v2134_v28  ;;  %3765 = vst [vmem:[#allocation14_spill] sm:$0xff] %v2189_v40  ;;  %s2027_s18 = smov 8   ;;  %s2028_s19 = smov 7  }
  0x1b   : > { %3760 = vst [vmem:[#allocation9_spill] sm:$0xff] %v2149_v31  ;;  %3761 = vst [vmem:[#allocation10_spill] sm:$0xff] %v2158_v32  ;;  %v351_v33 = vcombine.high %v204_v25, %v204_v25  ;;  %v2164_v34 = vcombine.high %v2139_v29, %v2139_v29  ;;  %v485_v38 = vcombine.low %v2176_v37, %v2176_v37 }
  0x1c   : > { %v2197_v41 = vrot.slane %v2176_v37, %v2068_v5  ;;  %v502_v43 = vcombine.low %v2189_v40, %v2189_v40  ;;  %v2218_v47 = vrot.slane %v207_v44, %v2068_v5  ;;  %v910_v48 = vcombine.high %v207_v44, %v207_v44 }
  0x1d   : > { %3762 = vst [vmem:[#allocation11_spill] sm:$0xff] %v2164_v34  ;;  %v2167_v35 = vrot.slane %v351_v33, %v2068_v5  ;;  %v2186_v39 = vrot.slane %v485_v38, %v2068_v5  ;;  %v965_v53 = vcombine.low %v207_v44, %v207_v44  ;;  %v2244_v54 = vrot.slane %v2238_v52, %v2068_v5 }
  0x1e   : > { %270 = vrot.lane.b32.xlu0 %v260_v14, %s2006_s21  ;;  %287 = vrot.lane.b32.xlu1 %v2101_v15, %s2007_s22  ;;  %v2212_v45 = vcombine.high %v2197_v41, %v2197_v41  ;;  %v2215_v46 = vrot.slane %v502_v43, %v2068_v5  ;;  %v2232_v50 = vcombine.low %v2218_v47, %v2218_v47 }
  0x1f   : > { %3763 = vst [vmem:[#allocation12_spill] sm:$0xff] %v2167_v35  ;;  %v2173_v36 = vcombine.high %v2167_v35, %v2167_v35  ;;  %v2201_v42 = vcombine.high %v2186_v39, %v2186_v39  ;;  %v2235_v51 = vrot.slane %v910_v48, %v2068_v5  ;;  %v972_v56 = vrot.slane %v965_v53, %v2068_v5 }
  0x20   : > { %v2226_v49 = vcombine.high %v2215_v46, %v2215_v46  ;;  %v2259_v57 = vcombine.low %v2244_v54, %v2244_v54  ;;  %v974_v59 = vcombine.low %v2238_v52, %v2238_v52  ;;  %v2281_v62 = vcombine.high %v2218_v47, %v2218_v47 }
  0x21   : > { %3764 = vst [vmem:[#allocation13_spill] sm:$0xff] %v2173_v36  ;;  %v2250_v55 = vcombine.low %v2235_v51, %v2235_v51  ;;  %v973_v58 = vcombine.low %v972_v56, %v972_v56  ;;  %v1028_v63 = vcombine.high %v972_v56, %v972_v56  ;;  %v1005_v0 = vcombine.high %v2235_v51, %v2235_v51 }
  0x22   : > { %264 = vrot.lane.b32.xlu0 %v252_v17, %s2006_s21  ;;  %272 = vrot.lane.b32.xlu1 %v261_v18, %s2006_s21  ;;  %3766 = vst [vmem:[#allocation15_spill] sm:$0xff] %v2226_v49  ;;  %v2269_v60 = vrot.slane %v974_v59, %v2068_v5  ;;  %v243_v38 = vcombine.high %v2077_v7, %v2077_v7 }
  0x24   : > { %v982_v61 = vcombine.low %v2269_v60, %v2269_v60  ;;  %v1029_v23 = vcombine.high %v2269_v60, %v2269_v60 }
  0x26   : > { %289 = vrot.lane.b32.xlu0 %v2081_v9, %s2007_s22  ;;  %291 = vrot.lane.b32.xlu1 %v2114_v20, %s2007_s22 }
  0x2a   : > { %293 = vrot.lane.b32.xlu0 %v2108_v19, %s2007_s22  ;;  %295 = vrot.lane.b32.xlu1 %v285_v22, %s2007_s22 }
  0x2e   : > { %297 = vrot.lane.b32.xlu0 %v2077_v7, %s2007_s22  ;;  %299 = vrot.lane.b32.xlu1 %v286_v24, %s2007_s22 }
  0x32   : > { %327 = vrot.lane.b32.xlu0 %v2130_v26, %s2008_s23  ;;  %329 = vrot.lane.b32.xlu1 %v2088_v12, %s2008_s23 }
  0x36   : > { %331 = vrot.lane.b32.xlu0 %v2101_v15, %s2008_s23  ;;  %333 = vrot.lane.b32.xlu1 %v2081_v9, %s2008_s23 }
  0x3a   : > { %335 = vrot.lane.b32.xlu0 %v2143_v30, %s2008_s23  ;;  %337 = vrot.lane.b32.xlu1 %v2134_v28, %s2008_s23 }
  0x3e   : > { %339 = vrot.lane.b32.xlu0 %v2149_v31, %s2008_s23  ;;  %341 = vrot.lane.b32.xlu1 %v2139_v29, %s2008_s23 }
  0x42   : > { %361 = vrot.lane.b32.xlu0 %v2081_v9, %s2009_s24  ;;  %363 = vrot.lane.b32.xlu1 %v2092_v13, %s2009_s24 }
  0x46   : > { %365 = vrot.lane.b32.xlu0 %v2108_v19, %s2009_s24  ;;  %367 = vrot.lane.b32.xlu1 %v2158_v32, %s2009_s24 }
  0x4a   : > { %369 = vrot.lane.b32.xlu0 %v2139_v29, %s2009_s24  ;;  %371 = vrot.lane.b32.xlu1 %v2164_v34, %s2009_s24 }
  0x4e   : > { %373 = vrot.lane.b32.xlu0 %v2167_v35, %s2009_s24  ;;  %375 = vrot.lane.b32.xlu1 %v2173_v36, %s2009_s24 }
  0x52   : > { %386 = vrot.lane.b32.xlu0 %v2088_v12, %s2010_s25  ;;  %388 = vrot.lane.b32.xlu1 %v252_v17, %s2010_s25 }
  0x56   : > { %390 = vrot.lane.b32.xlu0 %v2081_v9, %s2010_s25  ;;  %392 = vrot.lane.b32.xlu1 %v2092_v13, %s2010_s25 }
  0x5a   : > { %888 = vrot.lane.b32.xlu0 %v2186_v39, %s2006_s21  ;;  %890 = vrot.lane.b32.xlu1 %v2201_v42, %s2006_s21 }
  0x5e   : > { %892 = vrot.lane.b32.xlu0 %v2197_v41, %s2006_s21  ;;  %894 = vrot.lane.b32.xlu1 %v2212_v45, %s2006_s21 }
  0x62   : > { %896 = vrot.lane.b32.xlu0 %v2215_v46, %s2006_s21  ;;  %898 = vrot.lane.b32.xlu1 %v2226_v49, %s2006_s21 }
  0x66   : > { %944 = vrot.lane.b32.xlu0 %v2232_v50, %s2011_s26  ;;  %946 = vrot.lane.b32.xlu1 %v2218_v47, %s2011_s26 }
  0x6a   : > { %948 = vrot.lane.b32.xlu0 %v2250_v55, %s2011_s26  ;;  %950 = vrot.lane.b32.xlu1 %v2235_v51, %s2011_s26 }
  0x6e   : > { %952 = vrot.lane.b32.xlu0 %v2259_v57, %s2011_s26  ;;  %983 = vrot.lane.b32.xlu1 %v973_v58, %s2012_s27 }
  0x72   : > { %985 = vrot.lane.b32.xlu0 %v972_v56, %s2012_s27  ;;  %987 = vrot.lane.b32.xlu1 %v2232_v50, %s2012_s27 }
  0x76   : > { %989 = vrot.lane.b32.xlu0 %v2218_v47, %s2012_s27  ;;  %991 = vrot.lane.b32.xlu1 %v982_v61, %s2012_s27 }
  0x7a   : > { %1007 = vrot.lane.b32.xlu0 %v2218_v47, %s2013_s28  ;;  %1009 = vrot.lane.b32.xlu1 %v2281_v62, %s2013_s28 }
  0x7e   : > { %1011 = vrot.lane.b32.xlu0 %v2235_v51, %s2013_s28  ;;  %1030 = vrot.lane.b32.xlu1 %v972_v56, %s2014_s29 }
  0x82   : > { %1032 = vrot.lane.b32.xlu0 %v1028_v63, %s2014_s29  ;;  %1034 = vrot.lane.b32.xlu1 %v2218_v47, %s2014_s29 }
  0x86   : > { %1013 = vrot.lane.b32.xlu0 %v1005_v0, %s2013_s28  ;;  %1015 = vrot.lane.b32.xlu1 %v2244_v54, %s2013_s28 }
  0x88   : > { %v2298_v1 = vpop.permute.xlu0 %274  ;;  %v2300_v2 = vpop.permute.xlu1 %266 }
  0x89   : > { %3767 = vst [vmem:[#allocation16_spill] sm:$0xff] %v2298_v1  ;;  %3768 = vst [vmem:[#allocation17_spill] sm:$0xff] %v2300_v2 }
  0x8a   : > { %1036 = vrot.lane.b32.xlu0 %v2281_v62, %s2014_s29  ;;  %1038 = vrot.lane.b32.xlu1 %v2269_v60, %s2014_s29 }
  0x8c   : > { %v2306_v3 = vpop.permute.xlu0 %262  ;;  %v2308_v4 = vpop.permute.xlu1 %268 }
  0x8d   : > { %3769 = vst [vmem:[#allocation18_spill] sm:$0xff] %v2306_v3  ;;  %3770 = vst [vmem:[#allocation19_spill] sm:$0xff] %v2308_v4 }
  0x8e   : > { %1051 = vrot.lane.b32.xlu0 %v2232_v50, %s2015_s30  ;;  %1053 = vrot.lane.b32.xlu1 %v2218_v47, %s2015_s30 }
  0x90   : > { %v2314_v6 = vpop.permute.xlu0 %270  ;;  %v2316_v8 = vpop.permute.xlu1 %287 }
  0x91   : > { %3771 = vst [vmem:[#allocation20_spill] sm:$0xff] %v2314_v6  ;;  %3772 = vst [vmem:[#allocation21_spill] sm:$0xff] %v2316_v8  ;;  %v539_v6 = vcombine.high %v2176_v37, %v2176_v37 }
  0x92   : > { %1055 = vrot.lane.b32.xlu0 %v2250_v55, %s2015_s30  ;;  %1057 = vrot.lane.b32.xlu1 %v2235_v51, %s2015_s30 }
  0x94   : > { %v2322_v10 = vpop.permute.xlu0 %264  ;;  %v2324_v11 = vpop.permute.xlu1 %272 }
  0x95   : > { %3773 = vst [vmem:[#allocation22_spill] sm:$0xff] %v2322_v10  ;;  %3774 = vst [vmem:[#allocation23_spill] sm:$0xff] %v2324_v11  ;;  %v282_v44 = vsel %vm276_vm0, %v2324_v11, %v2298_v1 }
  0x96   : > { %1059 = vrot.lane.b32.xlu0 %v2259_v57, %s2015_s30  ;;  %1072 = vrot.lane.b32.xlu1 %v973_v58, %s2016_s5 }
  0x98   : > { %v2329_v14 = vpop.permute.xlu0 %289  ;;  %v2331_v16 = vpop.permute.xlu1 %291 }
  0x99   : > { %3775 = vst [vmem:[#allocation24_spill] sm:$0xff] %v2329_v14  ;;  %3776 = vst [vmem:[#allocation25_spill] sm:$0xff] %v2331_v16  ;;  %v580_v16 = vcombine.low %v2186_v39, %v2186_v39 }
  0x9a   : > { %1074 = vrot.lane.b32.xlu0 %v972_v56, %s2016_s5  ;;  %1076 = vrot.lane.b32.xlu1 %v2232_v50, %s2016_s5 }
  0x9c   : > { %v2336_v17 = vpop.permute.xlu0 %293  ;;  %v2338_v18 = vpop.permute.xlu1 %295 }
  0x9d   : > { %3777 = vst [vmem:[#allocation26_spill] sm:$0xff] %v2336_v17  ;;  %3778 = vst [vmem:[#allocation27_spill] sm:$0xff] %v2338_v18 }
  0x9e   : > { %1078 = vrot.lane.b32.xlu0 %v2218_v47, %s2016_s5  ;;  %1080 = vrot.lane.b32.xlu1 %v982_v61, %s2016_s5 }
  0xa0   : > { %v2343_v21 = vpop.permute.xlu0 %297  ;;  %v2345_v22 = vpop.permute.xlu1 %299 }
  0xa1   : > { %3779 = vst [vmem:[#allocation28_spill] sm:$0xff] %v2343_v21  ;;  %3780 = vst [vmem:[#allocation29_spill] sm:$0xff] %v2345_v22  ;;  %v307_v53 = vsel %vm301_vm1, %v2343_v21, %v2345_v22 }
  0xa2   : > { %1093 = vrot.lane.b32.xlu0 %v2218_v47, %s2017_s6  ;;  %1095 = vrot.lane.b32.xlu1 %v2281_v62, %s2017_s6 }
  0xa4   : > { %v2351_v24 = vpop.permute.xlu0 %327  ;;  %v2353_v25 = vpop.permute.xlu1 %329 }
  0xa5   : > { %3781 = vst [vmem:[#allocation30_spill] sm:$0xff] %v2351_v24  ;;  %3782 = vst [vmem:[#allocation31_spill] sm:$0xff] %v2353_v25 }
  0xa6   : > { %1097 = vrot.lane.b32.xlu0 %v2235_v51, %s2017_s6  ;;  %1114 = vrot.lane.b32.xlu1 %v972_v56, %s2018_s7  ;;  %v707_v56 = vsel %vm689_vm2, %v243_v38, %v282_v44 }
  0xa8   : > { %v2358_v27 = vpop.permute.xlu0 %331  ;;  %v2360_v33 = vpop.permute.xlu1 %333 }
  0xa9   : > { %3783 = vst [vmem:[#allocation32_spill] sm:$0xff] %v2358_v27  ;;  %3784 = vst [vmem:[#allocation33_spill] sm:$0xff] %v2360_v33  ;;  %v2600_v33 = vrot.slane %v539_v6, %v2068_v5 }
  0xaa   : > { %1116 = vrot.lane.b32.xlu0 %v1028_v63, %s2018_s7  ;;  %1118 = vrot.lane.b32.xlu1 %v2218_v47, %s2018_s7  ;;  %v723_v63 = vsel %vm711_vm3, %v707_v56, %v307_v53 }
  0xab   : > { %v548_v37 = vcombine.low %v2600_v33, %v2600_v33 }
  0xac   : > { %v2367_v43 = vpop.permute.xlu0 %335  ;;  %v2372_v48 = vpop.permute.xlu1 %337 }
  0xad   : > { %3785 = vst [vmem:[#allocation34_spill] sm:$0xff] %v2367_v43  ;;  %3786 = vst [vmem:[#allocation35_spill] sm:$0xff] %v2372_v48 }
  0xae   : > { %1099 = vrot.lane.b32.xlu0 %v1005_v0, %s2017_s6  ;;  %1101 = vrot.lane.b32.xlu1 %v2244_v54, %s2017_s6 }
  0xb0   : > { %v2381_v58 = vpop.permute.xlu0 %339  ;;  %v2386_v61 = vpop.permute.xlu1 %341 }
  0xb1   : > { %3787 = vst [vmem:[#allocation36_spill] sm:$0xff] %v2381_v58  ;;  %v349_v59 = vsel %vm343_vm4, %v2372_v48, %v2381_v58  ;;  %3788 = vst [vmem:[#allocation37_spill] sm:$0xff] %v2386_v61 }
  0xb2   : > { %1120 = vrot.lane.b32.xlu0 %v2281_v62, %s2018_s7  ;;  %v2392_v0 = vsel %vm726_vm5, %v723_v63, %v349_v59  ;;  %1122 = vrot.lane.b32.xlu1 %v2269_v60, %s2018_s7  ;;  %v927_v62 = vcombine.high %v2238_v52, %v2238_v52  ;;  %v2414_v59 = vrot.slane %v2189_v40, %v2068_v5 }
  0xb3   : > { %3789 = vst [vmem:[#allocation38_spill] sm:$0xff] %v2392_v0  ;;  %v1006_v0 = vcombine.high %v2244_v54, %v2244_v54 }
  0xb4   : > { %v2396_v38 = vpop.permute.xlu0 %361  ;;  %v2398_v44 = vpop.permute.xlu1 %363  ;;  %v2619_v6 = vcombine.low %v2414_v59, %v2414_v59 }
  0xb5   : > { %3790 = vst [vmem:[#allocation39_spill] sm:$0xff] %v2396_v38  ;;  %3791 = vst [vmem:[#allocation40_spill] sm:$0xff] %v2398_v44 }
  0xb6   : > { %1134 = vrot.lane.b32.xlu0 %v2232_v50, %s2019_s8  ;;  %1136 = vrot.lane.b32.xlu1 %v2218_v47, %s2019_s8  ;;  %v941_v50 = vrot.slane %v927_v62, %v2068_v5  ;;  %v581_v5 = vcombine.low %v2215_v46, %v2215_v46 }
  0xb8   : > { %v2406_v53 = vpop.permute.xlu0 %365  ;;  %v2408_v56 = vpop.permute.xlu1 %367  ;;  %v943_v52 = vcombine.low %v941_v50, %v941_v50 }
  0xb9   : > { %3792 = vst [vmem:[#allocation41_spill] sm:$0xff] %v2406_v53  ;;  %3793 = vst [vmem:[#allocation42_spill] sm:$0xff] %v2408_v56 }
  0xba   : > { %1138 = vrot.lane.b32.xlu0 %v2250_v55, %s2019_s8  ;;  %1140 = vrot.lane.b32.xlu1 %v2235_v51, %s2019_s8 }
  0xbc   : > { %v2419_v47 = vpop.permute.xlu0 %369  ;;  %v2421_v63 = vpop.permute.xlu1 %371 }
  0xbd   : > { %3794 = vst [vmem:[#allocation43_spill] sm:$0xff] %v2419_v47  ;;  %3795 = vst [vmem:[#allocation44_spill] sm:$0xff] %v2421_v63 }
  0xbe   : > { %1142 = vrot.lane.b32.xlu0 %v2259_v57, %s2019_s8  ;;  %900 = vrot.lane.b32.xlu1 %v2414_v59, %s2006_s21 }
  0xc0   : > { %v2427_v55 = vpop.permute.xlu0 %373  ;;  %v2429_v22 = vpop.permute.xlu1 %375 }
  0xc1   : > { %3796 = vst [vmem:[#allocation45_spill] sm:$0xff] %v2427_v55  ;;  %3797 = vst [vmem:[#allocation46_spill] sm:$0xff] %v2429_v22 }
  0xc2   : > { %954 = vrot.lane.b32.xlu0 %v2244_v54, %s2011_s26  ;;  %956 = vrot.lane.b32.xlu1 %v943_v52, %s2011_s26  ;;  %s1945_s26 = smul.u32 28, %s3930_s16 }
  0xc4   : > { %v2434_v51 = vpop.permute.xlu0 %386  ;;  %v2436_v62 = vpop.permute.xlu1 %388 }
  0xc5   : > { %3798 = vst [vmem:[#allocation47_spill] sm:$0xff] %v2434_v51  ;;  %3799 = vst [vmem:[#allocation48_spill] sm:$0xff] %v2436_v62 }
  0xc6   : > { %993 = vrot.lane.b32.xlu0 %v2269_v60, %s2012_s27  ;;  %995 = vrot.lane.b32.xlu1 %v2259_v57, %s2012_s27 }
  0xc8   : > { %v2444_v55 = vpop.permute.xlu0 %390  ;;  %v2446_v22 = vpop.permute.xlu1 %392 }
  0xc9   : > { %3800 = vst [vmem:[#allocation49_spill] sm:$0xff] %v2444_v55  ;;  %3801 = vst [vmem:[#allocation50_spill] sm:$0xff] %v2446_v22 }
  0xca   : > { %1017 = vrot.lane.b32.xlu0 %v1006_v0, %s2013_s28  ;;  %1019 = vrot.lane.b32.xlu1 %v941_v50, %s2013_s28 }
  0xcc   : > { %v2452_v1 = vpop.permute.xlu0 %888  ;;  %v2454_v58 = vpop.permute.xlu1 %890 }
  0xce   : > { %1040 = vrot.lane.b32.xlu0 %v1029_v23, %s2014_s29  ;;  %1042 = vrot.lane.b32.xlu1 %v2244_v54, %s2014_s29 }
  0xd0   : > { %v2459_v61 = vpop.permute.xlu0 %892  ;;  %v2461_v63 = vpop.permute.xlu1 %894 }
  0xd2   : > { %1061 = vrot.lane.b32.xlu0 %v2244_v54, %s2015_s30  ;;  %1063 = vrot.lane.b32.xlu1 %v943_v52, %s2015_s30 }
  0xd4   : > { %v2466_v47 = vpop.permute.xlu0 %896  ;;  %v2468_v38 = vpop.permute.xlu1 %898 }
  0xd6   : > { %1082 = vrot.lane.b32.xlu0 %v2269_v60, %s2016_s5  ;;  %1084 = vrot.lane.b32.xlu1 %v2259_v57, %s2016_s5 }
  0xd8   : > { %v2474_v56 = vpop.permute.xlu0 %944  ;;  %v2476_v51 = vpop.permute.xlu1 %946 }
  0xda   : > { %1103 = vrot.lane.b32.xlu0 %v1006_v0, %s2017_s6  ;;  %1105 = vrot.lane.b32.xlu1 %v941_v50, %s2017_s6  ;;  %v385_v0 = vcombine.high %v2134_v28, %v2134_v28 }
  0xdc   : > { %v2480_v22 = vpop.permute.xlu0 %948  ;;  %v2482_v44 = vpop.permute.xlu1 %950 }
  0xde   : > { %1124 = vrot.lane.b32.xlu0 %v1029_v23, %s2018_s7  ;;  %1126 = vrot.lane.b32.xlu1 %v2244_v54, %s2018_s7 }
  0xe0   : > { %v2487_v60 = vpop.permute.xlu0 %952  ;;  %v2489_v57 = vpop.permute.xlu1 %983 }
  0xe2   : > { %1144 = vrot.lane.b32.xlu0 %v2244_v54, %s2019_s8  ;;  %1146 = vrot.lane.b32.xlu1 %v943_v52, %s2019_s8 }
  0xe4   : > { %v2496_v50 = vpop.permute.xlu0 %985  ;;  %v2498_v53 = vpop.permute.xlu1 %987 }
  0xe6   : > { %394 = vrot.lane.b32.xlu0 %v2134_v28, %s2010_s25  ;;  %396 = vrot.lane.b32.xlu1 %v385_v0, %s2010_s25 }
  0xe8   : > { %v2503_v23 = vpop.permute.xlu0 %989  ;;  %v2505_v7 = vpop.permute.xlu1 %991 }
  0xea   : > { %413 = vrot.lane.b32.xlu0 %v2081_v9, %s2020_s9  ;;  %415 = vrot.lane.b32.xlu1 %v2114_v20, %s2020_s9 }
  0xec   : > { %v2511_v54 = vpop.permute.xlu0 %1007  ;;  %v2513_v52 = vpop.permute.xlu1 %1009 }
  0xee   : > { %417 = vrot.lane.b32.xlu0 %v2108_v19, %s2020_s9  ;;  %411 = vrot.lane.b32.xlu1 %v2101_v15, %s2020_s9 }
  0xf0   : > { %v2519_v0 = vpop.permute.xlu0 %1011  ;;  %v2521_v48 = vpop.permute.xlu1 %1030 }
  0xf2   : > { %419 = vrot.lane.b32.xlu0 %v2149_v31, %s2020_s9  ;;  %421 = vrot.lane.b32.xlu1 %v2139_v29, %s2020_s9 }
  0xf4   : > { %v2527_v20 = vpop.permute.xlu0 %1032  ;;  %v2529_v62 = vpop.permute.xlu1 %1034 }
  0xf6   : > { %437 = vrot.lane.b32.xlu0 %v2088_v12, %s2021_s10  ;;  %439 = vrot.lane.b32.xlu1 %v2101_v15, %s2021_s10 }
  0xf8   : > { %v2535_v55 = vpop.permute.xlu0 %1013  ;;  %v2537_v21 = vpop.permute.xlu1 %1015 }
  0xfa   : > { %441 = vrot.lane.b32.xlu0 %v2081_v9, %s2021_s10  ;;  %435 = vrot.lane.b32.xlu1 %v2130_v26, %s2021_s10 }
  0xfc   : > { %v2543_v11 = vpop.permute.xlu0 %1036  ;;  %v2545_v43 = vpop.permute.xlu1 %1038 }
  0xfe   : > { %443 = vrot.lane.b32.xlu0 %v2143_v30, %s2021_s10  ;;  %445 = vrot.lane.b32.xlu1 %v2134_v28, %s2021_s10 }
 0x100   : > { %v2551_v12 = vpop.permute.xlu0 %1051  ;;  %v2553_v15 = vpop.permute.xlu1 %1053 }
 0x102   : > { %461 = vrot.lane.b32.xlu0 %v2092_v13, %s2022_s11  ;;  %463 = vrot.lane.b32.xlu1 %v2108_v19, %s2022_s11  ;;  %v2595_v19 = vcombine.low %v2197_v41, %v2197_v41 }
 0x104   : > { %v2559_v26 = vpop.permute.xlu0 %1055  ;;  %v2561_v24 = vpop.permute.xlu1 %1057 }
 0x106   : > { %465 = vrot.lane.b32.xlu0 %v2158_v32, %s2022_s11  ;;  %518 = vrot.lane.b32.xlu1 %v2186_v39, %s2018_s7 }
 0x108   : > { %v2567_v28 = vpop.permute.xlu0 %1059  ;;  %v2569_v30 = vpop.permute.xlu1 %1072 }
 0x10a   : > { %520 = vrot.lane.b32.xlu0 %v2201_v42, %s2018_s7  ;;  %522 = vrot.lane.b32.xlu1 %v2197_v41, %s2018_s7 }
 0x10c   : > { %v2575_v18 = vpop.permute.xlu0 %1074  ;;  %v2577_v8 = vpop.permute.xlu1 %1076 }
 0x10e   : > { %459 = vrot.lane.b32.xlu0 %v2081_v9, %s2022_s11  ;;  %467 = vrot.lane.b32.xlu1 %v2139_v29, %s2022_s11 }
 0x110   : > { %v2583_v32 = vpop.permute.xlu0 %1078  ;;  %v2587_v3 = vpop.permute.xlu1 %1080 }
 0x112   : > { %469 = vrot.lane.b32.xlu0 %v2164_v34, %s2022_s11  ;;  %524 = vrot.lane.b32.xlu1 %v2212_v45, %s2018_s7 }
 0x114   : > { %v2597_v9 = vpop.permute.xlu0 %1093  ;;  %v2602_v13 = vpop.permute.xlu1 %1095 }
 0x116   : > { %526 = vrot.lane.b32.xlu0 %v2215_v46, %s2018_s7  ;;  %559 = vrot.lane.b32.xlu1 %v2595_v19, %s2019_s8 }
 0x118   : > { %v2610_v25 = vpop.permute.xlu0 %1097  ;;  %v2612_v27 = vpop.permute.xlu1 %1114 }
 0x11a   : > { %561 = vrot.lane.b32.xlu0 %v2197_v41, %s2019_s8  ;;  %563 = vrot.lane.b32.xlu1 %v548_v37, %s2019_s8 }
 0x11c   : > { %v2621_v17 = vpop.permute.xlu0 %1116  ;;  %v2623_v14 = vpop.permute.xlu1 %1118 }
 0x11e   : > { %565 = vrot.lane.b32.xlu0 %v2600_v33, %s2019_s8  ;;  %567 = vrot.lane.b32.xlu1 %v2619_v6, %s2019_s8 }
 0x120   : > { %v2631_v4 = vpop.permute.xlu0 %1099  ;;  %v2633_v10 = vpop.permute.xlu1 %1101 }
 0x121   : > { %3802 = vst [vmem:[#allocation51_spill] sm:$0xff] %v2631_v4  ;;  %3803 = vst [vmem:[#allocation52_spill] sm:$0xff] %v2633_v10  ;;  %v2675_v4 = vcombine.high %v2600_v33, %v2600_v33 }
 0x122   : > { %582 = vrot.lane.b32.xlu0 %v580_v16, %s2023_s12  ;;  %584 = vrot.lane.b32.xlu1 %v2186_v39, %s2023_s12 }
 0x124   : > { %v2638_v2 = vpop.permute.xlu0 %1120  ;;  %v2640_v49 = vpop.permute.xlu1 %1122 }
 0x126   : > { %586 = vrot.lane.b32.xlu0 %v2595_v19, %s2023_s12  ;;  %588 = vrot.lane.b32.xlu1 %v2197_v41, %s2023_s12 }
 0x128   : > { %v2648_v36 = vpop.permute.xlu0 %1134  ;;  %v2650_v40 = vpop.permute.xlu1 %1136 }
 0x12a   : > { %590 = vrot.lane.b32.xlu0 %v581_v5, %s2023_s12  ;;  %605 = vrot.lane.b32.xlu1 %v2197_v41, %s2024_s13 }
 0x12c   : > { %v2655_v31 = vpop.permute.xlu0 %1138  ;;  %v2657_v34 = vpop.permute.xlu1 %1140 }
 0x12d   : > { %3804 = vst [vmem:[#allocation53_spill] sm:$0xff] %v2657_v34 }
 0x12e   : > { %607 = vrot.lane.b32.xlu0 %v2212_v45, %s2024_s13  ;;  %609 = vrot.lane.b32.xlu1 %v2600_v33, %s2024_s13 }
 0x130   : > { %v2663_v35 = vpop.permute.xlu0 %1142  ;;  %v2665_v29 = vpop.permute.xlu1 %900 }
 0x131   : > { %3805 = vst [vmem:[#allocation54_spill] sm:$0xff] %v2663_v35  ;;  %3806 = vst [vmem:[#allocation55_spill] sm:$0xff] %v2665_v29 }
 0x132   : > { %626 = vrot.lane.b32.xlu0 %v2186_v39, %s2025_s14  ;;  %628 = vrot.lane.b32.xlu1 %v2201_v42, %s2025_s14 }
 0x134   : > { %v2671_v10 = vpop.permute.xlu0 %954  ;;  %v2677_v34 = vpop.permute.xlu1 %956 }
 0x135   : > { %3807 = vst [vmem:[#allocation56_spill] sm:$0xff] %v2671_v10  ;;  %3808 = vst [vmem:[#allocation57_spill] sm:$0xff] %v2677_v34 }
 0x136   : > { %630 = vrot.lane.b32.xlu0 %v2197_v41, %s2025_s14  ;;  %611 = vrot.lane.b32.xlu1 %v2675_v4, %s2024_s13 }
 0x138   : > { %v2683_v29 = vpop.permute.xlu0 %993  ;;  %v2685_v35 = vpop.permute.xlu1 %995 }
 0x139   : > { %3809 = vst [vmem:[#allocation58_spill] sm:$0xff] %v2683_v29  ;;  %3810 = vst [vmem:[#allocation59_spill] sm:$0xff] %v2685_v35 }
 0x13a   : > { %613 = vrot.lane.b32.xlu0 %v2414_v59, %s2024_s13  ;;  %632 = vrot.lane.b32.xlu1 %v2212_v45, %s2025_s14 }
 0x13c   : > { %v2691_v42 = vpop.permute.xlu0 %1017  ;;  %v2693_v10 = vpop.permute.xlu1 %1019 }
 0x13d   : > { %3811 = vst [vmem:[#allocation60_spill] sm:$0xff] %v2691_v42  ;;  %3812 = vst [vmem:[#allocation61_spill] sm:$0xff] %v2693_v10 }
 0x13e   : > { %634 = vrot.lane.b32.xlu0 %v2215_v46, %s2025_s14  ;;  %647 = vrot.lane.b32.xlu1 %v2595_v19, %s2026_s17 }
 0x140   : > { %v2699_v29 = vpop.permute.xlu0 %1040  ;;  %v2701_v35 = vpop.permute.xlu1 %1042 }
 0x141   : > { %3813 = vst [vmem:[#allocation62_spill] sm:$0xff] %v2699_v29 }
 0x142   : > { %649 = vrot.lane.b32.xlu0 %v2197_v41, %s2026_s17  ;;  %651 = vrot.lane.b32.xlu1 %v548_v37, %s2026_s17 }
 0x144   : > { %v2706_v34 = vpop.permute.xlu0 %1061  ;;  %v2708_v42 = vpop.permute.xlu1 %1063 }
 0x145   : > { %3814 = vst [vmem:[#allocation63_spill] sm:$0xff] %v2706_v34  ;;  %3815 = vst [vmem:[#allocation64_spill] sm:$0xff] %v2708_v42  ;;  %v902_v42 = vsel %vm276_vm0, %v2452_v1, %v2454_v58  ;;  %v904_v1 = vsel %vm276_vm0, %v2459_v61, %v2461_v63 }
 0x146   : > { %653 = vrot.lane.b32.xlu0 %v2600_v33, %s2026_s17  ;;  %655 = vrot.lane.b32.xlu1 %v2619_v6, %s2026_s17 }
 0x148   : > { %v2714_v10 = vpop.permute.xlu0 %1082  ;;  %v2716_v29 = vpop.permute.xlu1 %1084 }
 0x149   : > { %3816 = vst [vmem:[#allocation65_spill] sm:$0xff] %v2716_v29 }
 0x14a   : > { %668 = vrot.lane.b32.xlu0 %v580_v16, %s2027_s18  ;;  %670 = vrot.lane.b32.xlu1 %v2186_v39, %s2027_s18  ;;  %v903_v39 = vsel %vm276_vm0, %v2454_v58, %v2459_v61  ;;  %v1156_v16 = vsel %vm689_vm2, %v2197_v41, %v902_v42  ;;  %v960_v58 = vsel %vm958_vm6, %v2476_v51, %v2480_v22 }
 0x14b   : > { %v1159_v42 = vsel %vm689_vm2, %v2212_v45, %v903_v39  ;;  %v906_v45 = vsel %vm276_vm0, %v2466_v47, %v2468_v38 }
 0x14c   : > { %v2721_v37 = vpop.permute.xlu0 %1103  ;;  %v2726_v34 = vpop.permute.xlu1 %1105 }
 0x14d   : > { %3817 = vst [vmem:[#allocation66_spill] sm:$0xff] %v2721_v37  ;;  %3818 = vst [vmem:[#allocation67_spill] sm:$0xff] %v2726_v34  ;;  %v959_v34 = vsel %vm958_vm6, %v2474_v56, %v2476_v51  ;;  %v1162_v51 = vsel %vm689_vm2, %v2600_v33, %v904_v1 }
 0x14e   : > { %672 = vrot.lane.b32.xlu0 %v2595_v19, %s2027_s18  ;;  %674 = vrot.lane.b32.xlu1 %v2197_v41, %s2027_s18  ;;  %v1176_v19 = vsel %vm711_vm3, %v1156_v16, %v2474_v56  ;;  %v998_v41 = vsel %vm997_vm7, %v2489_v57, %v2496_v50  ;;  %v999_v56 = vsel %vm997_vm7, %v2496_v50, %v2498_v53 }
 0x14f   : > { %v1190_v61 = vsel %vm726_vm5, %v1176_v19, %v2489_v57  ;;  %v1178_v57 = vsel %vm711_vm3, %v1159_v42, %v959_v34  ;;  %v961_v50 = vsel %vm958_vm6, %v2480_v22, %v2482_v44  ;;  %v1180_v1 = vsel %vm711_vm3, %v1162_v51, %v960_v58 }
 0x150   : > { %v2737_v37 = vpop.permute.xlu0 %1124  ;;  %v2747_v29 = vpop.permute.xlu1 %1126  ;;  %v1192_v33 = vsel %vm726_vm5, %v1178_v57, %v998_v41  ;;  %v1000_v34 = vsel %vm997_vm7, %v2498_v53, %v2503_v23  ;;  %v1001_v19 = vsel %vm997_vm7, %v2503_v23, %v2505_v7  ;;  %v1066_v42 = vsel %vm1065_vm9, %v2551_v12, %v2553_v15 }
 0x151   : > { %v1022_v51 = vsel %vm1021_vm10, %v2511_v54, %v2513_v52  ;;  %v1087_v57 = vsel %vm1086_vm11, %v2569_v30, %v2575_v18 }
 0x152   : > { %676 = vrot.lane.b32.xlu0 %v581_v5, %s2027_s18  ;;  %1308 = vrot.lane.b32.xlu1 %v1190_v61, %s2028_s19  ;;  %v905_v5 = vsel %vm276_vm0, %v2461_v63, %v2466_v47  ;;  %v962_v63 = vsel %vm958_vm6, %v2482_v44, %v2487_v60  ;;  %v1194_v47 = vsel %vm726_vm5, %v1180_v1, %v999_v56 }
 0x153   : > { %v1165_v22 = vsel %vm689_vm2, %v2675_v4, %v905_v5  ;;  %v1168_v44 = vsel %vm689_vm2, %v2414_v59, %v906_v45  ;;  %v1045_v4 = vsel %vm3751_vm8, %v2521_v48, %v2527_v20  ;;  %v1205_v5 = vsel %vm689_vm2, %v2511_v54, %v2521_v48 }
 0x154   : > { %v2769_v16 = vpop.permute.xlu0 %1144  ;;  %v2778_v39 = vpop.permute.xlu1 %1146  ;;  %v1182_v58 = vsel %vm711_vm3, %v1165_v22, %v961_v50  ;;  %v1184_v61 = vsel %vm711_vm3, %v1168_v44, %v962_v63  ;;  %v1208_v45 = vsel %vm689_vm2, %v1022_v51, %v1045_v4  ;;  %v1046_v50 = vsel %vm3751_vm8, %v2527_v20, %v2529_v62 }
 0x155   : > { %v1196_v23 = vsel %vm726_vm5, %v1182_v58, %v1000_v34  ;;  %v1198_v56 = vsel %vm726_vm5, %v1184_v61, %v1001_v19  ;;  %v1047_v48 = vsel %vm3751_vm8, %v2529_v62, %v2543_v11  ;;  %v1067_v54 = vsel %vm1065_vm9, %v2553_v15, %v2559_v26 }
 0x156   : > { %1310 = vrot.lane.b32.xlu0 %v1192_v33, %s2028_s19  ;;  %1312 = vrot.lane.b32.xlu1 %v1194_v47, %s2028_s19  ;;  %v1225_v33 = vsel %vm711_vm3, %v1205_v5, %v2551_v12  ;;  %v1227_v20 = vsel %vm711_vm3, %v1208_v45, %v1066_v42  ;;  %v1023_v12 = vsel %vm1021_vm10, %v2513_v52, %v2519_v0 }
 0x157   : > { %v1239_v34 = vsel %vm726_vm5, %v1225_v33, %v2569_v30  ;;  %v1068_v47 = vsel %vm1065_vm9, %v2559_v26, %v2561_v24  ;;  %v1088_v62 = vsel %vm1086_vm11, %v2575_v18, %v2577_v8  ;;  %v1241_v15 = vsel %vm726_vm5, %v1227_v20, %v1087_v57 }
 0x158   : > { %v2798_v53 = vpop.permute.xlu0 %394  ;;  %v2804_v41 = vpop.permute.xlu1 %396  ;;  %v1211_v30 = vsel %vm689_vm2, %v1023_v12, %v1046_v50  ;;  %v1024_v22 = vsel %vm1021_vm10, %v2519_v0, %v2535_v55  ;;  %v1089_v52 = vsel %vm1086_vm11, %v2577_v8, %v2583_v32  ;;  %v1048_v18 = vsel %vm3751_vm8, %v2543_v11, %v2545_v43  ;;  %v3819_v12 = vld [vmem:[#allocation53_spill] sm:$0xff] }
 0x159   : > { %v1214_v26 = vsel %vm689_vm2, %v1024_v22, %v1047_v48  ;;  %v1229_v44 = vsel %vm711_vm3, %v1211_v30, %v1067_v54  ;;  %v1069_v0 = vsel %vm1065_vm9, %v2561_v24, %v2567_v28  ;;  %v1090_v11 = vsel %vm1086_vm11, %v2583_v32, %v2587_v3  ;;  %v3822_v22 = vld [vmem:[#allocation52_spill] sm:$0xff] }
 0x15a   : > { %1314 = vrot.lane.b32.xlu0 %v1196_v23, %s2028_s19  ;;  %1316 = vrot.lane.b32.xlu1 %v1198_v56, %s2028_s19  ;;  %v1243_v8 = vsel %vm726_vm5, %v1229_v44, %v1088_v62  ;;  %v1231_v4 = vsel %vm711_vm3, %v1214_v26, %v1068_v47  ;;  %v1025_v23 = vsel %vm1021_vm10, %v2535_v55, %v2537_v21  ;;  %v3820_v62 = vld [vmem:[#allocation51_spill] sm:$0xff] }
 0x15b   : > { %v1245_v61 = vsel %vm726_vm5, %v1231_v4, %v1089_v52  ;;  %v1217_v24 = vsel %vm689_vm2, %v1025_v23, %v1048_v18  ;;  %v1254_v55 = vsel %vm689_vm2, %v2597_v9, %v2612_v27  ;;  %v1128_v32 = vsel %vm532_vm12, %v2612_v27, %v2621_v17  ;;  %v3823_v4 = vld [vmem:[#allocation8_spill] sm:$0xff] }
 0x15c   : > { %v2829_v1 = vpop.permute.xlu0 %413  ;;  %v2837_v63 = vpop.permute.xlu1 %415  ;;  %v1233_v56 = vsel %vm711_vm3, %v1217_v24, %v1069_v0  ;;  %v1129_v57 = vsel %vm532_vm12, %v2621_v17, %v2623_v14  ;;  %v1148_v45 = vsel %vm573_vm13, %v2648_v36, %v2650_v40  ;;  %v1274_v50 = vsel %vm711_vm3, %v1254_v55, %v2648_v36  ;;  %v3824_v23 = vld [vmem:[#allocation12_spill] sm:$0xff] }
 0x15d   : > { %v1247_v5 = vsel %vm726_vm5, %v1233_v56, %v1090_v11  ;;  %v1108_v27 = vsel %vm1107_vm14, %v2597_v9, %v2602_v13  ;;  %v1149_v33 = vsel %vm573_vm13, %v2650_v40, %v2655_v31  ;;  %v1109_v17 = vsel %vm1107_vm14, %v2602_v13, %v2610_v25 }
 0x15e   : > { %1322 = vrot.lane.b32.xlu0 %v1239_v34, %s2028_s19  ;;  %1324 = vrot.lane.b32.xlu1 %v1241_v15, %s2028_s19  ;;  %v1257_v54 = vsel %vm689_vm2, %v1108_v27, %v1128_v32  ;;  %v1130_v36 = vsel %vm532_vm12, %v2623_v14, %v2638_v2  ;;  %v1260_v9 = vsel %vm689_vm2, %v1109_v17, %v1129_v57  ;;  %v3821_v15 = vld [vmem:[#allocation54_spill] sm:$0xff] }
 0x15f   : > { %v1276_v40 = vsel %vm711_vm3, %v1257_v54, %v1148_v45  ;;  %v1131_v20 = vsel %vm532_vm12, %v2638_v2, %v2640_v49  ;;  %v1150_v13 = vsel %vm573_vm13, %v2655_v31, %v3819_v12  ;;  %v1278_v47 = vsel %vm711_vm3, %v1260_v9, %v1149_v33  ;;  %v3827_v45 = vld [vmem:[#allocation14_spill] sm:$0xff]  ;;  %v3828_v33 = vld [vmem:[#allocation13_spill] sm:$0xff] }
 0x160   : > { %v2865_v19 = vpop.permute.xlu0 %417  ;;  %v2871_v58 = vpop.permute.xlu1 %411  ;;  %v1110_v14 = vsel %vm1107_vm14, %v2610_v25, %v3820_v62  ;;  %v1151_v30 = vsel %vm573_vm13, %v3819_v12, %v3821_v15  ;;  %v1111_v2 = vsel %vm1107_vm14, %v3820_v62, %v3822_v22  ;;  %v410_v11 = vcombine.low %v3824_v23, %v3824_v23  ;;  %v3829_v54 = vld [vmem:[#allocation2_spill] sm:$0xff] }
 0x161   : > { %v1263_v31 = vsel %vm689_vm2, %v1110_v14, %v1130_v36  ;;  %v1266_v18 = vsel %vm689_vm2, %v1111_v2, %v1131_v20  ;;  %v604_v14 = vcombine.high %v2414_v59, %v2414_v59 }
 0x162   : > { %1326 = vrot.lane.b32.xlu0 %v1243_v8, %s2028_s19  ;;  %1328 = vrot.lane.b32.xlu1 %v1245_v61, %s2028_s19  ;;  %v1280_v25 = vsel %vm711_vm3, %v1263_v31, %v1150_v13  ;;  %v1282_v44 = vsel %vm711_vm3, %v1266_v18, %v1151_v30  ;;  %v3825_v61 = vld [vmem:[#allocation11_spill] sm:$0xff] }
 0x164   : > { %v2885_v42 = vpop.permute.xlu0 %419  ;;  %v2894_v51 = vpop.permute.xlu1 %421 }
 0x166   : > { %1330 = vrot.lane.b32.xlu0 %v1247_v5, %s2028_s19  ;;  %1336 = vrot.lane.b32.xlu1 %v1274_v50, %s2028_s19  ;;  %v3826_v5 = vld [vmem:[#allocation9_spill] sm:$0xff]  ;;  %v549_v50 = vcombine.high %v3827_v45, %v3827_v45 }
 0x168   : > { %v2916_v48 = vpop.permute.xlu0 %437  ;;  %v2922_v34 = vpop.permute.xlu1 %439  ;;  %v556_v36 = vrot.slane %v549_v50, %v3829_v54  ;;  %v3833_v50 = vld [vmem:[#allocation57_spill] sm:$0xff]  ;;  %v3834_v54 = vld [vmem:[#allocation58_spill] sm:$0xff] }
 0x16a   : > { %1338 = vrot.lane.b32.xlu0 %v1276_v40, %s2028_s19  ;;  %1340 = vrot.lane.b32.xlu1 %v1278_v47, %s2028_s19  ;;  %v3830_v40 = vld [vmem:[#allocation15_spill] sm:$0xff]  ;;  %v558_v20 = vcombine.low %v556_v36, %v556_v36 }
 0x16c   : > { %v2944_v52 = vpop.permute.xlu0 %441  ;;  %v2947_v26 = vpop.permute.xlu1 %435 }
 0x16e   : > { %1342 = vrot.lane.b32.xlu0 %v1280_v25, %s2028_s19  ;;  %1344 = vrot.lane.b32.xlu1 %v1282_v44, %s2028_s19 }
 0x170   : > { %v2954_v0 = vpop.permute.xlu0 %443  ;;  %v2956_v8 = vpop.permute.xlu1 %445 }
 0x172   : > { %398 = vrot.lane.b32.xlu0 %v3823_v4, %s2010_s25  ;;  %400 = vrot.lane.b32.xlu1 %v3825_v61, %s2010_s25  ;;  %v3832_v61 = vld [vmem:[#allocation56_spill] sm:$0xff] }
 0x174   : > { %v2964_v24 = vpop.permute.xlu0 %461  ;;  %v2966_v56 = vpop.permute.xlu1 %463 }
 0x176   : > { %423 = vrot.lane.b32.xlu0 %v410_v11, %s2020_s9  ;;  %425 = vrot.lane.b32.xlu1 %v3824_v23, %s2020_s9 }
 0x178   : > { %v2971_v55 = vpop.permute.xlu0 %465  ;;  %v2973_v32 = vpop.permute.xlu1 %518 }
 0x17a   : > { %447 = vrot.lane.b32.xlu0 %v3826_v5, %s2021_s10  ;;  %449 = vrot.lane.b32.xlu1 %v3823_v4, %s2021_s10  ;;  %v3831_v4 = vld [vmem:[#allocation55_spill] sm:$0xff]  ;;  %v963_v5 = vsel %vm958_vm6, %v2487_v60, %v3832_v61 }
 0x17b   : > { %v1174_v60 = vsel %vm689_vm2, %v556_v36, %v3831_v4 }
 0x17c   : > { %v2979_v57 = vpop.permute.xlu0 %520  ;;  %v2983_v27 = vpop.permute.xlu1 %522 }
 0x17e   : > { %471 = vrot.lane.b32.xlu0 %v3824_v23, %s2022_s11  ;;  %473 = vrot.lane.b32.xlu1 %v3828_v33, %s2022_s11  ;;  %v907_v23 = vsel %vm276_vm0, %v2468_v38, %v3831_v4  ;;  %v964_v33 = vsel %vm958_vm6, %v3832_v61, %v3833_v50  ;;  %v3836_v61 = vld [vmem:[#allocation62_spill] sm:$0xff]  ;;  %v3839_v4 = vld [vmem:[#allocation60_spill] sm:$0xff]  ;;  %vm427_vm6 = vcmask 883712  }
 0x17f   : > { %v1171_v38 = vsel %vm689_vm2, %v604_v14, %v907_v23  ;;  %v1049_v50 = vsel %vm3751_vm8, %v2545_v43, %v3836_v61  ;;  %v1050_v23 = vsel %vm3751_vm8, %v3836_v61, %v2701_v35  ;;  %v1026_v43 = vsel %vm1021_vm10, %v2537_v21, %v3839_v4 }
 0x180   : > { %v2989_v17 = vpop.permute.xlu0 %459  ;;  %v2992_v9 = vpop.permute.xlu1 %467  ;;  %v1091_v35 = vsel %vm1086_vm11, %v2587_v3, %v2714_v10  ;;  %vm682_vm8 = vcmask 64512  }
 0x182   : > { %528 = vrot.lane.b32.xlu0 %v3830_v40, %s2018_s7  ;;  %530 = vrot.lane.b32.xlu1 %v2414_v59, %s2018_s7 }
 0x184   : > { %v2998_v12 = vpop.permute.xlu0 %469  ;;  %v3000_v13 = vpop.permute.xlu1 %524 }
 0x186   : > { %569 = vrot.lane.b32.xlu0 %v2414_v59, %s2019_s8  ;;  %571 = vrot.lane.b32.xlu1 %v558_v20, %s2019_s8 }
 0x188   : > { %v3005_v47 = vpop.permute.xlu0 %526  ;;  %v3007_v62 = vpop.permute.xlu1 %559 }
 0x18a   : > { %592 = vrot.lane.b32.xlu0 %v2215_v46, %s2023_s12  ;;  %594 = vrot.lane.b32.xlu1 %v2619_v6, %s2023_s12 }
 0x18c   : > { %v3015_v30 = vpop.permute.xlu0 %561  ;;  %v3017_v2 = vpop.permute.xlu1 %563 }
 0x18e   : > { %615 = vrot.lane.b32.xlu0 %v604_v14, %s2024_s13  ;;  %617 = vrot.lane.b32.xlu1 %v556_v36, %s2024_s13  ;;  %v1188_v14 = vsel %vm711_vm3, %v1174_v60, %v964_v33  ;;  %v3841_v33 = vld [vmem:[#allocation61_spill] sm:$0xff] }
 0x18f   : > { %v3842_v60 = vld [vmem:[#allocation65_spill] sm:$0xff] }
 0x190   : > { %v3021_v31 = vpop.permute.xlu0 %565  ;;  %v3023_v18 = vpop.permute.xlu1 %567  ;;  %v1092_v21 = vsel %vm1086_vm11, %v2714_v10, %v3842_v60  ;;  %v1133_v10 = vsel %vm532_vm12, %v2737_v37, %v2747_v29  ;;  %v3845_v29 = vld [vmem:[#allocation22_spill] sm:$0xff]  ;;  %vm640_vm11 = vcmask 138240  }
 0x192   : > { %636 = vrot.lane.b32.xlu0 %v3830_v40, %s2025_s14  ;;  %638 = vrot.lane.b32.xlu1 %v2414_v59, %s2025_s14  ;;  %v3835_v40 = vld [vmem:[#allocation59_spill] sm:$0xff] }
 0x194   : > { %v3029_v25 = vpop.permute.xlu0 %582  ;;  %v3031_v44 = vpop.permute.xlu1 %584 }
 0x196   : > { %657 = vrot.lane.b32.xlu0 %v2414_v59, %s2026_s17  ;;  %659 = vrot.lane.b32.xlu1 %v558_v20, %s2026_s17  ;;  %v1002_v59 = vsel %vm997_vm7, %v2505_v7, %v3834_v54  ;;  %v1003_v20 = vsel %vm997_vm7, %v3834_v54, %v3835_v40  ;;  %v3838_v54 = vld [vmem:[#allocation63_spill] sm:$0xff]  ;;  %vm451_vm7 = vcmask 875520  }
 0x198   : > { %v3039_v11 = vpop.permute.xlu0 %586  ;;  %v3044_v45 = vpop.permute.xlu1 %588 }
 0x19a   : > { %678 = vrot.lane.b32.xlu0 %v2215_v46, %s2027_s18  ;;  %680 = vrot.lane.b32.xlu1 %v2619_v6, %s2027_s18  ;;  %v1186_v46 = vsel %vm711_vm3, %v1171_v38, %v963_v5  ;;  %v1070_v6 = vsel %vm1065_vm9, %v2567_v28, %v3838_v54  ;;  %v1202_v28 = vsel %vm726_vm5, %v1188_v14, %v1003_v20 }
 0x19b   : > { %v1200_v36 = vsel %vm726_vm5, %v1186_v46, %v1002_v59  ;;  %v1027_v59 = vsel %vm1021_vm10, %v3839_v4, %v3841_v33  ;;  %v1220_v38 = vsel %vm689_vm2, %v1026_v43, %v1049_v50  ;;  %v1132_v46 = vsel %vm532_vm12, %v2640_v49, %v2737_v37  ;;  %v3844_v4 = vld [vmem:[#allocation17_spill] sm:$0xff]  ;;  %v3846_v43 = vld [vmem:[#allocation67_spill] sm:$0xff] }
 0x19c   : > { %v3065_v7 = vpop.permute.xlu0 %590  ;;  %v3075_v40 = vpop.permute.xlu1 %605  ;;  %v1223_v61 = vsel %vm689_vm2, %v1027_v59, %v1050_v23  ;;  %v1235_v3 = vsel %vm711_vm3, %v1220_v38, %v1070_v6  ;;  %v1152_v23 = vsel %vm573_vm13, %v3821_v15, %v2769_v16  ;;  %v3843_v6 = vld [vmem:[#allocation66_spill] sm:$0xff]  ;;  %v278_v37 = vsel %vm276_vm0, %v3845_v29, %v3844_v4  ;;  %v3848_v33 = vld [vmem:[#allocation25_spill] sm:$0xff] }
 0x19d   : > { %3837 = vst [vmem:[#allocation53_spill] sm:$0xff] %v3065_v7  ;;  %v3840_v7 = vld [vmem:[#allocation64_spill] sm:$0xff]  ;;  %v1249_v50 = vsel %vm726_vm5, %v1235_v3, %v1091_v35  ;;  %v1112_v49 = vsel %vm1107_vm14, %v3822_v22, %v3843_v6  ;;  %v1113_v15 = vsel %vm1107_vm14, %v3843_v6, %v3846_v43  ;;  %v3856_v43 = vld [vmem:[#allocation18_spill] sm:$0xff]  ;;  %vm619_vm10 = vcmask 146432  }
 0x19e   : > { %v1071_v5 = vsel %vm1065_vm9, %v3838_v54, %v3840_v7  ;;  %1318 = vrot.lane.b32.xlu0 %v1200_v36, %s2028_s19  ;;  %1320 = vrot.lane.b32.xlu1 %v1202_v28, %s2028_s19  ;;  %v1153_v36 = vsel %vm573_vm13, %v2769_v16, %v2778_v39  ;;  %v1269_v35 = vsel %vm689_vm2, %v1112_v49, %v1132_v46  ;;  %v3847_v28 = vld [vmem:[#allocation19_spill] sm:$0xff]  ;;  %v3849_v16 = vld [vmem:[#allocation24_spill] sm:$0xff]  ;;  %vm596_vm9 = vcmask 211968  }
 0x19f   : > { %v1237_v20 = vsel %vm711_vm3, %v1223_v61, %v1071_v5  ;;  %v279_v22 = vsel %vm276_vm0, %v3844_v4, %v3847_v28  ;;  %v303_v39 = vsel %vm301_vm1, %v3849_v16, %v3848_v33  ;;  %v1272_v59 = vsel %vm689_vm2, %v1113_v15, %v1133_v10  ;;  %v3851_v3 = vld [vmem:[#allocation32_spill] sm:$0xff]  ;;  %v3854_v10 = vld [vmem:[#allocation33_spill] sm:$0xff] }
 0x1a0   : > { %v3098_v7 = vpop.permute.xlu0 %607  ;;  %v3105_v14 = vpop.permute.xlu1 %609  ;;  %v1251_v54 = vsel %vm726_vm5, %v1237_v20, %v1092_v21  ;;  %v1284_v60 = vsel %vm711_vm3, %v1269_v35, %v1152_v23  ;;  %v3850_v21 = vld [vmem:[#allocation26_spill] sm:$0xff]  ;;  %v3852_v20 = vld [vmem:[#allocation31_spill] sm:$0xff]  ;;  %v346_v49 = vsel %vm343_vm4, %v3851_v3, %v3854_v10  ;;  %v277_v15 = vsel %vm276_vm0, %v3856_v43, %v3845_v29 }
 0x1a1   : > { %v304_v61 = vsel %vm301_vm1, %v3848_v33, %v3850_v21  ;;  %v345_v46 = vsel %vm343_vm4, %v3852_v20, %v3851_v3  ;;  %v3855_v23 = vld [vmem:[#allocation6_spill] sm:$0xff]  ;;  %v3857_v33 = vld [vmem:[#allocation20_spill] sm:$0xff]  ;;  %vm3752_vm14 = vcmask 130048  }
 0x1a2   : > { %1332 = vrot.lane.b32.xlu0 %v1249_v50, %s2028_s19  ;;  %1334 = vrot.lane.b32.xlu1 %v1251_v54, %s2028_s19  ;;  %v1286_v50 = vsel %vm711_vm3, %v1272_v59, %v1153_v36  ;;  %v3853_v54 = vld [vmem:[#allocation5_spill] sm:$0xff]  ;;  %v698_v4 = vsel %vm689_vm2, %v3855_v23, %v279_v22  ;;  %v3861_v23 = vld [vmem:[#allocation4_spill] sm:$0xff]  ;;  %v3862_v43 = vld [vmem:[#allocation34_spill] sm:$0xff] }
 0x1a3   : > { %v695_v6 = vsel %vm689_vm2, %v3853_v54, %v278_v37  ;;  %v280_v37 = vsel %vm276_vm0, %v3847_v28, %v3857_v33  ;;  %v3858_v59 = vld [vmem:[#allocation21_spill] sm:$0xff]  ;;  %v3859_v54 = vld [vmem:[#allocation27_spill] sm:$0xff] }
 0x1a4   : > { %v3129_v5 = vpop.permute.xlu0 %626  ;;  %v3139_v38 = vpop.permute.xlu1 %628  ;;  %v715_v36 = vsel %vm711_vm3, %v695_v6, %v303_v39  ;;  %v305_v29 = vsel %vm301_vm1, %v3850_v21, %v3859_v54  ;;  %v3860_v39 = vld [vmem:[#allocation30_spill] sm:$0xff] }
 0x1a5   : > { %v730_v22 = vsel %vm726_vm5, %v715_v36, %v345_v46  ;;  %v344_v6 = vsel %vm343_vm4, %v3860_v39, %v3852_v20  ;;  %v347_v46 = vsel %vm343_vm4, %v3854_v10, %v3862_v43  ;;  %v3863_v21 = vld [vmem:[#allocation10_spill] sm:$0xff]  ;;  %v3865_v36 = vld [vmem:[#allocation28_spill] sm:$0xff] }
 0x1a6   : > { %1346 = vrot.lane.b32.xlu0 %v1284_v60, %s2028_s19  ;;  %1348 = vrot.lane.b32.xlu1 %v1286_v50, %s2028_s19  ;;  %v302_v60 = vsel %vm301_vm1, %v3858_v59, %v3849_v16  ;;  %v717_v50 = vsel %vm711_vm3, %v698_v4, %v304_v61  ;;  %v692_v16 = vsel %vm689_vm2, %v3861_v23, %v277_v15  ;;  %v3864_v4 = vld [vmem:[#allocation23_spill] sm:$0xff]  ;;  %v3866_v59 = vld [vmem:[#allocation49_spill] sm:$0xff] }
 0x1a7   : > { %v732_v28 = vsel %vm726_vm5, %v717_v50, %v346_v49  ;;  %v701_v61 = vsel %vm689_vm2, %v3863_v21, %v280_v37  ;;  %v281_v20 = vsel %vm276_vm0, %v3857_v33, %v3864_v4  ;;  %v713_v15 = vsel %vm711_vm3, %v692_v16, %v302_v60  ;;  %v3868_v33 = vld [vmem:[#allocation35_spill] sm:$0xff]  ;;  %v3870_v4 = vld [vmem:[#allocation41_spill] sm:$0xff] }
 0x1a8   : > { %v3161_v35 = vpop.permute.xlu0 %630  ;;  %v3170_v3 = vpop.permute.xlu1 %611  ;;  %v306_v10 = vsel %vm301_vm1, %v3859_v54, %v3865_v36  ;;  %v728_v37 = vsel %vm726_vm5, %v713_v15, %v344_v6  ;;  %v348_v23 = vsel %vm343_vm4, %v3862_v43, %v3868_v33  ;;  %vm377_vm0 = vcmask 957440   ;;  %v3869_v16 = vld [vmem:[#allocation3_spill] sm:$0xff]  ;;  %v3871_v6 = vld [vmem:[#allocation40_spill] sm:$0xff]  ;;  %v3872_v15 = vld [vmem:[#allocation50_spill] sm:$0xff] }
 0x1a9   : > { %v429_v60 = vsel %vm427_vm6, %v2829_v1, %v2837_v63  ;;  %v704_v21 = vsel %vm689_vm2, %v3869_v16, %v281_v20  ;;  %v453_v43 = vsel %vm451_vm7, %v2916_v48, %v2922_v34  ;;  %v405_v36 = vsel %vm402_vm15, %v3866_v59, %v3872_v15 }
 0x1aa   : > { %1399 = vrot.lane.b32.xlu0 %v730_v22, %s2014_s29  ;;  %1401 = vrot.lane.b32.xlu1 %v732_v28, %s2014_s29  ;;  %v3867_v22 = vld [vmem:[#allocation48_spill] sm:$0xff]  ;;  %v719_v28 = vsel %vm711_vm3, %v701_v61, %v305_v29  ;;  %v379_v29 = vsel %vm377_vm0, %v3871_v6, %v3870_v4  ;;  %v721_v20 = vsel %vm711_vm3, %v704_v21, %v306_v10  ;;  %vm475_vm1 = vcmask 867328  }
 0x1ab   : > { %v404_v50 = vsel %vm402_vm15, %v3867_v22, %v3866_v59  ;;  %v734_v54 = vsel %vm726_vm5, %v719_v28, %v347_v46  ;;  %v430_v33 = vsel %vm427_vm6, %v2837_v63, %v2865_v19  ;;  %v428_v10 = vsel %vm427_vm6, %v2871_v58, %v2829_v1  ;;  %v3876_v1 = vld [vmem:[#allocation43_spill] sm:$0xff] }
 0x1ac   : > { %v3193_v49 = vpop.permute.xlu0 %613  ;;  %v3202_v39 = vpop.permute.xlu1 %632  ;;  %v746_v61 = vsel %vm689_vm2, %v379_v29, %v404_v50  ;;  %v736_v50 = vsel %vm726_vm5, %v721_v20, %v348_v23  ;;  %v3874_v29 = vld [vmem:[#allocation42_spill] sm:$0xff]  ;;  %v3875_v23 = vld [vmem:[#allocation39_spill] sm:$0xff] }
 0x1ad   : > { %v380_v59 = vsel %vm377_vm0, %v3870_v4, %v3874_v29  ;;  %v452_v4 = vsel %vm451_vm7, %v2947_v26, %v2916_v48  ;;  %v381_v58 = vsel %vm377_vm0, %v3874_v29, %v3876_v1  ;;  %v407_v48 = vsel %vm402_vm15, %v2798_v53, %v2804_v41 }
 0x1ae   : > { %1397 = vrot.lane.b32.xlu0 %v728_v37, %s2014_s29  ;;  %1403 = vrot.lane.b32.xlu1 %v734_v54, %s2014_s29  ;;  %v3873_v37 = vld [vmem:[#allocation47_spill] sm:$0xff]  ;;  %v765_v54 = vsel %vm711_vm3, %v746_v61, %v429_v60  ;;  %v378_v60 = vsel %vm377_vm0, %v3875_v23, %v3871_v6  ;;  %v749_v21 = vsel %vm689_vm2, %v380_v59, %v405_v36 }
 0x1af   : > { %v403_v28 = vsel %vm402_vm15, %v3873_v37, %v3867_v22  ;;  %v454_v22 = vsel %vm451_vm7, %v2922_v34, %v2944_v52  ;;  %v779_v63 = vsel %vm726_vm5, %v765_v54, %v453_v43  ;;  %v406_v43 = vsel %vm402_vm15, %v3872_v15, %v2798_v53 }
 0x1b0   : > { %v3227_v46 = vpop.permute.xlu0 %634  ;;  %v3236_v16 = vpop.permute.xlu1 %647  ;;  %v743_v34 = vsel %vm689_vm2, %v378_v60, %v403_v28  ;;  %v767_v6 = vsel %vm711_vm3, %v749_v21, %v430_v33  ;;  %v431_v36 = vsel %vm427_vm6, %v2865_v19, %v2885_v42  ;;  %v3877_v28 = vld [vmem:[#allocation44_spill] sm:$0xff]  ;;  %v432_v33 = vsel %vm427_vm6, %v2885_v42, %v2894_v51 }
 0x1b1   : > { %v763_v26 = vsel %vm711_vm3, %v743_v34, %v428_v10  ;;  %v781_v37 = vsel %vm726_vm5, %v767_v6, %v454_v22  ;;  %v382_v15 = vsel %vm377_vm0, %v3876_v1, %v3877_v28  ;;  %v455_v53 = vsel %vm451_vm7, %v2944_v52, %v2954_v0 }
 0x1b2   : > { %1405 = vrot.lane.b32.xlu0 %v736_v50, %s2014_s29  ;;  %1413 = vrot.lane.b32.xlu1 %v779_v63, %s2014_s29  ;;  %v777_v19 = vsel %vm726_vm5, %v763_v26, %v452_v4  ;;  %v752_v50 = vsel %vm689_vm2, %v381_v58, %v406_v43  ;;  %v456_v54 = vsel %vm451_vm7, %v2954_v0, %v2956_v8 }
 0x1b3   : > { %v755_v42 = vsel %vm689_vm2, %v382_v15, %v407_v48  ;;  %v533_v52 = vsel %vm532_vm12, %v2973_v32, %v2979_v57  ;;  %v769_v59 = vsel %vm711_vm3, %v752_v50, %v431_v36  ;;  %v534_v10 = vsel %vm532_vm12, %v2979_v57, %v2983_v27 }
 0x1b4   : > { %v3266_v61 = vpop.permute.xlu0 %649  ;;  %v3276_v20 = vpop.permute.xlu1 %651  ;;  %v574_v0 = vsel %vm573_vm13, %v3007_v62, %v3015_v30  ;;  %v783_v63 = vsel %vm726_vm5, %v769_v59, %v455_v53  ;;  %v771_v23 = vsel %vm711_vm3, %v755_v42, %v432_v33  ;;  %v477_v60 = vsel %vm475_vm1, %v2964_v24, %v2966_v56 }
 0x1b5   : > { %v575_v21 = vsel %vm573_vm13, %v3015_v30, %v3017_v2  ;;  %v597_v57 = vsel %vm596_vm9, %v3029_v25, %v3031_v44  ;;  %v785_v4 = vsel %vm726_vm5, %v771_v23, %v456_v54  ;;  %v478_v1 = vsel %vm475_vm1, %v2966_v56, %v2971_v55 }
 0x1b6   : > { %1415 = vrot.lane.b32.xlu0 %v781_v37, %s2014_s29  ;;  %1411 = vrot.lane.b32.xlu1 %v777_v19, %s2014_s29  ;;  %v795_v58 = vsel %vm689_vm2, %v477_v60, %v533_v52  ;;  %v598_v34 = vsel %vm596_vm9, %v3031_v44, %v3039_v11  ;;  %v798_v30 = vsel %vm689_vm2, %v478_v1, %v534_v10 }
 0x1b7   : > { %v476_v43 = vsel %vm475_vm1, %v2989_v17, %v2964_v24  ;;  %v814_v48 = vsel %vm711_vm3, %v795_v58, %v574_v0  ;;  %v535_v56 = vsel %vm532_vm12, %v2983_v27, %v3000_v13  ;;  %v816_v44 = vsel %vm711_vm3, %v798_v30, %v575_v21 }
 0x1b8   : > { %v3299_v29 = vpop.permute.xlu0 %653  ;;  %v3308_v22 = vpop.permute.xlu1 %655  ;;  %v828_v36 = vsel %vm726_vm5, %v814_v48, %v597_v57  ;;  %v576_v37 = vsel %vm573_vm13, %v3017_v2, %v3021_v31  ;;  %v830_v24 = vsel %vm726_vm5, %v816_v44, %v598_v34  ;;  %v792_v17 = vsel %vm689_vm2, %v476_v43, %v2973_v32 }
 0x1b9   : > { %v479_v27 = vsel %vm475_vm1, %v2971_v55, %v2992_v9  ;;  %v599_v15 = vsel %vm596_vm9, %v3039_v11, %v3044_v45  ;;  %v536_v33 = vsel %vm532_vm12, %v3000_v13, %v3005_v47  ;;  %v812_v32 = vsel %vm711_vm3, %v792_v17, %v3007_v62  ;;  %v3878_v62 = vld [vmem:[#allocation53_spill] sm:$0xff] }
 0x1ba   : > { %1417 = vrot.lane.b32.xlu0 %v783_v63, %s2014_s29  ;;  %1419 = vrot.lane.b32.xlu1 %v785_v4, %s2014_s29  ;;  %v801_v2 = vsel %vm689_vm2, %v479_v27, %v535_v56  ;;  %v577_v55 = vsel %vm573_vm13, %v3021_v31, %v3023_v18  ;;  %v641_v11 = vsel %vm640_vm11, %v3129_v5, %v3139_v38 }
 0x1bb   : > { %v826_v50 = vsel %vm726_vm5, %v812_v32, %v3029_v25  ;;  %v818_v54 = vsel %vm711_vm3, %v801_v2, %v576_v37  ;;  %v480_v13 = vsel %vm475_vm1, %v2992_v9, %v2998_v12  ;;  %v600_v42 = vsel %vm596_vm9, %v3044_v45, %v3878_v62 }
 0x1bc   : > { %v3335_v6 = vpop.permute.xlu0 %668  ;;  %v671_v26 = vpop.permute.xlu1 %670  ;;  %v662_v31 = vsel %vm3752_vm14, %v3236_v16, %v3266_v61  ;;  %v832_v52 = vsel %vm726_vm5, %v818_v54, %v599_v15  ;;  %v804_v25 = vsel %vm689_vm2, %v480_v13, %v536_v33  ;;  %v620_v59 = vsel %vm619_vm10, %v3075_v40, %v3098_v7 }
 0x1bd   : > { %v683_v9 = vsel %vm682_vm8, %v3335_v6, %v671_v26  ;;  %v844_v45 = vsel %vm689_vm2, %v620_v59, %v641_v11  ;;  %v642_v10 = vsel %vm640_vm11, %v3139_v38, %v3161_v35  ;;  %v820_v63 = vsel %vm711_vm3, %v804_v25, %v577_v55 }
 0x1be   : > { %1427 = vrot.lane.b32.xlu0 %v828_v36, %s2014_s29  ;;  %1429 = vrot.lane.b32.xlu1 %v830_v24, %s2014_s29  ;;  %v663_v23 = vsel %vm3752_vm14, %v3266_v61, %v3276_v20  ;;  %v834_v21 = vsel %vm726_vm5, %v820_v63, %v600_v42  ;;  %v863_v57 = vsel %vm711_vm3, %v844_v45, %v662_v31 }
 0x1bf   : > { %v621_v4 = vsel %vm619_vm10, %v3098_v7, %v3105_v14  ;;  %v877_v38 = vsel %vm726_vm5, %v863_v57, %v683_v9  ;;  %v841_v61 = vsel %vm689_vm2, %v3075_v40, %v3129_v5  ;;  %v643_v34 = vsel %vm640_vm11, %v3161_v35, %v3202_v39 }
 0x1c0   : > { %v673_v53 = vpop.permute.xlu0 %672  ;;  %v675_v19 = vpop.permute.xlu1 %674  ;;  %v847_v58 = vsel %vm689_vm2, %v621_v4, %v642_v10  ;;  %v644_v43 = vsel %vm640_vm11, %v3202_v39, %v3227_v46  ;;  %v861_v48 = vsel %vm711_vm3, %v841_v61, %v3236_v16  ;;  %v664_v56 = vsel %vm3752_vm14, %v3276_v20, %v3299_v29 }
 0x1c1   : > { %v684_v1 = vsel %vm682_vm8, %v671_v26, %v673_v53  ;;  %v865_v7 = vsel %vm711_vm3, %v847_v58, %v663_v23  ;;  %v622_v5 = vsel %vm619_vm10, %v3105_v14, %v3170_v3  ;;  %v665_v35 = vsel %vm3752_vm14, %v3299_v29, %v3308_v22 }
 0x1c2   : > { %1425 = vrot.lane.b32.xlu0 %v826_v50, %s2014_s29  ;;  %1431 = vrot.lane.b32.xlu1 %v832_v52, %s2014_s29  ;;  %v879_v40 = vsel %vm726_vm5, %v865_v7, %v684_v1  ;;  %v685_v39 = vsel %vm682_vm8, %v673_v53, %v675_v19  ;;  %v875_v16 = vsel %vm726_vm5, %v861_v48, %v3335_v6  ;;  %vm1350_vm14 = vcmask 56320   ;;  %v3881_v48 = vld [vmem:[#allocation16_spill] sm:$0xff] }
 0x1c3   : > { %v623_v20 = vsel %vm619_vm10, %v3170_v3, %v3193_v49  ;;  %v850_v36 = vsel %vm689_vm2, %v622_v5, %v643_v34  ;;  %v2029_v23 = vmov 0   ;;  %v3879_v34 = vld [vmem:[#allocation37_spill] sm:$0xff] }
 0x1c4   : > { %v3394_v0 = vpop.permute.xlu0 %676  ;;  %v1309_v60 = vpop.permute.xlu1 %1308  ;;  %v853_v29 = vsel %vm689_vm2, %v623_v20, %v644_v43  ;;  %v867_v37 = vsel %vm711_vm3, %v850_v36, %v664_v56  ;;  %1636 = vmatprep.mubr.bf16.mxu0 %v2029_v23  ;;  %1677 = vmatprep.mubr.bf16.mxu1 %v2029_v23  ;;  %v3882_v56 = vld [vmem:[#allocation7_spill] sm:$0xff] }
 0x1c5   : > { %v686_v14 = vsel %vm682_vm8, %v675_v19, %v3394_v0  ;;  %v881_v6 = vsel %vm726_vm5, %v867_v37, %v685_v39  ;;  %v869_v17 = vsel %vm711_vm3, %v853_v29, %v665_v35  ;;  %1981 = vset.pattern.permute.xlu1 %v2029_v23  ;;  %1982 = vset.pattern.permute.xlu0 %v2029_v23  ;;  %v3884_v35 = vld [vmem:[#allocation38_spill] sm:$0xff]  ;;  %v3885_v39 = vld [vmem:[#allocation29_spill] sm:$0xff] }
 0x1c6   : > { %1433 = vrot.lane.b32.xlu0 %v834_v21, %s2014_s29  ;;  %1441 = vrot.lane.b32.xlu1 %v877_v38, %s2014_s29  ;;  %v883_v3 = vsel %vm726_vm5, %v869_v17, %v686_v14  ;;  %v3886_v37 = vld [vmem:[#allocation46_spill] sm:$0xff] }
 0x1c8   : > { %v1311_v30 = vpop.permute.xlu0 %1310  ;;  %v1313_v26 = vpop.permute.xlu1 %1312 }
 0x1c9   : > { %v1351_v15 = vsel %vm1350_vm14, %v1309_v60, %v1311_v30  ;;  %v1352_v33 = vsel %vm1350_vm14, %v1311_v30, %v1313_v26  ;;  %v3880_v30 = vld [vmem:[#allocation36_spill] sm:$0xff] }
 0x1ca   : > { %1443 = vrot.lane.b32.xlu0 %v879_v40, %s2014_s29  ;;  %1439 = vrot.lane.b32.xlu1 %v875_v16, %s2014_s29  ;;  %v350_v7 = vsel %vm343_vm4, %v3880_v30, %v3879_v34  ;;  %v3883_v40 = vld [vmem:[#allocation45_spill] sm:$0xff]  ;;  %vm3887_vm4 = vcmask 130048  }
 0x1cb   : > { %v383_v5 = vsel %vm377_vm0, %v3877_v28, %v3883_v40 }
 0x1cc   : > { %v1315_v44 = vpop.permute.xlu0 %1314  ;;  %v3445_v24 = vpop.permute.xlu1 %1316 }
 0x1cd   : > { %v1353_v55 = vsel %vm1350_vm14, %v1313_v26, %v1315_v44  ;;  %v1354_v19 = vsel %vm1350_vm14, %v1315_v44, %v3445_v24  ;;  %v710_v26 = vsel %vm689_vm2, %v3882_v56, %v3881_v48 }
 0x1ce   : > { %1445 = vrot.lane.b32.xlu0 %v881_v6, %s2014_s29  ;;  %1447 = vrot.lane.b32.xlu1 %v883_v3, %s2014_s29  ;;  %v725_v16 = vsel %vm711_vm3, %v710_v26, %v3885_v39 }
 0x1cf   : > { %v740_v28 = vsel %vm726_vm5, %v725_v16, %v350_v7 }
 0x1d0   : > { %v1323_v27 = vpop.permute.xlu0 %1322  ;;  %v1325_v2 = vpop.permute.xlu1 %1324 }
 0x1d1   : > { %v1357_v54 = vsel %vm1350_vm14, %v1323_v27, %v1325_v2 }
 0x1d2   : > { %1455 = vrot.lane.b32.xlu0 %v1351_v15, %s2014_s29  ;;  %1457 = vrot.lane.b32.xlu1 %v1352_v33, %s2014_s29 }
 0x1d4   : > { %v1327_v32 = vpop.permute.xlu0 %1326  ;;  %v1329_v53 = vpop.permute.xlu1 %1328 }
 0x1d5   : > { %v1358_v42 = vsel %vm1350_vm14, %v1325_v2, %v1327_v32  ;;  %v1359_v25 = vsel %vm1350_vm14, %v1327_v32, %v1329_v53 }
 0x1d6   : > { %1453 = vrot.lane.b32.xlu0 %v1309_v60, %s2014_s29  ;;  %1459 = vrot.lane.b32.xlu1 %v1353_v55, %s2014_s29 }
 0x1d8   : > { %v3459_v11 = vpop.permute.xlu0 %1330  ;;  %v1337_v50 = vpop.permute.xlu1 %1336 }
 0x1d9   : > { %v1360_v9 = vsel %vm1350_vm14, %v1329_v53, %v3459_v11 }
 0x1da   : > { %1461 = vrot.lane.b32.xlu0 %v1354_v19, %s2014_s29  ;;  %1469 = vrot.lane.b32.xlu1 %v1357_v54, %s2014_s29 }
 0x1dc   : > { %v1339_v13 = vpop.permute.xlu0 %1338  ;;  %v1341_v31 = vpop.permute.xlu1 %1340 }
 0x1dd   : > { %v1363_v63 = vsel %vm1350_vm14, %v1337_v50, %v1339_v13  ;;  %v1364_v21 = vsel %vm1350_vm14, %v1339_v13, %v1341_v31 }
 0x1de   : > { %1471 = vrot.lane.b32.xlu0 %v1358_v42, %s2014_s29  ;;  %1467 = vrot.lane.b32.xlu1 %v1323_v27, %s2014_s29 }
 0x1e0   : > { %v1343_v52 = vpop.permute.xlu0 %1342  ;;  %v3470_v59 = vpop.permute.xlu1 %1344 }
 0x1e1   : > { %v1365_v4 = vsel %vm1350_vm14, %v1341_v31, %v1343_v52  ;;  %v1366_v38 = vsel %vm1350_vm14, %v1343_v52, %v3470_v59 }
 0x1e2   : > { %1473 = vrot.lane.b32.xlu0 %v1359_v25, %s2014_s29  ;;  %1475 = vrot.lane.b32.xlu1 %v1360_v9, %s2014_s29 }
 0x1e4   : > { %v399_v45 = vpop.permute.xlu0 %398  ;;  %v401_v10 = vpop.permute.xlu1 %400 }
 0x1e5   : > { %v408_v58 = vsel %vm402_vm15, %v2804_v41, %v399_v45  ;;  %v409_v20 = vsel %vm402_vm15, %v399_v45, %v401_v10 }
 0x1e6   : > { %1481 = vrot.lane.b32.xlu0 %v1337_v50, %s2014_s29  ;;  %1483 = vrot.lane.b32.xlu1 %v1363_v63, %s2014_s29 }
 0x1e8   : > { %v424_v60 = vpop.permute.xlu0 %423  ;;  %v426_v57 = vpop.permute.xlu1 %425 }
 0x1e9   : > { %v433_v43 = vsel %vm427_vm6, %v2894_v51, %v424_v60  ;;  %v758_v51 = vsel %vm689_vm2, %v383_v5, %v408_v58  ;;  %v434_v29 = vsel %vm427_vm6, %v424_v60, %v426_v57 }
 0x1ea   : > { %1485 = vrot.lane.b32.xlu0 %v1364_v21, %s2014_s29  ;;  %1487 = vrot.lane.b32.xlu1 %v1365_v4, %s2014_s29  ;;  %v773_v14 = vsel %vm711_vm3, %v758_v51, %v433_v43 }
 0x1ec   : > { %v448_v1 = vpop.permute.xlu0 %447  ;;  %v450_v61 = vpop.permute.xlu1 %449 }
 0x1ed   : > { %v457_v41 = vsel %vm451_vm7, %v2956_v8, %v448_v1  ;;  %v384_v8 = vsel %vm377_vm0, %v3883_v40, %v3886_v37  ;;  %v458_v6 = vsel %vm451_vm7, %v448_v1, %v450_v61 }
 0x1ee   : > { %1489 = vrot.lane.b32.xlu0 %v1366_v38, %s2014_s29  ;;  %1407 = vrot.lane.b32.xlu1 %v3884_v35, %s2014_s29  ;;  %v787_v17 = vsel %vm726_vm5, %v773_v14, %v457_v41  ;;  %v761_v3 = vsel %vm689_vm2, %v384_v8, %v409_v20 }
 0x1ef   : > { %v775_v27 = vsel %vm711_vm3, %v761_v3, %v434_v29 }
 0x1f0   : > { %v472_v36 = vpop.permute.xlu0 %471  ;;  %v474_v44 = vpop.permute.xlu1 %473  ;;  %v789_v33 = vsel %vm726_vm5, %v775_v27, %v458_v6  ;;  %v201_v6 = vld [vmem:[%s3693_s3] sm:$0xff] }
 0x1f1   : > { %v481_v54 = vsel %vm475_vm1, %v2998_v12, %v472_v36  ;;  %v482_v42 = vsel %vm475_vm1, %v472_v36, %v474_v44 }
 0x1f2   : > { %1409 = vrot.lane.b32.xlu0 %v740_v28, %s2014_s29  ;;  %1421 = vrot.lane.b32.xlu1 %v787_v17, %s2014_s29 }
 0x1f4   : > { %v529_v15 = vpop.permute.xlu0 %528  ;;  %v531_v2 = vpop.permute.xlu1 %530 }
 0x1f5   : > { %v537_v53 = vsel %vm532_vm12, %v3005_v47, %v529_v15  ;;  %v538_v19 = vsel %vm532_vm12, %v529_v15, %v531_v2  ;;  %vm3888_vm12 = vmmov %vm3887_vm4 }
 0x1f6   : > { %1423 = vrot.lane.b32.xlu0 %v789_v33, %s2014_s29  ;;  %v807_v31 = vsel %vm689_vm2, %v481_v54, %v537_v53  ;;  %v810_v25 = vsel %vm689_vm2, %v482_v42, %v538_v19 }
 0x1f8   : > { %v570_v32 = vpop.permute.xlu0 %569  ;;  %v572_v55 = vpop.permute.xlu1 %571 }
 0x1f9   : > { %v578_v50 = vsel %vm573_vm13, %v3023_v18, %v570_v32  ;;  %v579_v13 = vsel %vm573_vm13, %v570_v32, %v572_v55 }
 0x1fa   : > { %v822_v47 = vsel %vm711_vm3, %v807_v31, %v578_v50  ;;  %v824_v18 = vsel %vm711_vm3, %v810_v25, %v579_v13 }
 0x1fc   : > { %v593_v52 = vpop.permute.xlu0 %592  ;;  %v595_v45 = vpop.permute.xlu1 %594 }
 0x1fd   : > { %v601_v9 = vsel %vm596_vm9, %v3878_v62, %v593_v52  ;;  %v602_v10 = vsel %vm596_vm9, %v593_v52, %v595_v45 }
 0x1fe   : > { %v836_v12 = vsel %vm726_vm5, %v822_v47, %v601_v9  ;;  %v838_v63 = vsel %vm726_vm5, %v824_v18, %v602_v10 }
 0x1ff   : > { %1435 = vrot.lane.b32.xlu1 %v836_v12, %s2014_s29  ;;  %1437 = vrot.lane.b32.xlu0 %v838_v63, %s2014_s29 }
 0x200   : > { %v616_v60 = vpop.permute.xlu0 %615  ;;  %v618_v21 = vpop.permute.xlu1 %617 }
 0x201   : > { %v624_v34 = vsel %vm619_vm10, %v3193_v49, %v616_v60  ;;  %v625_v7 = vsel %vm619_vm10, %v616_v60, %v618_v21 }
 0x204   : > { %v637_v57 = vpop.permute.xlu0 %636  ;;  %v639_v4 = vpop.permute.xlu1 %638 }
 0x205   : > { %v645_v62 = vsel %vm640_vm11, %v3227_v46, %v637_v57  ;;  %v646_v58 = vsel %vm640_vm11, %v637_v57, %v639_v4 }
 0x206   : > { %v856_v43 = vsel %vm689_vm2, %v624_v34, %v645_v62  ;;  %v859_v56 = vsel %vm689_vm2, %v625_v7, %v646_v58  ;;  %vm3889_vm2 = vcmask 318464  }
 0x207   : > { %vm3892_vm13 = vmmov %vm3889_vm2 }
 0x208   : > { %v658_v1 = vpop.permute.xlu0 %657  ;;  %v660_v38 = vpop.permute.xlu1 %659  ;;  %vm3893_vm15 = vmmov %vm3889_vm2 }
 0x209   : > { %v666_v61 = vsel %vm3887_vm4, %v3308_v22, %v658_v1  ;;  %v667_v30 = vsel %vm3888_vm12, %v658_v1, %v660_v38  ;;  %vm3894_vm7 = vmmov %vm3889_vm2 }
 0x20a   : > { %v871_v46 = vsel %vm711_vm3, %v856_v43, %v666_v61  ;;  %v873_v22 = vsel %vm711_vm3, %v859_v56, %v667_v30  ;;  %vm3890_vm3 = vmmov %vm3889_vm2 }
 0x20b   : > { %vm3895_vm0 = vmmov %vm3889_vm2 }
 0x20c   : > { %v679_v48 = vpop.permute.xlu0 %678  ;;  %v681_v40 = vpop.permute.xlu1 %680  ;;  %vm3896_vm1 = vmmov %vm3895_vm0 }
 0x20d   : > { %v687_v26 = vsel %vm682_vm8, %v3394_v0, %v679_v48  ;;  %v688_v5 = vsel %vm682_vm8, %v679_v48, %v681_v40  ;;  %vm3891_vm8 = vmmov %vm3889_vm2 }
 0x20e   : > { %v885_v49 = vsel %vm726_vm5, %v871_v46, %v687_v26  ;;  %v887_v41 = vsel %vm726_vm5, %v873_v22, %v688_v5  ;;  %vm3897_vm9 = vmmov %vm3895_vm0 }
 0x20f   : > { %1449 = vrot.lane.b32.xlu1 %v885_v49, %s2014_s29  ;;  %1451 = vrot.lane.b32.xlu0 %v887_v41, %s2014_s29  ;;  %vm3898_vm10 = vmmov %vm3895_vm0 }
 0x210   : > { %v1319_v35 = vpop.permute.xlu0 %1318  ;;  %v1321_v16 = vpop.permute.xlu1 %1320  ;;  %vm3899_vm11 = vmmov %vm3895_vm0 }
 0x211   : > { %v1355_v39 = vsel %vm1350_vm14, %v3445_v24, %v1319_v35  ;;  %v1356_v0 = vsel %vm1350_vm14, %v1319_v35, %v1321_v16  ;;  %vm3901_vm4 = vmmov %vm3895_vm0 }
 0x212   : > { %vm3902_vm12 = vmmov %vm3895_vm0 }
 0x213   : > { %1463 = vrot.lane.b32.xlu1 %v1355_v39, %s2014_s29  ;;  %1465 = vrot.lane.b32.xlu0 %v1356_v0, %s2014_s29 }
 0x214   : > { %v1333_v51 = vpop.permute.xlu0 %1332  ;;  %v1335_v36 = vpop.permute.xlu1 %1334 }
 0x215   : > { %v1361_v20 = vsel %vm1350_vm14, %v3459_v11, %v1333_v51  ;;  %v1362_v14 = vsel %vm1350_vm14, %v1333_v51, %v1335_v36  ;;  %v200_v11 = vld [vmem:[%s3692_s2] sm:$0xff] }
 0x217   : > { %1477 = vrot.lane.b32.xlu1 %v1361_v20, %s2014_s29  ;;  %1479 = vrot.lane.b32.xlu0 %v1362_v14, %s2014_s29 }
 0x218   : > { %v1347_v29 = vpop.permute.xlu0 %1346  ;;  %v1349_v44 = vpop.permute.xlu1 %1348 }
 0x219   : > { %v1367_v24 = vsel %vm1350_vm14, %v3470_v59, %v1347_v29  ;;  %v1368_v28 = vsel %vm1350_vm14, %v1347_v29, %v1349_v44  ;;  %vm3900_vm14 = vmmov %vm3895_vm0 }
 0x21b   : > { %1491 = vrot.lane.b32.xlu1 %v1367_v24, %s2014_s29  ;;  %1493 = vrot.lane.b32.xlu0 %v1368_v28, %s2014_s29  ;;  %s3681_s29 = scalar_lea.vmem %s3694_s4, %s1945_s26 }
 0x21c   : > { %v1400_v37 = vpop.permute.xlu0 %1399  ;;  %v1402_v8 = vpop.permute.xlu1 %1401 }
 0x21d   : > { %v1496_v17 = vsel %vm3889_vm2, %v1400_v37, %v1402_v8  ;;  %vm3903_vm2 = vmmov %vm3895_vm0 }
 0x21e   : > { %1604 = vmatprep.subr.bf16.mxu0 %v1496_v17 }
 0x21f   : > { %1769 = vperm.xlu1 %1981, %v200_v11   ;;  %1781 = vperm.xlu0 %1982, %v201_v6   ;;  %v3636_v11 = vld [vmem:[%s3691_s1] sm:$0xf] }
 0x220   : > { %v1398_v59 = vpop.permute.xlu0 %1397  ;;  %v1404_v3 = vpop.permute.xlu1 %1403 }
 0x221   : > { %v1495_v27 = vsel %vm3890_vm3, %v1398_v59, %v1400_v37  ;;  %v1497_v32 = vsel %vm3892_vm13, %v1402_v8, %v1404_v3  ;;  %vm3904_vm3 = vmmov %vm3895_vm0 }
 0x222   : > { %1605 = vmatpush1.bf16.msra.mxu0 %v1495_v27  ;;  %vm3906_vm13 = vmmov %vm3895_vm0  ;;  %v2030_v27 = vmov 0.0  }
 0x224   : > { %v3588_v15 = vpop.permute.xlu0 %1405  ;;  %v1414_v2 = vpop.permute.xlu1 %1413 }
 0x225   : > { %v1498_v33 = vsel %vm3891_vm8, %v1404_v3, %v3588_v15  ;;  %vm3905_vm8 = vmmov %vm3895_vm0 }
 0x226   : > { %1645 = vmatprep.subr.bf16.mxu1 %v1498_v33 }
 0x227   : > { %1646 = vmatpush1.bf16.msra.mxu1 %v1497_v32 }
 0x228   : > { %v1416_v53 = vpop.permute.xlu0 %1415  ;;  %v1412_v55 = vpop.permute.xlu1 %1411 }
 0x229   : > { %v1502_v19 = vsel %vm3893_vm15, %v1414_v2, %v1416_v53  ;;  %v1501_v50 = vsel %vm3894_vm7, %v1412_v55, %v1414_v2  ;;  %vm3907_vm15 = vmmov %vm3895_vm0 }
 0x22a   : > { %1606 = vmatprep.subr.bf16.mxu0 %v1502_v19  ;;  %vm3908_vm7 = vmmov %vm3895_vm0 }
 0x22b   : > { %1607 = vmatpush1.bf16.msra.mxu0 %v1501_v50 }
 0x22c   : > { %v1418_v54 = vpop.permute.xlu0 %1417  ;;  %v3595_v13 = vpop.permute.xlu1 %1419 }
 0x22d   : > { %v1503_v42 = vsel %vm3895_vm0, %v1416_v53, %v1418_v54  ;;  %v1504_v31 = vsel %vm3896_vm1, %v1418_v54, %v3595_v13  ;;  %vm3909_vm1 = vmmov %vm3895_vm0 }
 0x22e   : > { %1647 = vmatprep.subr.bf16.mxu1 %v1504_v31 }
 0x22f   : > { %1648 = vmatpush1.bf16.msra.mxu1 %v1503_v42 }
 0x230   : > { %v1428_v52 = vpop.permute.xlu0 %1427  ;;  %v1430_v25 = vpop.permute.xlu1 %1429 }
 0x231   : > { %v1508_v47 = vsel %vm3897_vm9, %v1428_v52, %v1430_v25  ;;  %vm3910_vm9 = vmmov %vm3895_vm0 }
 0x232   : > { %1608 = vmatprep.subr.bf16.mxu0 %v1508_v47 }
 0x234   : > { %v1426_v9 = vpop.permute.xlu0 %1425  ;;  %v1432_v45 = vpop.permute.xlu1 %1431 }
 0x235   : > { %v1507_v18 = vsel %vm3898_vm10, %v1426_v9, %v1428_v52  ;;  %v1509_v60 = vsel %vm3900_vm14, %v1430_v25, %v1432_v45  ;;  %vm3911_vm10 = vmmov %vm3895_vm0 }
 0x236   : > { %1609 = vmatpush1.bf16.msra.mxu0 %v1507_v18  ;;  %vm3913_vm14 = vmmov %vm3895_vm0 }
 0x238   : > { %v3602_v10 = vpop.permute.xlu0 %1433  ;;  %v1442_v12 = vpop.permute.xlu1 %1441 }
 0x239   : > { %v1510_v63 = vsel %vm3899_vm11, %v1432_v45, %v3602_v10  ;;  %vm3912_vm11 = vmmov %vm3895_vm0 }
 0x23a   : > { %1649 = vmatprep.subr.bf16.mxu1 %v1510_v63 }
 0x23b   : > { %1650 = vmatpush1.bf16.msra.mxu1 %v1509_v60 }
 0x23c   : > { %v1444_v21 = vpop.permute.xlu0 %1443  ;;  %v1440_v57 = vpop.permute.xlu1 %1439 }
 0x23d   : > { %v1514_v4 = vsel %vm3901_vm4, %v1442_v12, %v1444_v21  ;;  %v1513_v1 = vsel %vm3902_vm12, %v1440_v57, %v1442_v12  ;;  %vm3914_vm4 = vmmov %vm3895_vm0 }
 0x23e   : > { %1610 = vmatprep.subr.bf16.mxu0 %v1514_v4  ;;  %vm3915_vm12 = vmmov %vm3895_vm0 }
 0x23f   : > { %1611 = vmatpush1.bf16.msra.mxu0 %v1513_v1 }
 0x240   : > { %v1446_v62 = vpop.permute.xlu0 %1445  ;;  %v3609_v38 = vpop.permute.xlu1 %1447 }
 0x241   : > { %v1515_v58 = vsel %vm3903_vm2, %v1444_v21, %v1446_v62  ;;  %v1516_v61 = vsel %vm3904_vm3, %v1446_v62, %v3609_v38  ;;  %vm3916_vm2 = vmmov %vm3895_vm0 }
 0x242   : > { %1651 = vmatprep.subr.bf16.mxu1 %v1516_v61  ;;  %vm3917_vm3 = vmmov %vm3895_vm0 }
 0x243   : > { %1652 = vmatpush1.bf16.msra.mxu1 %v1515_v58 }
 0x244   : > { %v1456_v34 = vpop.permute.xlu0 %1455  ;;  %v1458_v30 = vpop.permute.xlu1 %1457 }
 0x245   : > { %v1520_v7 = vsel %vm3905_vm8, %v1456_v34, %v1458_v30  ;;  %vm2031_vm8 = vmmov 0  }
 0x246   : > { %1612 = vmatprep.subr.bf16.mxu0 %v1520_v7 }
 0x248   : > { %v1454_v43 = vpop.permute.xlu0 %1453  ;;  %v1460_v48 = vpop.permute.xlu1 %1459 }
 0x249   : > { %v1519_v56 = vsel %vm3906_vm13, %v1454_v43, %v1456_v34  ;;  %v1521_v22 = vsel %vm3908_vm7, %v1458_v30, %v1460_v48  ;;  %vm3918_vm13 = vmmov %vm3895_vm0 }
 0x24a   : > { %1613 = vmatpush1.bf16.msra.mxu0 %v1519_v56  ;;  %vm3920_vm7 = vmmov %vm3895_vm0 }
 0x24c   : > { %v3616_v46 = vpop.permute.xlu0 %1461  ;;  %v1470_v26 = vpop.permute.xlu1 %1469 }
 0x24d   : > { %v1522_v40 = vsel %vm3907_vm15, %v1460_v48, %v3616_v46  ;;  %vm3919_vm15 = vmmov %vm3895_vm0 }
 0x24e   : > { %1653 = vmatprep.subr.bf16.mxu1 %v1522_v40 }
 0x24f   : > { %1654 = vmatpush1.bf16.msra.mxu1 %v1521_v22 }
 0x250   : > { %v1472_v5 = vpop.permute.xlu0 %1471  ;;  %v1468_v49 = vpop.permute.xlu1 %1467 }
 0x251   : > { %v1526_v41 = vsel %vm3895_vm0, %v1470_v26, %v1472_v5  ;;  %v1525_v35 = vsel %vm3909_vm1, %v1468_v49, %v1470_v26  ;;  %vm3921_vm1 = vmmov %vm3895_vm0 }
 0x252   : > { %1614 = vmatprep.subr.bf16.mxu0 %v1526_v41 }
 0x253   : > { %1615 = vmatpush1.bf16.msra.mxu0 %v1525_v35 }
 0x254   : > { %v1474_v39 = vpop.permute.xlu0 %1473  ;;  %v3623_v16 = vpop.permute.xlu1 %1475 }
 0x255   : > { %v1527_v0 = vsel %vm3910_vm9, %v1472_v5, %v1474_v39  ;;  %v1528_v51 = vsel %vm3911_vm10, %v1474_v39, %v3623_v16  ;;  %vm3922_vm9 = vmmov %vm3895_vm0 }
 0x256   : > { %1655 = vmatprep.subr.bf16.mxu1 %v1528_v51  ;;  %vm3923_vm10 = vmmov %vm3895_vm0 }
 0x257   : > { %1656 = vmatpush1.bf16.msra.mxu1 %v1527_v0 }
 0x258   : > { %v1482_v20 = vpop.permute.xlu0 %1481  ;;  %v1484_v36 = vpop.permute.xlu1 %1483 }
 0x259   : > { %v1531_v14 = vsel %vm3912_vm11, %v1482_v20, %v1484_v36  ;;  %vm3924_vm11 = vmmov %vm3895_vm0 }
 0x25a   : > { %v1584_v28 = vsel %vm726_vm5, %v1531_v14, 0 }
 0x25c   : > { %v1486_v29 = vpop.permute.xlu0 %1485  ;;  %v1488_v44 = vpop.permute.xlu1 %1487 }
 0x25d   : > { %v1532_v24 = vsel %vm3913_vm14, %v1484_v36, %v1486_v29  ;;  %v1533_v37 = vsel %vm3914_vm4, %v1486_v29, %v1488_v44  ;;  %vm3925_vm14 = vmmov %vm3895_vm0 }
 0x25e   : > { %1901 = vmatprep.subr.msk.bf16.mxu0 %vm726_vm5, %v1532_v24  ;;  %v1590_v59 = vsel %vm726_vm5, %v1533_v37, 0  ;;  %vm3926_vm4 = vmmov %vm3895_vm0 }
 0x25f   : > { %1617 = vmatpush1.bf16.msra.mxu0 %v1584_v28 }
 0x260   : > { %v3638_v8 = vpop.permute.xlu0 %1489  ;;  %v1408_v17 = vpop.permute.xlu1 %1407 }
 0x261   : > { %v1534_v6 = vsel %vm3915_vm12, %v1488_v44, %v3638_v8  ;;  %v1499_v33 = vsel %vm3917_vm3, %v3588_v15, %v1408_v17  ;;  %vm3927_vm12 = vmmov %vm3895_vm0 }
 0x262   : > { %1903 = vmatprep.subr.msk.bf16.mxu1 %vm726_vm5, %v1534_v6  ;;  %1902 = vmatmul.mubr.msk.bf16.vlgmr.msra.gmra.mrb[0].mxu0 %vm427_vm6, %v3636_v11 }
 0x263   : > { %1658 = vmatpush1.bf16.msra.mxu1 %v1590_v59  ;;  %1718 = vmatprep.mubr.bf16.mxu0 %v2029_v23 }
 0x264   : > { %v1410_v3 = vpop.permute.xlu0 %1409  ;;  %1926 = vmatprep.subr.bf16.mxu1 %v2030_v27  ;;  %v1422_v32 = vpop.permute.xlu1 %1421 }
 0x265   : > { %v1500_v2 = vsel %vm3916_vm2, %v1408_v17, %v1410_v3  ;;  %v1505_v55 = vsel %vm3919_vm15, %v3595_v13, %v1422_v32  ;;  %vm3928_vm2 = vmmov %vm3895_vm0 }
 0x266   : > { %1686 = vmatprep.subr.bf16.mxu0 %v1500_v2  ;;  %1904 = vmatmul.mubr.msk.bf16.vlgmr.msra.gmra.mrb[0].mxu1 %vm427_vm6, %v3636_v11 }
 0x267   : > { %1687 = vmatpush1.bf16.msra.mxu0 %v1499_v33  ;;  %1927 = vmatpush3.bf16.msra.mxu1 %v1410_v3 }
 0x268   : > { %v1424_v53 = vpop.permute.xlu0 %1423  ;;  %1928 = vmatprep.subr.bf16.mxu1 %v2030_v27  ;;  %1940 = vmatprep.mubr.msk.bf16.mxu1 %vm2031_vm8, %v2030_v27 }
 0x269   : > { %v1506_v23 = vsel %vm3918_vm13, %v1422_v32, %v1424_v53 }
 0x26a   : > { %1688 = vmatprep.subr.bf16.mxu0 %v1506_v23 }
 0x26b   : > { %1689 = vmatpush1.bf16.msra.mxu0 %v1505_v55  ;;  %1929 = vmatpush3.bf16.msra.mxu1 %v1424_v53 }
 0x26c   : > { %1930 = vmatprep.subr.bf16.mxu1 %v2030_v27 }
 0x271   : > { %v1436_v15 = vpop.permute.xlu1 %1435  ;;  %v1438_v19 = vpop.permute.xlu0 %1437 }
 0x272   : > { %v1511_v50 = vsel %vm3920_vm7, %v3602_v10, %v1436_v15  ;;  %1931 = vmatpush3.bf16.msra.mxu1 %v1438_v19  ;;  %v1512_v54 = vsel %vm3895_vm0, %v1436_v15, %v1438_v19 }
 0x273   : > { %1690 = vmatprep.subr.bf16.mxu0 %v1512_v54  ;;  %1932 = vmatprep.subr.bf16.mxu1 %v2030_v27 }
 0x274   : > { %1691 = vmatpush1.bf16.msra.mxu0 %v1511_v50 }
 0x281   : > { %v1450_v42 = vpop.permute.xlu1 %1449  ;;  %v1452_v31 = vpop.permute.xlu0 %1451 }
 0x282   : > { %v1517_v13 = vsel %vm3921_vm1, %v3609_v38, %v1450_v42  ;;  %1933 = vmatpush3.bf16.msra.mxu1 %v1452_v31  ;;  %v1518_v52 = vsel %vm3922_vm9, %v1450_v42, %v1452_v31 }
 0x283   : > { %1692 = vmatprep.subr.bf16.mxu0 %v1518_v52  ;;  %1934 = vmatprep.subr.bf16.mxu1 %v2030_v27 }
 0x284   : > { %1693 = vmatpush1.bf16.msra.mxu0 %v1517_v13 }
 0x285   : > { %v1464_v25 = vpop.permute.xlu1 %1463  ;;  %v1466_v47 = vpop.permute.xlu0 %1465 }
 0x286   : > { %v1523_v9 = vsel %vm3923_vm10, %v3616_v46, %v1464_v25  ;;  %1935 = vmatpush3.bf16.msra.mxu1 %v1466_v47  ;;  %v1524_v45 = vsel %vm3924_vm11, %v1464_v25, %v1466_v47 }
 0x287   : > { %1694 = vmatprep.subr.bf16.mxu0 %v1524_v45  ;;  %1936 = vmatprep.subr.bf16.mxu1 %v2030_v27 }
 0x288   : > { %1695 = vmatpush1.bf16.msra.mxu0 %v1523_v9 }
 0x289   : > { %v1478_v18 = vpop.permute.xlu1 %1477  ;;  %v1480_v10 = vpop.permute.xlu0 %1479 }
 0x28a   : > { %v1529_v12 = vsel %vm3925_vm14, %v3623_v16, %v1478_v18  ;;  %1937 = vmatpush3.bf16.msra.mxu1 %v1480_v10  ;;  %v1530_v63 = vsel %vm3926_vm4, %v1478_v18, %v1480_v10 }
 0x28b   : > { %1696 = vmatprep.subr.bf16.mxu0 %v1530_v63  ;;  %1938 = vmatprep.subr.bf16.mxu1 %v2030_v27 }
 0x28c   : > { %1697 = vmatpush1.bf16.msra.mxu0 %v1529_v12 }
 0x28d   : > { %v1492_v60 = vpop.permute.xlu1 %1491  ;;  %v1494_v21 = vpop.permute.xlu0 %1493 }
 0x28e   : > { %v1535_v57 = vsel %vm3927_vm12, %v3638_v8, %v1492_v60  ;;  %v1602_v4 = vsel %vm726_vm5, %v1494_v21, 0  ;;  %v1536_v1 = vsel %vm3928_vm2, %v1492_v60, %v1494_v21 }
 0x28f   : > { %v1596_v62 = vsel %vm726_vm5, %v1535_v57, 0  ;;  %1905 = vmatprep.subr.msk.bf16.mxu0 %vm726_vm5, %v1536_v1  ;;  %1939 = vmatpush3.bf16.msra.mxu1 %v1602_v4  ;;  %vm1837_vm5 = vcmask 257024  }
 0x290   : > { %1699 = vmatpush1.bf16.msra.mxu0 %v1596_v62 }
 0x292   : > { %1941 = vmatmul.mubr.msk.bf16.vlgmr.msra.gmra.mrb[4].mxu1 %vm427_vm6, %v3636_v11 }
 0x293   : > { %1906 = vmatmul.mubr.msk.bf16.vlgmr.msra.gmra.mrb[4].mxu0 %vm427_vm6, %v3636_v11 }
 0x29e   : > { %v1770_v38 = vpop.permute.xlu1 %1769  ;;  %v1782_v61 = vpop.permute.xlu0 %1781 }
 0x335   : > { %v1638_v58 = vpop.f32.mrb[0].mxu0 }
 0x336   : > { %v1640_v34 = vpop.f32.mrb[1].mxu0  ;;  %v1772_v30 = vmul.f32 %v1770_v38, %v1638_v58 }
 0x337   : > { %v1773_v7 = vmul.f32 %v1770_v38, %v1640_v34  ;;  %v1642_v43 = vpop.f32.mrb[2].mxu0 }
 0x338   : > { %v1784_v48 = vadd.f32 %v1782_v61, %v1772_v30  ;;  %v1643_v56 = vpop.f32.mrb[3].mxu0 }
 0x339   : > { %v1679_v46 = vpop.f32.mrb[0].mxu1  ;;  %v1785_v26 = vadd.f32 %v1782_v61, %v1773_v7 }
 0x33a   : > { %v1774_v40 = vmul.f32 %v1770_v38, %v1679_v46  ;;  %v1681_v22 = vpop.f32.mrb[1].mxu1  ;;  %v1791_v5 = vmul.f32 0.1, %v1784_v48 }
 0x33b   : > { %v1775_v49 = vmul.f32 %v1770_v38, %v1681_v22  ;;  %v1792_v41 = vmul.f32 0.1, %v1785_v26  ;;  %v1683_v35 = vpop.f32.mrb[2].mxu1 }
 0x33c   : > { %v1786_v39 = vadd.f32 %v1782_v61, %v1774_v40  ;;  %v1798_v16 = vmax.f32 %v1784_v48, %v1791_v5  ;;  %v1684_v0 = vpop.f32.mrb[3].mxu1 }
 0x33d   : > { %v1787_v51 = vadd.f32 %v1782_v61, %v1775_v49  ;;  %v1799_v20 = vmax.f32 %v1785_v26, %v1792_v41 }
 0x33e   : > { %v1793_v36 = vmul.f32 0.1, %v1786_v39 }
 0x33f   : > { %v1794_v14 = vmul.f32 0.1, %v1787_v51  ;;  %v1914_v29 = vpack.c.bf16 %v1799_v20, %v1798_v16 }
 0x340   : > { %v1800_v24 = vmax.f32 %v1786_v39, %v1793_v36 }
 0x341   : > { %v1801_v44 = vmax.f32 %v1787_v51, %v1794_v14  ;;  %1834 = vst [vmem:[%s3681_s29] sm:$0xff] %v1914_v29 }
 0x343   : > { %v1915_v28 = vpack.c.bf16 %v1801_v44, %v1800_v24 }
 0x345   : > { %1835 = vst [vmem:[%s3681_s29 + $0x8] sm:$0xff] %v1915_v28 }
 0x365   : > { %v1761_v37 = vpop.f32.mrb[4].mxu1 }
 0x366   : > { %v1778_v11 = vmul.f32 %v1770_v38, %v1761_v37  ;;  %v1720_v8 = vpop.f32.mrb[4].mxu0  ;;  %v1942_v6 = vpop.f32.mrb[5].mxu1 }
 0x367   : > { %v1776_v17 = vmul.f32 %v1770_v38, %v1720_v8  ;;  %v1722_v59 = vpop.f32.mrb[5].mxu0  ;;  %v1764_v3 = vpop.f32.mrb[6].mxu1 }
 0x368   : > { %v1790_v27 = vadd.f32 %v1782_v61, %v1778_v11  ;;  %v1777_v2 = vmul.f32 %v1770_v38, %v1722_v59  ;;  %v1724_v33 = vpop.f32.mrb[6].mxu0  ;;  %v1943_v32 = vpop.f32.mrb[7].mxu1 }
 0x369   : > { %v1788_v53 = vadd.f32 %v1782_v61, %v1776_v17  ;;  %v1725_v23 = vpop.f32.mrb[7].mxu0 }
 0x36a   : > { %v1797_v55 = vmul.f32 0.1, %v1790_v27  ;;  %v1789_v15 = vadd.f32 %v1782_v61, %v1777_v2 }
 0x36b   : > { %v1795_v19 = vmul.f32 0.1, %v1788_v53 }
 0x36c   : > { %v1804_v50 = vmax.f32 %v1790_v27, %v1797_v55  ;;  %v1796_v54 = vmul.f32 0.1, %v1789_v15 }
 0x36d   : > { %v1802_v42 = vmax.f32 %v1788_v53, %v1795_v19 }
 0x36e   : > { %v1917_v31 = vpack.c.bf16 %v1804_v50, %v1804_v50  ;;  %v1803_v13 = vmax.f32 %v1789_v15, %v1796_v54 }
 0x370   : > { %1838 = vst.msk [vmem:[%s3681_s29 + $0x18] sm:$0xf] %vm1837_vm5, %v1917_v31  ;;  %v1916_v52 = vpack.c.bf16 %v1803_v13, %v1802_v42 }
 0x372   : > { %1836 = vst [vmem:[%s3681_s29 + $0x10] sm:$0xff] %v1916_v52 }
 0x373 PF: > { %s14_s15 = sadd.s32 1, %s2003_s15  }
 0x374   : > { %p11_p4 = scmp.ge.s32.totalorder %s14_s15, 4  }
 0x376   :  { %13 = sbr.rel (!%p11_p4) target bundleno = 1 (0x1), region = 66 }

// kernel: cnn_block_forward.2
= control target key start
LH: loop header
LB: loop body
LE: loop exit
PB: predicated region body
PF: predicated region fallthrough
CT: control target
= control target key end

     0   :  { %s2156_s15 = smov 0   ;;  %s2158_s16 = smov 0   ;;  %s3844_s0 = inlined_call_operand.vmem [shape: bf16[2,4,1200], index: 0, kind: input, shape index: {}]   ;;  %s3845_s1 = inlined_call_operand.vmem [shape: bf16[8,108], index: 1, kind: input, shape index: {}]   ;;  %s3846_s2 = inlined_call_operand.vmem [shape: f32[1,800], index: 2, kind: input, shape index: {}]   ;;  %s3847_s3 = inlined_call_operand.vmem [shape: f32[2,8,1], index: 3, kind: output, shape index: {0}]   ;;  %s3848_s4 = inlined_call_operand.vmem [shape: f32[2,8,1], index: 4, kind: output, shape index: {1}]  }
   0x1   :  { %s2160_s17 = smov 0  }
   0x2 LB: > { %s27_s18 = sadd.s32 1, %s2098_s16  ;;  %p1975_p0 = scmp.ge.s32.totalorder %s2102_s17, 1  ;;  %s2102_s17 = sphi %s2160_s17, %s15_s17   ;;  %s2098_s16 = sphi %s2158_s16, %s4108_s16   ;;  %s2094_s15 = sphi %s2156_s15, %s4107_s15  }
   0x3   : > { %p29_p1 = scmp.ge.s32.totalorder %s27_s18, 2  ;;  %p181_p2 = scmp.lt.s32.totalorder %s2102_s17, 3 }
   0x5   : > { %s4110_s18 = smov (%p29_p1, %s27_s18), 0  ;;  %p182_p3 = pnand %p1975_p0, %p181_p2 }
   0x7   : > { %185 = sbr.rel (%p182_p3) target bundleno = 1028 (0x404), region = 32 }
   0xe   : > { %p212_p4 = scmp.lt.s32.totalorder %s2094_s15, 1  ;;  %v249_v0 = vlaneseq  ;;  %v2104_v1 = vmov 1983009808   ;;  %s2105_s23 = smov 49   ;;  %vm310_vm0 = vcmask 1039360   ;;  %vm723_vm1 = vcmask 1041408  }
   0xf   : > { %v247_v2 = vunpack.c.l.s4 %v2104_v1  ;;  %s2106_s24 = smov 127   ;;  %s2107_s25 = smov 48   ;;  %vm745_vm2 = vcmask 1043456   ;;  %vm760_vm3 = vcmask 1045504   ;;  %vm1031_vm4 = vcmask 392192  }
  0x10   : > { %s4112_s15 = smov (!%p212_p4, %s2094_s15), 1  ;;  %v2176_v3 = vshrl.u32 %v249_v0, 7  ;;  %s2108_s26 = smov 47   ;;  %vm992_vm5 = vcmask 400384   ;;  %vm3913_vm6 = vcmask 318464   ;;  %vm1099_vm7 = vcmask 310272  }
  0x11   : > { %v248_v4 = vunpack.c.0.s8 %v247_v2  ;;  %s2014_s19 = smul.u32 20, %s4112_s15  ;;  %s2109_s27 = smov 39   ;;  %vm1055_vm8 = vcmask 384000   ;;  %vm1120_vm9 = vcmask 302080   ;;  %vm566_vm10 = vcmask 228352  }
  0x12   : > { %3917 = vst [vmem:[#allocation2_spill] sm:$0xff] %v2176_v3  ;;  %s2110_s28 = smov 38   ;;  %s2111_s29 = smov 37   ;;  %vm607_vm11 = vcmask 220160   ;;  %vm1141_vm12 = vcmask 236544   ;;  %vm335_vm13 = vcmask 1031168  }
  0x13   : > { %v2180_v5 = vsub.s32 %v248_v4, %v2176_v3  ;;  %s2185_s22 = scalar_lea.vmem %s3844_s0, %s2014_s19  ;;  %s2112_s30 = smov 29   ;;  %vm377_vm14 = vcmask 965632   ;;  %vm436_vm15 = vcmask 949248  }
  0x14   : > { %v241_v6 = vld [vmem:[%s2185_s22 + $0x4] sm:$0xff]  ;;  %v242_v28 = vld [vmem:[%s2185_s22 + $0xc] sm:$0x3f]  ;;  %s2113_s5 = smov 28   ;;  %s2114_s6 = smov 27  }
  0x15   : > { %v2189_v7 = vld [vmem:[%s2185_s22 + $0x2] sm:$0xff]  ;;  %v2195_v9 = vrot.slane %v241_v6, %v2180_v5  ;;  %v999_v15 = vcombine.low %v241_v6, %v241_v6  ;;  %v944_v18 = vcombine.high %v241_v6, %v241_v6  ;;  %v2244_v23 = vld [vmem:[%s2185_s22 + $0xa] sm:$0x3f]  ;;  %v2268_v30 = vrot.slane %v242_v28, %v2180_v5  ;;  %s2115_s7 = smov 126   ;;  %s2116_s8 = smov 118  }
  0x16   : > { %v2192_v8 = vld [vmem:[%s2185_s22] sm:$0xff]  ;;  %v2199_v10 = vrot.slane %v2189_v7, %v2180_v5  ;;  %v519_v11 = vcombine.low %v2189_v7, %v2189_v7  ;;  %3918 = vst [vmem:[#allocation3_spill] sm:$0xff] %v2244_v23  ;;  %v536_v26 = vcombine.low %v2244_v23, %v2244_v23  ;;  %v1008_v33 = vcombine.low %v242_v28, %v242_v28  ;;  %v2453_v6 = vld [vmem:[%s2185_s22 + $0x8] sm:$0x3f]  ;;  %s2117_s9 = smov 117   ;;  %s2118_s10 = smov 116  }
  0x17   : > { %v278_v12 = vcombine.low %v2192_v8, %v2192_v8  ;;  %980 = vrot.lane.b32.xlu1 %v2195_v9, %s2105_s23  ;;  %v2225_v17 = vcombine.low %v2195_v9, %v2195_v9  ;;  %v1006_v19 = vrot.slane %v999_v15, %v2180_v5  ;;  %v2241_v22 = vrot.slane %v944_v18, %v2180_v5  ;;  %s2119_s11 = smov 108   ;;  %s2120_s12 = smov 107  }
  0x18   : > { %926 = vrot.lane.b32.xlu0 %v2199_v10, %s2106_s24  ;;  %v2210_v13 = vrot.slane %v519_v11, %v2180_v5  ;;  %v2221_v16 = vcombine.high %v2199_v10, %v2199_v10  ;;  %v2257_v27 = vrot.slane %v536_v26, %v2180_v5  ;;  %v2276_v31 = vcombine.low %v2268_v30, %v2268_v30  ;;  %s2121_s13 = smov 106   ;;  %s2122_s14 = smov 26  }
  0x19   : > { %v2213_v14 = vrot.slane %v278_v12, %v2180_v5  ;;  %v1007_v24 = vcombine.low %v1006_v19, %v1006_v19  ;;  %v960_v25 = vcombine.low %v2241_v22, %v2241_v22  ;;  %v1038_v32 = vcombine.high %v2195_v9, %v2195_v9  ;;  %s2123_s19 = smov 18   ;;  %s2124_s20 = smov 17  }
  0x1a   : > { %v2234_v20 = vcombine.high %v2210_v13, %v2210_v13  ;;  %v2265_v29 = vcombine.high %v2257_v27, %v2257_v27  ;;  %v1062_v34 = vcombine.high %v1006_v19, %v1006_v19  ;;  %v2291_v35 = vrot.slane %v1008_v33, %v2180_v5  ;;  %v2506_v33 = vld [vmem:[%s2185_s22 + $0x8] sm:$0xff]  ;;  %s2125_s21 = smov 16   ;;  %s2126_s22 = smov 8  }
  0x1b   : > { %922 = vrot.lane.b32.xlu1 %v2210_v13, %s2106_s24  ;;  %v2238_v21 = vcombine.high %v2213_v14, %v2213_v14  ;;  %v1039_v37 = vcombine.high %v2241_v22, %v2241_v22  ;;  %v961_v38 = vcombine.high %v242_v28, %v242_v28  ;;  %v2345_v39 = vrot.slane %v2244_v23, %v2180_v5 }
  0x1c   : > { %296 = vrot.lane.b32.xlu0 %v2213_v14, %s2106_s24  ;;  %3919 = vst [vmem:[#allocation4_spill] sm:$0xff] %v2265_v29  ;;  %v1016_v36 = vcombine.low %v2291_v35, %v2291_v35  ;;  %v1040_v42 = vcombine.high %v2268_v30, %v2268_v30  ;;  %v1063_v45 = vcombine.high %v2291_v35, %v2291_v35  ;;  %3926 = vst [vmem:[#allocation11_spill] sm:$0xff] %v2506_v33 }
  0x1d   : > { %v975_v40 = vrot.slane %v961_v38, %v2180_v5  ;;  %v245_v56 = vcombine.high %v2192_v8, %v2192_v8  ;;  %v2412_v57 = vrot.slane %v2192_v8, %v2180_v5  ;;  %v287_v11 = vcombine.low %v2453_v6, %v2453_v6 }
  0x1f   : > { %928 = vrot.lane.b32.xlu1 %v2221_v16, %s2106_s24  ;;  %v977_v41 = vcombine.low %v975_v40, %v975_v40  ;;  %3922 = vst [vmem:[#allocation7_spill] sm:$0xff] %v2412_v57  ;;  %v2419_v60 = vrot.slane %v245_v56, %v2180_v5  ;;  %v2426_v61 = vcombine.high %v2412_v57, %v2412_v57 }
  0x20   : > { %978 = vrot.lane.b32.xlu0 %v2225_v17, %s2105_s23  ;;  %v2450_v4 = vcombine.low %v2412_v57, %v2412_v57 }
  0x21   : > { %3923 = vst [vmem:[#allocation8_spill] sm:$0xff] %v2419_v60  ;;  %3924 = vst [vmem:[#allocation9_spill] sm:$0xff] %v2426_v61  ;;  %v2438_v0 = vcombine.low %v2419_v60, %v2419_v60 }
  0x23   : > { %924 = vrot.lane.b32.xlu1 %v2234_v20, %s2106_s24 }
  0x24   : > { %298 = vrot.lane.b32.xlu0 %v2238_v21, %s2106_s24 }
  0x27   : > { %1017 = vrot.lane.b32.xlu1 %v1007_v24, %s2107_s25 }
  0x28   : > { %982 = vrot.lane.b32.xlu0 %v960_v25, %s2105_s23 }
  0x2b   : > { %1021 = vrot.lane.b32.xlu1 %v2225_v17, %s2107_s25 }
  0x2c   : > { %1019 = vrot.lane.b32.xlu0 %v1006_v19, %s2107_s25 }
  0x2f   : > { %932 = vrot.lane.b32.xlu1 %v2265_v29, %s2106_s24 }
  0x30   : > { %930 = vrot.lane.b32.xlu0 %v2257_v27, %s2106_s24 }
  0x33   : > { %986 = vrot.lane.b32.xlu1 %v2276_v31, %s2105_s23 }
  0x34   : > { %984 = vrot.lane.b32.xlu0 %v2241_v22, %s2105_s23 }
  0x37   : > { %1043 = vrot.lane.b32.xlu1 %v1038_v32, %s2108_s26 }
  0x38   : > { %1041 = vrot.lane.b32.xlu0 %v2195_v9, %s2108_s26 }
  0x3b   : > { %1064 = vrot.lane.b32.xlu1 %v1006_v19, %s2109_s27 }
  0x3c   : > { %1045 = vrot.lane.b32.xlu0 %v2241_v22, %s2108_s26 }
  0x3f   : > { %1068 = vrot.lane.b32.xlu1 %v2195_v9, %s2109_s27 }
  0x40   : > { %1066 = vrot.lane.b32.xlu0 %v1062_v34, %s2109_s27 }
  0x43   : > { %1025 = vrot.lane.b32.xlu1 %v1016_v36, %s2107_s25 }
  0x44   : > { %1023 = vrot.lane.b32.xlu0 %v2195_v9, %s2107_s25 }
  0x47   : > { %1087 = vrot.lane.b32.xlu1 %v2195_v9, %s2110_s28 }
  0x48   : > { %1085 = vrot.lane.b32.xlu0 %v2225_v17, %s2110_s28 }
  0x4b   : > { %1106 = vrot.lane.b32.xlu1 %v1007_v24, %s2111_s29 }
  0x4c   : > { %1089 = vrot.lane.b32.xlu0 %v960_v25, %s2110_s28 }
  0x4f   : > { %1110 = vrot.lane.b32.xlu1 %v2225_v17, %s2111_s29 }
  0x50   : > { %1108 = vrot.lane.b32.xlu0 %v1006_v19, %s2111_s29 }
  0x53   : > { %1049 = vrot.lane.b32.xlu1 %v2268_v30, %s2108_s26 }
  0x54   : > { %1047 = vrot.lane.b32.xlu0 %v1039_v37, %s2108_s26 }
  0x57   : > { %1072 = vrot.lane.b32.xlu1 %v2291_v35, %s2109_s27 }
  0x58   : > { %1070 = vrot.lane.b32.xlu0 %v1038_v32, %s2109_s27 }
  0x5b   : > { %1093 = vrot.lane.b32.xlu1 %v2276_v31, %s2110_s28 }
  0x5c   : > { %1091 = vrot.lane.b32.xlu0 %v2241_v22, %s2110_s28 }
  0x5f   : > { %1114 = vrot.lane.b32.xlu1 %v1016_v36, %s2111_s29  ;;  %v2518_v36 = vcombine.high %v2419_v60, %v2419_v60 }
  0x60   : > { %1112 = vrot.lane.b32.xlu0 %v2195_v9, %s2111_s29 }
  0x61   : > { %3927 = vst [vmem:[#allocation12_spill] sm:$0xff] %v2518_v36 }
  0x63   : > { %1129 = vrot.lane.b32.xlu1 %v1038_v32, %s2112_s30 }
  0x64   : > { %1127 = vrot.lane.b32.xlu0 %v2195_v9, %s2112_s30 }
  0x67   : > { %1148 = vrot.lane.b32.xlu1 %v1006_v19, %s2113_s5 }
  0x68   : > { %1131 = vrot.lane.b32.xlu0 %v2241_v22, %s2112_s30 }
  0x6b   : > { %1152 = vrot.lane.b32.xlu1 %v2195_v9, %s2113_s5 }
  0x6c   : > { %1150 = vrot.lane.b32.xlu0 %v1062_v34, %s2113_s5 }
  0x6f   : > { %1170 = vrot.lane.b32.xlu1 %v2195_v9, %s2114_s6 }
  0x70   : > { %1168 = vrot.lane.b32.xlu0 %v2225_v17, %s2114_s6  ;;  %v294_v17 = vrot.slane %v287_v11, %v2180_v5 }
  0x72   : > { %v295_v24 = vcombine.high %v294_v17, %v294_v17 }
  0x73   : > { %1133 = vrot.lane.b32.xlu1 %v1039_v37, %s2112_s30  ;;  %v344_v37 = vcombine.low %v2506_v33, %v2506_v33 }
  0x74   : > { %1172 = vrot.lane.b32.xlu0 %v960_v25, %s2114_s6  ;;  %v2487_v25 = vcombine.low %v2213_v14, %v2213_v14 }
  0x77   : > { %1154 = vrot.lane.b32.xlu1 %v1038_v32, %s2113_s5 }
  0x78   : > { %1135 = vrot.lane.b32.xlu0 %v2268_v30, %s2112_s30 }
  0x7b   : > { %1174 = vrot.lane.b32.xlu1 %v2241_v22, %s2114_s6  ;;  %v2482_v22 = vrot.slane %v2453_v6, %v2180_v5 }
  0x7c   : > { %1156 = vrot.lane.b32.xlu0 %v2291_v35, %s2113_s5 }
  0x7d   : > { %3925 = vst [vmem:[#allocation10_spill] sm:$0xff] %v2482_v22 }
  0x7f   : > { %934 = vrot.lane.b32.xlu1 %v2345_v39, %s2106_s24 }
  0x80   : > { %1176 = vrot.lane.b32.xlu0 %v2276_v31, %s2114_s6 }
  0x83   : > { %990 = vrot.lane.b32.xlu1 %v977_v41, %s2105_s23 }
  0x84   : > { %988 = vrot.lane.b32.xlu0 %v2268_v30, %s2105_s23  ;;  %s2127_s23 = smov 7  }
  0x87   : > { %1029 = vrot.lane.b32.xlu1 %v2276_v31, %s2107_s25 }
  0x88   : > { %1027 = vrot.lane.b32.xlu0 %v2291_v35, %s2107_s25 }
  0x89   : > { %v2365_v43 = vpop.permute.xlu1 %980 }
  0x8a   : > { %v2367_v44 = vpop.permute.xlu0 %926 }
  0x8b   : > { %1053 = vrot.lane.b32.xlu1 %v975_v40, %s2108_s26 }
  0x8c   : > { %1051 = vrot.lane.b32.xlu0 %v1040_v42, %s2108_s26  ;;  %s1977_s26 = sshll.u32 %s4112_s15, 3 }
  0x8d   : > { %v2373_v46 = vpop.permute.xlu1 %922 }
  0x8e   : > { %v2375_v47 = vpop.permute.xlu0 %296 }
  0x8f   : > { %3920 = vst [vmem:[#allocation5_spill] sm:$0xff] %v2375_v47  ;;  %1076 = vrot.lane.b32.xlu1 %v2268_v30, %s2109_s27 }
  0x90   : > { %1074 = vrot.lane.b32.xlu0 %v1063_v45, %s2109_s27 }
  0x91   : > { %v2380_v48 = vpop.permute.xlu1 %928 }
  0x92   : > { %v2382_v49 = vpop.permute.xlu0 %978 }
  0x93   : > { %1097 = vrot.lane.b32.xlu1 %v977_v41, %s2110_s28 }
  0x94   : > { %1095 = vrot.lane.b32.xlu0 %v2268_v30, %s2110_s28 }
  0x95   : > { %v2387_v50 = vpop.permute.xlu1 %924 }
  0x96   : > { %v2389_v51 = vpop.permute.xlu0 %298 }
  0x97   : > { %3921 = vst [vmem:[#allocation6_spill] sm:$0xff] %v2389_v51  ;;  %1118 = vrot.lane.b32.xlu1 %v2276_v31, %s2111_s29 }
  0x98   : > { %1116 = vrot.lane.b32.xlu0 %v2291_v35, %s2111_s29  ;;  %s3807_s29 = scalar_lea.vmem %s3847_s3, %s1977_s26 }
  0x99   : > { %v2395_v52 = vpop.permute.xlu1 %1017 }
  0x9a   : > { %v2397_v53 = vpop.permute.xlu0 %982 }
  0x9b   : > { %1139 = vrot.lane.b32.xlu1 %v975_v40, %s2112_s30 }
  0x9c   : > { %1137 = vrot.lane.b32.xlu0 %v1040_v42, %s2112_s30 }
  0x9d   : > { %v2401_v54 = vpop.permute.xlu1 %1021 }
  0x9e   : > { %v2403_v55 = vpop.permute.xlu0 %1019 }
  0x9f   : > { %1160 = vrot.lane.b32.xlu1 %v2268_v30, %s2113_s5 }
  0xa0   : > { %1158 = vrot.lane.b32.xlu0 %v1063_v45, %s2113_s5 }
  0xa1   : > { %v2414_v58 = vpop.permute.xlu1 %932 }
  0xa2   : > { %v2416_v59 = vpop.permute.xlu0 %930 }
  0xa3   : > { %1180 = vrot.lane.b32.xlu1 %v977_v41, %s2114_s6  ;;  %v2531_v41 = vrot.slane %v344_v37, %v2180_v5 }
  0xa4   : > { %1178 = vrot.lane.b32.xlu0 %v2268_v30, %s2114_s6  ;;  %v319_v30 = vcombine.low %v2482_v22, %v2482_v22 }
  0xa5   : > { %v2428_v62 = vpop.permute.xlu1 %986  ;;  %v359_v56 = vcombine.low %v2531_v41, %v2531_v41 }
  0xa6   : > { %v2430_v63 = vpop.permute.xlu0 %984 }
  0xa7   : > { %302 = vrot.lane.b32.xlu1 %v2426_v61, %s2106_s24 }
  0xa8   : > { %300 = vrot.lane.b32.xlu0 %v2412_v57, %s2106_s24 }
  0xa9   : > { %v2440_v1 = vpop.permute.xlu1 %1043 }
  0xaa   : > { %v2442_v2 = vpop.permute.xlu0 %1041 }
  0xab   : > { %325 = vrot.lane.b32.xlu1 %v2438_v0, %s2115_s7 }
  0xac   : > { %323 = vrot.lane.b32.xlu0 %v2412_v57, %s2115_s7 }
  0xad   : > { %v2455_v8 = vpop.permute.xlu1 %1064 }
  0xae   : > { %v2457_v9 = vpop.permute.xlu0 %1045 }
  0xaf   : > { %321 = vrot.lane.b32.xlu1 %v2450_v4, %s2115_s7 }
  0xb0   : > { %327 = vrot.lane.b32.xlu0 %v2419_v60, %s2115_s7 }
  0xb1   : > { %v2465_v12 = vpop.permute.xlu1 %1068 }
  0xb2   : > { %v2467_v15 = vpop.permute.xlu0 %1066 }
  0xb3   : > { %365 = vrot.lane.b32.xlu1 %v2450_v4, %s2116_s8 }
  0xb4   : > { %363 = vrot.lane.b32.xlu0 %v2213_v14, %s2116_s8 }
  0xb5   : > { %v2474_v18 = vpop.permute.xlu1 %1025 }
  0xb6   : > { %v2476_v19 = vpop.permute.xlu0 %1023 }
  0xb7   : > { %304 = vrot.lane.b32.xlu1 %v294_v17, %s2106_s24 }
  0xb8   : > { %367 = vrot.lane.b32.xlu0 %v2412_v57, %s2116_s8 }
  0xb9   : > { %v2489_v26 = vpop.permute.xlu1 %1087 }
  0xba   : > { %v2491_v28 = vpop.permute.xlu0 %1085 }
  0xbb   : > { %361 = vrot.lane.b32.xlu1 %v2487_v25, %s2116_s8 }
  0xbc   : > { %306 = vrot.lane.b32.xlu0 %v295_v24, %s2106_s24 }
  0xbd   : > { %v2498_v31 = vpop.permute.xlu1 %1106 }
  0xbe   : > { %v2500_v32 = vpop.permute.xlu0 %1089 }
  0xbf   : > { %331 = vrot.lane.b32.xlu1 %v2482_v22, %s2115_s7 }
  0xc0   : > { %329 = vrot.lane.b32.xlu0 %v319_v30, %s2115_s7 }
  0xc1   : > { %v2508_v34 = vpop.permute.xlu1 %1110 }
  0xc2   : > { %v2510_v35 = vpop.permute.xlu0 %1108 }
  0xc3   : > { %399 = vrot.lane.b32.xlu1 %v2419_v60, %s2117_s9 }
  0xc4   : > { %397 = vrot.lane.b32.xlu0 %v2426_v61, %s2117_s9 }
  0xc5   : > { %v2522_v38 = vpop.permute.xlu1 %1049 }
  0xc6   : > { %v2524_v40 = vpop.permute.xlu0 %1047 }
  0xc7   : > { %422 = vrot.lane.b32.xlu1 %v2238_v21, %s2118_s10 }
  0xc8   : > { %401 = vrot.lane.b32.xlu0 %v2518_v36, %s2117_s9 }
  0xc9   : > { %v2533_v42 = vpop.permute.xlu1 %1072 }
  0xca   : > { %v2535_v45 = vpop.permute.xlu0 %1070 }
  0xcb   : > { %426 = vrot.lane.b32.xlu1 %v2426_v61, %s2118_s10 }
  0xcc   : > { %424 = vrot.lane.b32.xlu0 %v2412_v57, %s2118_s10 }
  0xcd   : > { %v2543_v21 = vpop.permute.xlu1 %1093 }
  0xce   : > { %v2545_v11 = vpop.permute.xlu0 %1091 }
  0xcf   : > { %371 = vrot.lane.b32.xlu1 %v2531_v41, %s2116_s8 }
  0xd0   : > { %369 = vrot.lane.b32.xlu0 %v359_v56, %s2116_s8 }
  0xd1   : > { %v2550_v17 = vpop.permute.xlu1 %1114 }
  0xd2   : > { %v2552_v24 = vpop.permute.xlu0 %1112 }
  0xd3   : > { %420 = vrot.lane.b32.xlu1 %v2213_v14, %s2118_s10 }
  0xd4   : > { %395 = vrot.lane.b32.xlu0 %v2412_v57, %s2117_s9 }
  0xd5   : > { %v2558_v30 = vpop.permute.xlu1 %1129 }
  0xd6   : > { %3928 = vst [vmem:[#allocation13_spill] sm:$0xff] %v2558_v30  ;;  %v2560_v37 = vpop.permute.xlu0 %1127 }
  0xd7   : > { %449 = vrot.lane.b32.xlu1 %v2438_v0, %s2119_s11  ;;  %v2580_v0 = vrot.slane %v2506_v33, %v2180_v5 }
  0xd8   : > { %447 = vrot.lane.b32.xlu0 %v2412_v57, %s2119_s11 }
  0xd9   : > { %v2566_v3 = vpop.permute.xlu1 %1148  ;;  %v2596_v33 = vcombine.high %v2580_v0, %v2580_v0 }
  0xda   : > { %v2568_v47 = vpop.permute.xlu0 %1131 }
  0xdb   : > { %3929 = vst [vmem:[#allocation14_spill] sm:$0xff] %v2568_v47  ;;  %445 = vrot.lane.b32.xlu1 %v2450_v4, %s2119_s11 }
  0xdc   : > { %451 = vrot.lane.b32.xlu0 %v2419_v60, %s2119_s11 }
  0xdd   : > { %v2574_v51 = vpop.permute.xlu1 %1152 }
  0xde   : > { %v2576_v29 = vpop.permute.xlu0 %1150 }
  0xdf   : > { %473 = vrot.lane.b32.xlu1 %v2450_v4, %s2120_s12 }
  0xe0   : > { %471 = vrot.lane.b32.xlu0 %v2213_v14, %s2120_s12  ;;  %v419_v14 = vcombine.high %v2531_v41, %v2531_v41 }
  0xe1   : > { %v2586_v23 = vpop.permute.xlu1 %1170 }
  0xe2   : > { %3930 = vst [vmem:[#allocation15_spill] sm:$0xff] %v2586_v23  ;;  %v2588_v22 = vpop.permute.xlu0 %1168 }
  0xe3   : > { %3931 = vst [vmem:[#allocation16_spill] sm:$0xff] %v2588_v22  ;;  %403 = vrot.lane.b32.xlu1 %v2580_v0, %s2117_s9 }
  0xe4   : > { %475 = vrot.lane.b32.xlu0 %v2412_v57, %s2120_s12 }
  0xe5   : > { %v2598_v47 = vpop.permute.xlu1 %1133 }
  0xe6   : > { %3932 = vst [vmem:[#allocation17_spill] sm:$0xff] %v2598_v47  ;;  %v2600_v4 = vpop.permute.xlu0 %1172  ;;  %v2617_v47 = vcombine.low %v2580_v0, %v2580_v0 }
  0xe7   : > { %3933 = vst [vmem:[#allocation18_spill] sm:$0xff] %v2600_v4  ;;  %428 = vrot.lane.b32.xlu1 %v2531_v41, %s2118_s10 }
  0xe8   : > { %405 = vrot.lane.b32.xlu0 %v2596_v33, %s2117_s9  ;;  %3936 = vst [vmem:[#allocation21_spill] sm:$0xff] %v2617_v47 }
  0xe9   : > { %v2608_v30 = vpop.permute.xlu1 %1154 }
  0xea   : > { %3934 = vst [vmem:[#allocation19_spill] sm:$0xff] %v2608_v30  ;;  %v2610_v23 = vpop.permute.xlu0 %1135 }
  0xeb   : > { %3935 = vst [vmem:[#allocation20_spill] sm:$0xff] %v2610_v23  ;;  %469 = vrot.lane.b32.xlu1 %v2487_v25, %s2120_s12 }
  0xec   : > { %430 = vrot.lane.b32.xlu0 %v419_v14, %s2118_s10 }
  0xed   : > { %v2619_v4 = vpop.permute.xlu1 %1174 }
  0xee   : > { %v2621_v22 = vpop.permute.xlu0 %1156 }
  0xef   : > { %455 = vrot.lane.b32.xlu1 %v2580_v0, %s2119_s11 }
  0xf0   : > { %453 = vrot.lane.b32.xlu0 %v2617_v47, %s2119_s11 }
  0xf1   : > { %v2627_v23 = vpop.permute.xlu1 %934 }
  0xf2   : > { %3937 = vst [vmem:[#allocation22_spill] sm:$0xff] %v2627_v23  ;;  %v2629_v30 = vpop.permute.xlu0 %1176 }
  0xf3   : > { %497 = vrot.lane.b32.xlu1 %v2419_v60, %s2121_s13  ;;  %v573_v60 = vcombine.high %v2189_v7, %v2189_v7 }
  0xf4   : > { %495 = vrot.lane.b32.xlu0 %v2426_v61, %s2121_s13 }
  0xf5   : > { %v2635_v25 = vpop.permute.xlu1 %990 }
  0xf6   : > { %3938 = vst [vmem:[#allocation23_spill] sm:$0xff] %v2635_v25  ;;  %v2637_v14 = vpop.permute.xlu0 %988 }
  0xf7   : > { %3939 = vst [vmem:[#allocation24_spill] sm:$0xff] %v2637_v14  ;;  %552 = vrot.lane.b32.xlu1 %v2210_v13, %s2113_s5 }
  0xf8   : > { %499 = vrot.lane.b32.xlu0 %v2518_v36, %s2121_s13  ;;  %v2662_v36 = vcombine.low %v2199_v10, %v2199_v10 }
  0xf9   : > { %v2643_v23 = vpop.permute.xlu1 %1029 }
  0xfa   : > { %3940 = vst [vmem:[#allocation25_spill] sm:$0xff] %v2643_v23  ;;  %v2645_v47 = vpop.permute.xlu0 %1027 }
  0xfb   : > { %3941 = vst [vmem:[#allocation26_spill] sm:$0xff] %v2645_v47  ;;  %556 = vrot.lane.b32.xlu1 %v2199_v10, %s2113_s5  ;;  %v2665_v47 = vrot.slane %v573_v60, %v2180_v5  ;;  %v614_v60 = vcombine.low %v2210_v13, %v2210_v13 }
  0xfc   : > { %554 = vrot.lane.b32.xlu0 %v2234_v20, %s2113_s5 }
  0xfd   : > { %v2653_v61 = vpop.permute.xlu1 %1053  ;;  %v582_v7 = vcombine.low %v2665_v47, %v2665_v47 }
  0xfe   : > { %3942 = vst [vmem:[#allocation27_spill] sm:$0xff] %v2653_v61  ;;  %v2655_v14 = vpop.permute.xlu0 %1051 }
  0xff   : > { %3943 = vst [vmem:[#allocation28_spill] sm:$0xff] %v2655_v14  ;;  %479 = vrot.lane.b32.xlu1 %v2531_v41, %s2120_s12 }
 0x100   : > { %477 = vrot.lane.b32.xlu0 %v359_v56, %s2120_s12 }
 0x101   : > { %v2667_v23 = vpop.permute.xlu1 %1076 }
 0x102   : > { %3944 = vst [vmem:[#allocation29_spill] sm:$0xff] %v2667_v23  ;;  %v2669_v25 = vpop.permute.xlu0 %1074 }
 0x103   : > { %593 = vrot.lane.b32.xlu1 %v2662_v36, %s2114_s6 }
 0x104   : > { %493 = vrot.lane.b32.xlu0 %v2412_v57, %s2121_s13 }
 0x105   : > { %v2677_v41 = vpop.permute.xlu1 %1097 }
 0x106   : > { %3945 = vst [vmem:[#allocation30_spill] sm:$0xff] %v2677_v41  ;;  %v2679_v56 = vpop.permute.xlu0 %1095 }
 0x107   : > { %3946 = vst [vmem:[#allocation31_spill] sm:$0xff] %v2679_v56  ;;  %597 = vrot.lane.b32.xlu1 %v582_v7, %s2114_s6 }
 0x108   : > { %595 = vrot.lane.b32.xlu0 %v2199_v10, %s2114_s6 }
 0x109   : > { %v2686_v61 = vpop.permute.xlu1 %1118 }
 0x10a   : > { %3947 = vst [vmem:[#allocation32_spill] sm:$0xff] %v2686_v61  ;;  %v2688_v14 = vpop.permute.xlu0 %1116 }
 0x10b   : > { %3948 = vst [vmem:[#allocation33_spill] sm:$0xff] %v2688_v14  ;;  %618 = vrot.lane.b32.xlu1 %v2210_v13, %s2122_s14 }
 0x10c   : > { %616 = vrot.lane.b32.xlu0 %v614_v60, %s2122_s14 }
 0x10d   : > { %v2693_v57 = vpop.permute.xlu1 %1139 }
 0x10e   : > { %3949 = vst [vmem:[#allocation34_spill] sm:$0xff] %v2693_v57  ;;  %v2695_v41 = vpop.permute.xlu0 %1137 }
 0x10f   : > { %3950 = vst [vmem:[#allocation35_spill] sm:$0xff] %v2695_v41  ;;  %501 = vrot.lane.b32.xlu1 %v2580_v0, %s2121_s13  ;;  %v2719_v41 = vcombine.low %v2345_v39, %v2345_v39 }
 0x110   : > { %620 = vrot.lane.b32.xlu0 %v2662_v36, %s2122_s14 }
 0x111   : > { %v2701_v56 = vpop.permute.xlu1 %1160 }
 0x112   : > { %3951 = vst [vmem:[#allocation36_spill] sm:$0xff] %v2701_v56  ;;  %v2703_v61 = vpop.permute.xlu0 %1158 }
 0x113   : > { %3952 = vst [vmem:[#allocation37_spill] sm:$0xff] %v2703_v61  ;;  %558 = vrot.lane.b32.xlu1 %v2221_v16, %s2113_s5 }
 0x114   : > { %503 = vrot.lane.b32.xlu0 %v2596_v33, %s2121_s13 }
 0x115   : > { %v2709_v14 = vpop.permute.xlu1 %1180 }
 0x116   : > { %3953 = vst [vmem:[#allocation38_spill] sm:$0xff] %v2709_v14  ;;  %v2711_v57 = vpop.permute.xlu0 %1178 }
 0x117   : > { %3954 = vst [vmem:[#allocation39_spill] sm:$0xff] %v2711_v57  ;;  %599 = vrot.lane.b32.xlu1 %v2665_v47, %s2114_s6 }
 0x118   : > { %560 = vrot.lane.b32.xlu0 %v2257_v27, %s2113_s5 }
 0x119   : > { %v2723_v61 = vpop.permute.xlu1 %302 }
 0x11a   : > { %v2721_v56 = vpop.permute.xlu0 %300  ;;  %3956 = vst [vmem:[#allocation41_spill] sm:$0xff] %v2723_v61 }
 0x11b   : > { %3955 = vst [vmem:[#allocation40_spill] sm:$0xff] %v2721_v56  ;;  %639 = vrot.lane.b32.xlu1 %v2199_v10, %s2123_s19 }
 0x11c   : > { %601 = vrot.lane.b32.xlu0 %v2719_v41, %s2114_s6 }
 0x11d   : > { %v2731_v57 = vpop.permute.xlu1 %325 }
 0x11e   : > { %v2729_v14 = vpop.permute.xlu0 %323  ;;  %3958 = vst [vmem:[#allocation43_spill] sm:$0xff] %v2731_v57 }
 0x11f   : > { %3957 = vst [vmem:[#allocation42_spill] sm:$0xff] %v2729_v14  ;;  %643 = vrot.lane.b32.xlu1 %v2665_v47, %s2123_s19 }
 0x120   : > { %641 = vrot.lane.b32.xlu0 %v2221_v16, %s2123_s19 }
 0x121   : > { %v2739_v61 = vpop.permute.xlu1 %321 }
 0x122   : > { %v2737_v56 = vpop.permute.xlu0 %327  ;;  %3960 = vst [vmem:[#allocation45_spill] sm:$0xff] %v2739_v61  ;;  %v615_v61 = vcombine.low %v2257_v27, %v2257_v27 }
 0x123   : > { %3959 = vst [vmem:[#allocation44_spill] sm:$0xff] %v2737_v56  ;;  %662 = vrot.lane.b32.xlu1 %v2234_v20, %s2124_s20 }
 0x124   : > { %660 = vrot.lane.b32.xlu0 %v2210_v13, %s2124_s20 }
 0x125   : > { %v2747_v57 = vpop.permute.xlu1 %365 }
 0x126   : > { %v2745_v14 = vpop.permute.xlu0 %363  ;;  %3962 = vst [vmem:[#allocation47_spill] sm:$0xff] %v2747_v57 }
 0x127   : > { %3961 = vst [vmem:[#allocation46_spill] sm:$0xff] %v2745_v14  ;;  %622 = vrot.lane.b32.xlu1 %v2199_v10, %s2122_s14 }
 0x128   : > { %664 = vrot.lane.b32.xlu0 %v2199_v10, %s2124_s20 }
 0x129   : > { %v2757_v23 = vpop.permute.xlu1 %304 }
 0x12a   : > { %v2755_v56 = vpop.permute.xlu0 %367  ;;  %3964 = vst [vmem:[#allocation49_spill] sm:$0xff] %v2757_v23 }
 0x12b   : > { %3963 = vst [vmem:[#allocation48_spill] sm:$0xff] %v2755_v56  ;;  %681 = vrot.lane.b32.xlu1 %v2662_v36, %s2125_s21 }
 0x12c   : > { %624 = vrot.lane.b32.xlu0 %v615_v61, %s2122_s14 }
 0x12d   : > { %v2764_v14 = vpop.permute.xlu1 %361 }
 0x12e   : > { %v2762_v20 = vpop.permute.xlu0 %306  ;;  %3966 = vst [vmem:[#allocation51_spill] sm:$0xff] %v2764_v14 }
 0x12f   : > { %3965 = vst [vmem:[#allocation50_spill] sm:$0xff] %v2762_v20  ;;  %685 = vrot.lane.b32.xlu1 %v582_v7, %s2125_s21  ;;  %v637_v20 = vcombine.high %v2665_v47, %v2665_v47 }
 0x130   : > { %683 = vrot.lane.b32.xlu0 %v2199_v10, %s2125_s21 }
 0x131   : > { %v2771_v56 = vpop.permute.xlu1 %331 }
 0x132   : > { %v2769_v57 = vpop.permute.xlu0 %329  ;;  %3967 = vst [vmem:[#allocation52_spill] sm:$0xff] %v2771_v56 }
 0x133   : > { %704 = vrot.lane.b32.xlu1 %v2210_v13, %s2126_s22  ;;  %v936_v13 = vsel %vm310_vm0, %v2373_v46, %v2387_v50  ;;  %v937_v46 = vsel %vm310_vm0, %v2387_v50, %v2367_v44  ;;  %v994_v50 = vsel %vm992_vm5, %v2365_v43, %v2397_v53 }
 0x134   : > { %702 = vrot.lane.b32.xlu0 %v614_v60, %s2126_s22 }
 0x135   : > { %v2780_v14 = vpop.permute.xlu1 %399 }
 0x136   : > { %v2778_v23 = vpop.permute.xlu0 %397  ;;  %3969 = vst [vmem:[#allocation54_spill] sm:$0xff] %v2780_v14 }
 0x137   : > { %3968 = vst [vmem:[#allocation53_spill] sm:$0xff] %v2778_v23  ;;  %645 = vrot.lane.b32.xlu1 %v637_v20, %s2123_s19 }
 0x138   : > { %706 = vrot.lane.b32.xlu0 %v2662_v36, %s2126_s22  ;;  %v1190_v36 = vsel %vm723_vm1, %v2199_v10, %v936_v13  ;;  %v938_v13 = vsel %vm310_vm0, %v2367_v44, %v2380_v48  ;;  %v1033_v44 = vsel %vm1031_vm4, %v2403_v55, %v2401_v54 }
 0x139   : > { %v2785_v7 = vpop.permute.xlu1 %422 }
 0x13a   : > { %3970 = vst [vmem:[#allocation55_spill] sm:$0xff] %v2785_v7  ;;  %v2787_v56 = vpop.permute.xlu0 %401 }
 0x13b   : > { %3971 = vst [vmem:[#allocation56_spill] sm:$0xff] %v2787_v56  ;;  %666 = vrot.lane.b32.xlu1 %v2221_v16, %s2124_s20 }
 0x13c   : > { %647 = vrot.lane.b32.xlu0 %v2345_v39, %s2123_s19 }
 0x13d   : > { %v2796_v60 = vpop.permute.xlu1 %426 }
 0x13e   : > { %3972 = vst [vmem:[#allocation57_spill] sm:$0xff] %v2796_v60  ;;  %v2798_v23 = vpop.permute.xlu0 %424  ;;  %v1210_v60 = vsel %vm745_vm2, %v1190_v36, %v2382_v49 }
 0x13f   : > { %3973 = vst [vmem:[#allocation58_spill] sm:$0xff] %v2798_v23  ;;  %687 = vrot.lane.b32.xlu1 %v2665_v47, %s2125_s21  ;;  %v1224_v36 = vsel %vm760_vm3, %v1210_v60, %v2395_v52  ;;  %v1032_v23 = vsel %vm1031_vm4, %v2395_v52, %v2403_v55  ;;  %v993_v60 = vsel %vm992_vm5, %v2382_v49, %v2365_v43 }
 0x140   : > { %668 = vrot.lane.b32.xlu0 %v2257_v27, %s2124_s20  ;;  %v939_v52 = vsel %vm310_vm0, %v2380_v48, %v2416_v59  ;;  %v940_v55 = vsel %vm310_vm0, %v2416_v59, %v2414_v58  ;;  %v995_v43 = vsel %vm992_vm5, %v2397_v53, %v2430_v63  ;;  %v996_v48 = vsel %vm992_vm5, %v2430_v63, %v2428_v62 }
 0x141   : > { %v2806_v56 = vpop.permute.xlu1 %371  ;;  %v1199_v53 = vsel %vm723_vm1, %v637_v20, %v939_v52  ;;  %v1202_v63 = vsel %vm723_vm1, %v2345_v39, %v940_v55  ;;  %v1100_v20 = vsel %vm1099_vm7, %v2491_v28, %v2489_v26  ;;  %v1056_v52 = vsel %vm1055_vm8, %v2442_v2, %v2440_v1 }
 0x142   : > { %3974 = vst [vmem:[#allocation59_spill] sm:$0xff] %v2806_v56  ;;  %v2808_v14 = vpop.permute.xlu0 %369  ;;  %v1121_v55 = vsel %vm1120_vm9, %v2498_v31, %v2510_v35 }
 0x143   : > { %708 = vrot.lane.b32.xlu1 %v2199_v10, %s2126_s22  ;;  %v1193_v10 = vsel %vm723_vm1, %v2221_v16, %v937_v46  ;;  %v1196_v16 = vsel %vm723_vm1, %v2665_v47, %v938_v13  ;;  %v1034_v13 = vsel %vm1031_vm4, %v2401_v54, %v2476_v19 }
 0x144   : > { %689 = vrot.lane.b32.xlu0 %v2719_v41, %s2125_s21  ;;  %v1212_v47 = vsel %vm745_vm2, %v1193_v10, %v993_v60  ;;  %v1035_v10 = vsel %vm1031_vm4, %v2476_v19, %v2474_v18  ;;  %v1218_v19 = vsel %vm745_vm2, %v1202_v63, %v996_v48  ;;  %v1080_v48 = vsel %vm3913_vm6, %v2467_v15, %v2465_v12 }
 0x145   : > { %v2822_v56 = vpop.permute.xlu1 %420  ;;  %v1226_v59 = vsel %vm760_vm3, %v1212_v47, %v1032_v23  ;;  %v1079_v23 = vsel %vm3913_vm6, %v2455_v8, %v2467_v15  ;;  %v1057_v47 = vsel %vm1055_vm8, %v2440_v1, %v2457_v9  ;;  %v1101_v1 = vsel %vm1099_vm7, %v2489_v26, %v2500_v32 }
 0x146   : > { %v2824_v7 = vpop.permute.xlu0 %395  ;;  %v1102_v15 = vsel %vm1099_vm7, %v2500_v32, %v2545_v11  ;;  %v1123_v26 = vsel %vm1120_vm9, %v2508_v34, %v2552_v24  ;;  %v1245_v32 = vsel %vm723_vm1, %v1057_v47, %v1080_v48  ;;  %v3975_v47 = vld [vmem:[#allocation16_spill] sm:$0xff] }
 0x147   : > { %1342 = vrot.lane.b32.xlu1 %v1224_v36, %s2127_s23 }
 0x148   : > { %710 = vrot.lane.b32.xlu0 %v615_v61, %s2126_s22  ;;  %v1214_v61 = vsel %vm745_vm2, %v1196_v16, %v994_v50  ;;  %v1232_v16 = vsel %vm760_vm3, %v1218_v19, %v1035_v10  ;;  %v1103_v19 = vsel %vm1099_vm7, %v2545_v11, %v2543_v21 }
 0x149   : > { %v2852_v46 = vpop.permute.xlu1 %449  ;;  %v1228_v49 = vsel %vm760_vm3, %v1214_v61, %v1033_v44  ;;  %v1216_v44 = vsel %vm745_vm2, %v1199_v53, %v995_v43  ;;  %v1239_v61 = vsel %vm723_vm1, %v2442_v2, %v2455_v8  ;;  %v1242_v43 = vsel %vm723_vm1, %v1056_v52, %v1079_v23 }
 0x14a   : > { %v2854_v36 = vpop.permute.xlu0 %447  ;;  %v1230_v60 = vsel %vm760_vm3, %v1216_v44, %v1034_v13  ;;  %v1261_v8 = vsel %vm745_vm2, %v1242_v43, %v1100_v20  ;;  %v1058_v53 = vsel %vm1055_vm8, %v2457_v9, %v2524_v40 }
 0x14b   : > { %1346 = vrot.lane.b32.xlu1 %v1228_v49, %s2127_s23  ;;  %v1259_v49 = vsel %vm745_vm2, %v1239_v61, %v2491_v28  ;;  %v1275_v28 = vsel %vm760_vm3, %v1261_v8, %v1121_v55  ;;  %v1163_v61 = vsel %vm566_vm10, %v2576_v29, %v2574_v51  ;;  %v3977_v8 = vld [vmem:[#allocation18_spill] sm:$0xff] }
 0x14c   : > { %1344 = vrot.lane.b32.xlu0 %v1226_v59, %s2127_s23  ;;  %v1081_v59 = vsel %vm3913_vm6, %v2465_v12, %v2535_v45  ;;  %v1273_v10 = vsel %vm760_vm3, %v1259_v49, %v2498_v31  ;;  %v1122_v12 = vsel %vm1120_vm9, %v2510_v35, %v2508_v34  ;;  %v1082_v35 = vsel %vm3913_vm6, %v2535_v45, %v2533_v42  ;;  %v3976_v49 = vld [vmem:[#allocation15_spill] sm:$0xff] }
 0x14d   : > { %v2880_v54 = vpop.permute.xlu1 %445  ;;  %v1248_v31 = vsel %vm723_vm1, %v1058_v53, %v1081_v59  ;;  %v1263_v34 = vsel %vm745_vm2, %v1245_v32, %v1101_v1  ;;  %v1059_v45 = vsel %vm1055_vm8, %v2524_v40, %v2522_v38  ;;  %v1182_v59 = vsel %vm607_vm11, %v3975_v47, %v3976_v49 }
 0x14e   : > { %v2882_v50 = vpop.permute.xlu0 %451  ;;  %v1265_v9 = vsel %vm745_vm2, %v1248_v31, %v1102_v15  ;;  %v1277_v20 = vsel %vm760_vm3, %v1263_v34, %v1122_v12  ;;  %v1251_v11 = vsel %vm723_vm1, %v1059_v45, %v1082_v35  ;;  %v1183_v1 = vsel %vm607_vm11, %v3976_v49, %v3977_v8 }
 0x14f   : > { %1350 = vrot.lane.b32.xlu1 %v1232_v16, %s2127_s23  ;;  %v1279_v44 = vsel %vm760_vm3, %v1265_v9, %v1123_v26  ;;  %v262_v16 = vcombine.high %v2453_v6, %v2453_v6  ;;  %v1288_v6 = vsel %vm723_vm1, %v2560_v37, %v2566_v3  ;;  %v1267_v55 = vsel %vm745_vm2, %v1251_v11, %v1103_v19  ;;  %v3981_v19 = vld [vmem:[#allocation11_spill] sm:$0xff] }
 0x150   : > { %1348 = vrot.lane.b32.xlu0 %v1230_v60, %s2127_s23  ;;  %v1124_v60 = vsel %vm1120_vm9, %v2552_v24, %v2550_v17  ;;  %v1162_v24 = vsel %vm566_vm10, %v2566_v3, %v2576_v29  ;;  %v1308_v43 = vsel %vm745_vm2, %v1288_v6, %v3975_v47  ;;  %v3979_v29 = vld [vmem:[#allocation13_spill] sm:$0xff] }
 0x151   : > { %v2914_v13 = vpop.permute.xlu1 %473  ;;  %v1281_v48 = vsel %vm760_vm3, %v1267_v55, %v1124_v60  ;;  %v2992_v3 = vrot.slane %v262_v16, %v2180_v5  ;;  %v1142_v15 = vsel %vm1141_vm12, %v2560_v37, %v3979_v29  ;;  %v3983_v60 = vld [vmem:[#allocation19_spill] sm:$0xff]  ;;  %v1184_v55 = vsel %vm607_vm11, %v3977_v8, %v2619_v4  ;;  %v3985_v47 = vld [vmem:[#allocation17_spill] sm:$0xff] }
 0x152   : > { %v2916_v2 = vpop.permute.xlu0 %471  ;;  %v1291_v32 = vsel %vm723_vm1, %v1142_v15, %v1162_v24  ;;  %v1164_v11 = vsel %vm566_vm10, %v2574_v51, %v3983_v60  ;;  %v1165_v6 = vsel %vm566_vm10, %v3983_v60, %v2621_v22  ;;  %v1185_v24 = vsel %vm607_vm11, %v2619_v4, %v2629_v30 }
 0x153   : > { %1358 = vrot.lane.b32.xlu1 %v1275_v28, %s2127_s23  ;;  %3978 = vst [vmem:[#allocation16_spill] sm:$0xff] %v2992_v3  ;;  %v3980_v28 = vld [vmem:[#allocation14_spill] sm:$0xff]  ;;  %v1310_v35 = vsel %vm745_vm2, %v1291_v32, %v1182_v59  ;;  %v320_v37 = vcombine.low %v2992_v3, %v2992_v3 }
 0x154   : > { %1356 = vrot.lane.b32.xlu0 %v1273_v10, %s2127_s23  ;;  %v1143_v10 = vsel %vm1141_vm12, %v3979_v29, %v3980_v28  ;;  %v3997_v3 = vld [vmem:[#allocation22_spill] sm:$0xff] }
 0x155   : > { %v2944_v63 = vpop.permute.xlu1 %403  ;;  %v1294_v26 = vsel %vm723_vm1, %v1143_v10, %v1163_v61  ;;  %v3984_v61 = vld [vmem:[#allocation21_spill] sm:$0xff] }
 0x156   : > { %v2946_v23 = vpop.permute.xlu0 %475  ;;  %v1312_v31 = vsel %vm745_vm2, %v1294_v26, %v1183_v1 }
 0x157   : > { %1362 = vrot.lane.b32.xlu1 %v1279_v44, %s2127_s23  ;;  %v385_v44 = vcombine.high %v3981_v19, %v3981_v19 }
 0x158   : > { %1360 = vrot.lane.b32.xlu0 %v1277_v20, %s2127_s23  ;;  %v3982_v20 = vld [vmem:[#allocation10_spill] sm:$0xff] }
 0x159   : > { %v2969_v52 = vpop.permute.xlu1 %428  ;;  %v392_v51 = vrot.slane %v385_v44, %v2180_v5 }
 0x15a   : > { %v2971_v40 = vpop.permute.xlu0 %405 }
 0x15b   : > { %1370 = vrot.lane.b32.xlu1 %v1308_v43, %s2127_s23  ;;  %v1144_v43 = vsel %vm1141_vm12, %v3980_v28, %v3985_v47  ;;  %v394_v28 = vcombine.high %v392_v51, %v392_v51 }
 0x15c   : > { %1364 = vrot.lane.b32.xlu0 %v1281_v48, %s2127_s23  ;;  %v3986_v48 = vld [vmem:[#allocation20_spill] sm:$0xff]  ;;  %v1297_v1 = vsel %vm723_vm1, %v1144_v43, %v1164_v11 }
 0x15d   : > { %v3000_v12 = vpop.permute.xlu1 %469  ;;  %v1145_v49 = vsel %vm1141_vm12, %v3985_v47, %v3986_v48  ;;  %v1314_v15 = vsel %vm745_vm2, %v1297_v1, %v1184_v55  ;;  %v638_v1 = vcombine.high %v2345_v39, %v2345_v39 }
 0x15e   : > { %v3002_v53 = vpop.permute.xlu0 %430  ;;  %v1300_v4 = vsel %vm723_vm1, %v1145_v49, %v1165_v6 }
 0x15f   : > { %1374 = vrot.lane.b32.xlu1 %v1312_v31, %s2127_s23  ;;  %v1316_v29 = vsel %vm745_vm2, %v1300_v4, %v1185_v24 }
 0x160   : > { %1372 = vrot.lane.b32.xlu0 %v1310_v35, %s2127_s23  ;;  %v444_v35 = vcombine.low %v392_v51, %v392_v51 }
 0x161   : > { %v3012_v9 = vpop.permute.xlu1 %455 }
 0x162   : > { %v3014_v34 = vpop.permute.xlu0 %453 }
 0x163   : > { %333 = vrot.lane.b32.xlu1 %v320_v37, %s2115_s7 }
 0x164   : > { %308 = vrot.lane.b32.xlu0 %v3982_v20, %s2106_s24 }
 0x165   : > { %v3021_v16 = vpop.permute.xlu1 %497 }
 0x166   : > { %v3023_v45 = vpop.permute.xlu0 %495 }
 0x167   : > { %375 = vrot.lane.b32.xlu1 %v2580_v0, %s2116_s8 }
 0x168   : > { %373 = vrot.lane.b32.xlu0 %v3984_v61, %s2116_s8  ;;  %s225_s8 = scalar_lea.vmem %s3848_s4, %s1977_s26 }
 0x169   : > { %v3048_v59 = vpop.permute.xlu1 %552 }
 0x16a   : > { %v3050_v8 = vpop.permute.xlu0 %499 }
 0x16b   : > { %1378 = vrot.lane.b32.xlu1 %v1316_v29, %s2127_s23 }
 0x16c   : > { %1376 = vrot.lane.b32.xlu0 %v1314_v15, %s2127_s23 }
 0x16d   : > { %v3058_v10 = vpop.permute.xlu1 %556 }
 0x16e   : > { %v3060_v26 = vpop.permute.xlu0 %554 }
 0x16f   : > { %409 = vrot.lane.b32.xlu1 %v394_v28, %s2117_s9 }
 0x170   : > { %407 = vrot.lane.b32.xlu0 %v392_v51, %s2117_s9 }
 0x171   : > { %v3064_v32 = vpop.permute.xlu1 %479 }
 0x172   : > { %v3066_v31 = vpop.permute.xlu0 %477 }
 0x173   : > { %434 = vrot.lane.b32.xlu1 %v2596_v33, %s2118_s10  ;;  %v3987_v33 = vld [vmem:[#allocation3_spill] sm:$0xff] }
 0x174   : > { %432 = vrot.lane.b32.xlu0 %v2580_v0, %s2118_s10  ;;  %v583_v11 = vcombine.high %v3987_v33, %v3987_v33 }
 0x175   : > { %v3072_v37 = vpop.permute.xlu1 %593 }
 0x176   : > { %v3074_v19 = vpop.permute.xlu0 %493  ;;  %v590_v24 = vrot.slane %v583_v11, %v2180_v5 }
 0x177   : > { %459 = vrot.lane.b32.xlu1 %v392_v51, %s2119_s11 }
 0x178   : > { %457 = vrot.lane.b32.xlu0 %v444_v35, %s2119_s11 }
 0x179   : > { %v3078_v44 = vpop.permute.xlu1 %597 }
 0x17a   : > { %v3080_v60 = vpop.permute.xlu0 %595 }
 0x17b   : > { %483 = vrot.lane.b32.xlu1 %v2580_v0, %s2120_s12  ;;  %v3988_v0 = vld [vmem:[#allocation4_spill] sm:$0xff] }
 0x17c   : > { %481 = vrot.lane.b32.xlu0 %v3984_v61, %s2120_s12  ;;  %v592_v61 = vcombine.low %v590_v24, %v590_v24 }
 0x17d   : > { %v3088_v6 = vpop.permute.xlu1 %618 }
 0x17e   : > { %v3090_v55 = vpop.permute.xlu0 %616 }
 0x17f   : > { %507 = vrot.lane.b32.xlu1 %v394_v28, %s2121_s13 }
 0x180   : > { %505 = vrot.lane.b32.xlu0 %v392_v51, %s2121_s13 }
 0x181   : > { %v3095_v47 = vpop.permute.xlu1 %501 }
 0x182   : > { %v3097_v43 = vpop.permute.xlu0 %620 }
 0x183   : > { %564 = vrot.lane.b32.xlu1 %v2345_v39, %s2113_s5 }
 0x184   : > { %562 = vrot.lane.b32.xlu0 %v3988_v0, %s2113_s5 }
 0x185   : > { %v3103_v49 = vpop.permute.xlu1 %558 }
 0x186   : > { %v3105_v4 = vpop.permute.xlu0 %503 }
 0x187   : > { %3989 = vst [vmem:[#allocation15_spill] sm:$0xff] %v3105_v4  ;;  %605 = vrot.lane.b32.xlu1 %v592_v61, %s2114_s6 }
 0x188   : > { %603 = vrot.lane.b32.xlu0 %v2345_v39, %s2114_s6 }
 0x189   : > { %v3110_v5 = vpop.permute.xlu1 %599 }
 0x18a   : > { %v3112_v51 = vpop.permute.xlu0 %560 }
 0x18b   : > { %3990 = vst [vmem:[#allocation18_spill] sm:$0xff] %v3112_v51  ;;  %628 = vrot.lane.b32.xlu1 %v2719_v41, %s2122_s14  ;;  %v1208_v51 = vsel %vm723_vm1, %v590_v24, %v3997_v3 }
 0x18c   : > { %626 = vrot.lane.b32.xlu0 %v2257_v27, %s2122_s14 }
 0x18d   : > { %v3120_v29 = vpop.permute.xlu1 %639 }
 0x18e   : > { %3991 = vst [vmem:[#allocation13_spill] sm:$0xff] %v3120_v29  ;;  %v3122_v15 = vpop.permute.xlu0 %601  ;;  %v3998_v29 = vld [vmem:[#allocation23_spill] sm:$0xff] }
 0x18f   : > { %3992 = vst [vmem:[#allocation14_spill] sm:$0xff] %v3122_v15  ;;  %651 = vrot.lane.b32.xlu1 %v590_v24, %s2123_s19 }
 0x190   : > { %649 = vrot.lane.b32.xlu0 %v638_v1, %s2123_s19 }
 0x191   : > { %v3126_v28 = vpop.permute.xlu1 %643 }
 0x192   : > { %3993 = vst [vmem:[#allocation11_spill] sm:$0xff] %v3126_v28  ;;  %v3128_v35 = vpop.permute.xlu0 %641  ;;  %v941_v28 = vsel %vm310_vm0, %v2414_v58, %v3997_v3 }
 0x193   : > { %3994 = vst [vmem:[#allocation10_spill] sm:$0xff] %v3128_v35  ;;  %672 = vrot.lane.b32.xlu1 %v2345_v39, %s2124_s20  ;;  %v3999_v35 = vld [vmem:[#allocation24_spill] sm:$0xff] }
 0x194   : > { %670 = vrot.lane.b32.xlu0 %v3988_v0, %s2124_s20  ;;  %v998_v15 = vsel %vm992_vm5, %v3999_v35, %v3998_v29  ;;  %v1205_v29 = vsel %vm723_vm1, %v638_v1, %v941_v28  ;;  %v4006_v1 = vld [vmem:[#allocation31_spill] sm:$0xff] }
 0x195   : > { %v3134_v33 = vpop.permute.xlu1 %662 }
 0x196   : > { %3995 = vst [vmem:[#allocation19_spill] sm:$0xff] %v3134_v33  ;;  %v3136_v11 = vpop.permute.xlu0 %660  ;;  %v4002_v33 = vld [vmem:[#allocation26_spill] sm:$0xff] }
 0x197   : > { %3996 = vst [vmem:[#allocation21_spill] sm:$0xff] %v3136_v11  ;;  %693 = vrot.lane.b32.xlu1 %v592_v61, %s2125_s21  ;;  %v997_v11 = vsel %vm992_vm5, %v2428_v62, %v3999_v35  ;;  %v4001_v61 = vld [vmem:[#allocation25_spill] sm:$0xff]  ;;  %v1036_v58 = vsel %vm1031_vm4, %v2474_v18, %v4002_v33  ;;  %v1222_v62 = vsel %vm745_vm2, %v1208_v51, %v998_v15  ;;  %v4007_v15 = vld [vmem:[#allocation30_spill] sm:$0xff]  ;;  %vm3915_vm5 = vcmask 957440  }
 0x198   : > { %691 = vrot.lane.b32.xlu0 %v2345_v39, %s2125_s21  ;;  %v1037_v39 = vsel %vm1031_vm4, %v4002_v33, %v4001_v61  ;;  %v1083_v35 = vsel %vm3913_vm6, %v2533_v42, %v2669_v25  ;;  %v4003_v61 = vld [vmem:[#allocation29_spill] sm:$0xff]  ;;  %v4005_v33 = vld [vmem:[#allocation28_spill] sm:$0xff]  ;;  %v1104_v42 = vsel %vm1099_vm7, %v2543_v21, %v4006_v1  ;;  %vm461_vm4 = vcmask 883712  }
 0x199   : > { %v3147_v4 = vpop.permute.xlu1 %622  ;;  %v1084_v3 = vsel %vm3913_vm6, %v2669_v25, %v4003_v61  ;;  %v1060_v51 = vsel %vm1055_vm8, %v2522_v38, %v4005_v33  ;;  %v1105_v25 = vsel %vm1099_vm7, %v4006_v1, %v4007_v15  ;;  %v4008_v61 = vld [vmem:[#allocation27_spill] sm:$0xff]  ;;  %v4012_v15 = vld [vmem:[#allocation37_spill] sm:$0xff]  ;;  %vm3914_vm7 = vcmask 875520  }
 0x19a   : > { %v3149_v0 = vpop.permute.xlu0 %664  ;;  %v1254_v21 = vsel %vm723_vm1, %v1060_v51, %v1083_v35  ;;  %v4014_v51 = vld [vmem:[#allocation39_spill] sm:$0xff]  ;;  %vm695_vm6 = vcmask 130048  }
 0x19b   : > { %4000 = vst [vmem:[#allocation17_spill] sm:$0xff] %v3149_v0  ;;  %714 = vrot.lane.b32.xlu1 %v2719_v41, %s2126_s22  ;;  %v1236_v41 = vsel %vm760_vm3, %v1222_v62, %v1037_v39  ;;  %v1061_v39 = vsel %vm1055_vm8, %v4005_v33, %v4008_v61  ;;  %v4009_v62 = vld [vmem:[#allocation33_spill] sm:$0xff]  ;;  %v1166_v61 = vsel %vm566_vm10, %v2621_v22, %v4012_v15  ;;  %v4016_v22 = vld [vmem:[#allocation35_spill] sm:$0xff]  ;;  %v4027_v0 = vld [vmem:[#allocation46_spill] sm:$0xff]  ;;  %vm509_vm8 = vcmask 867328  }
 0x19c   : > { %712 = vrot.lane.b32.xlu0 %v2257_v27, %s2126_s22  ;;  %v1220_v27 = vsel %vm745_vm2, %v1205_v29, %v997_v11  ;;  %v1125_v11 = vsel %vm1120_vm9, %v2550_v17, %v4009_v62  ;;  %v4010_v29 = vld [vmem:[#allocation32_spill] sm:$0xff]  ;;  %v1269_v17 = vsel %vm745_vm2, %v1254_v21, %v1104_v42 }
 0x19d   : > { %v3174_v24 = vpop.permute.xlu1 %681  ;;  %v1234_v28 = vsel %vm760_vm3, %v1220_v27, %v1036_v58  ;;  %v1126_v38 = vsel %vm1120_vm9, %v4009_v62, %v4010_v29  ;;  %v1257_v58 = vsel %vm723_vm1, %v1061_v39, %v1084_v3  ;;  %v4013_v62 = vld [vmem:[#allocation36_spill] sm:$0xff]  ;;  %v1283_v3 = vsel %vm760_vm3, %v1269_v17, %v1125_v11  ;;  %v4015_v39 = vld [vmem:[#allocation38_spill] sm:$0xff] }
 0x19e   : > { %v3176_v18 = vpop.permute.xlu0 %624  ;;  %v1271_v33 = vsel %vm745_vm2, %v1257_v58, %v1105_v25  ;;  %v1187_v42 = vsel %vm607_vm11, %v4014_v51, %v4015_v39  ;;  %v1146_v25 = vsel %vm1141_vm12, %v3986_v48, %v4016_v22  ;;  %v4017_v29 = vld [vmem:[#allocation34_spill] sm:$0xff]  ;;  %v4020_v58 = vld [vmem:[#allocation41_spill] sm:$0xff]  ;;  %v4025_v39 = vld [vmem:[#allocation44_spill] sm:$0xff]  ;;  %vm630_vm9 = vcmask 211968  }
 0x19f   : > { %4004 = vst [vmem:[#allocation20_spill] sm:$0xff] %v3176_v18  ;;  %1354 = vrot.lane.b32.xlu1 %v1236_v41, %s2127_s23  ;;  %v1167_v41 = vsel %vm566_vm10, %v4012_v15, %v4013_v62  ;;  %v1285_v35 = vsel %vm760_vm3, %v1271_v33, %v1126_v38  ;;  %v1147_v11 = vsel %vm1141_vm12, %v4016_v22, %v4017_v29  ;;  %v4018_v38 = vld [vmem:[#allocation40_spill] sm:$0xff]  ;;  %vm674_vm12 = vcmask 138240  }
 0x1a0   : > { %1352 = vrot.lane.b32.xlu0 %v1234_v28, %s2127_s23  ;;  %v1186_v28 = vsel %vm607_vm11, %v2629_v30, %v4014_v51  ;;  %v4019_v30 = vld [vmem:[#allocation6_spill] sm:$0xff]  ;;  %v313_v33 = vsel %vm310_vm0, %v4018_v38, %v4020_v58  ;;  %v1306_v62 = vsel %vm723_vm1, %v1147_v11, %v1167_v41  ;;  %v1303_v48 = vsel %vm723_vm1, %v1146_v25, %v1166_v61  ;;  %v4029_v41 = vld [vmem:[#allocation5_spill] sm:$0xff] }
 0x1a1   : > { %v3203_v27 = vpop.permute.xlu1 %685  ;;  %v312_v21 = vsel %vm310_vm0, %v4019_v30, %v4018_v38  ;;  %v1320_v29 = vsel %vm745_vm2, %v1306_v62, %v1187_v42  ;;  %v1318_v38 = vsel %vm745_vm2, %v1303_v48, %v1186_v28  ;;  %v311_v25 = vsel %vm310_vm0, %v4029_v41, %v4019_v30  ;;  %v4030_v11 = vld [vmem:[#allocation9_spill] sm:$0xff]  ;;  %v4031_v28 = vld [vmem:[#allocation8_spill] sm:$0xff] }
 0x1a2   : > { %4011 = vst [vmem:[#allocation3_spill] sm:$0xff] %v3203_v27  ;;  %v3205_v1 = vpop.permute.xlu0 %683  ;;  %v4026_v27 = vld [vmem:[#allocation47_spill] sm:$0xff]  ;;  %v729_v42 = vsel %vm723_vm1, %v4030_v11, %v312_v21  ;;  %v732_v62 = vsel %vm723_vm1, %v4031_v28, %v313_v33  ;;  %v4032_v48 = vld [vmem:[#allocation49_spill] sm:$0xff]  ;;  %v339_v33 = vsel %vm335_vm13, %v4025_v39, %v2769_v57 }
 0x1a3   : > { %1368 = vrot.lane.b32.xlu1 %v1285_v35, %s2127_s23  ;;  %v4023_v35 = vld [vmem:[#allocation43_spill] sm:$0xff]  ;;  %v4033_v30 = vld [vmem:[#allocation45_spill] sm:$0xff] }
 0x1a4   : > { %1366 = vrot.lane.b32.xlu0 %v1283_v3, %s2127_s23  ;;  %v4024_v3 = vld [vmem:[#allocation42_spill] sm:$0xff]  ;;  %v338_v22 = vsel %vm335_vm13, %v4023_v35, %v4025_v39  ;;  %v4034_v11 = vld [vmem:[#allocation51_spill] sm:$0xff] }
 0x1a5   : > { %v3237_v17 = vpop.permute.xlu1 %704  ;;  %v337_v51 = vsel %vm335_vm13, %v4024_v3, %v4023_v35  ;;  %v314_v35 = vsel %vm310_vm0, %v4020_v58, %v4032_v48  ;;  %v336_v21 = vsel %vm335_vm13, %v4033_v30, %v4024_v3  ;;  %v378_v28 = vsel %vm377_vm14, %v4034_v11, %v4027_v0  ;;  %v4035_v3 = vld [vmem:[#allocation7_spill] sm:$0xff]  ;;  %v4041_v11 = vld [vmem:[#allocation54_spill] sm:$0xff] }
 0x1a6   : > { %4021 = vst [vmem:[#allocation4_spill] sm:$0xff] %v3237_v17  ;;  %v3239_v15 = vpop.permute.xlu0 %702  ;;  %v4028_v17 = vld [vmem:[#allocation48_spill] sm:$0xff]  ;;  %v749_v18 = vsel %vm745_vm2, %v729_v42, %v337_v51  ;;  %v726_v39 = vsel %vm723_vm1, %v4035_v3, %v311_v25  ;;  %v4039_v42 = vld [vmem:[#allocation55_spill] sm:$0xff]  ;;  %v4042_v3 = vld [vmem:[#allocation53_spill] sm:$0xff] }
 0x1a7   : > { %4022 = vst [vmem:[#allocation22_spill] sm:$0xff] %v3239_v15  ;;  %v379_v15 = vsel %vm377_vm14, %v4027_v0, %v4026_v27  ;;  %v380_v61 = vsel %vm377_vm14, %v4026_v27, %v4028_v17  ;;  %1382 = vrot.lane.b32.xlu1 %v1320_v29, %s2127_s23  ;;  %v381_v51 = vsel %vm377_vm14, %v4028_v17, %v2808_v14  ;;  %v4037_v0 = vld [vmem:[#allocation50_spill] sm:$0xff] }
 0x1a8   : > { %1380 = vrot.lane.b32.xlu0 %v1318_v38, %s2127_s23  ;;  %v751_v38 = vsel %vm745_vm2, %v732_v62, %v338_v22  ;;  %v764_v58 = vsel %vm760_vm3, %v749_v18, %v379_v15  ;;  %v4036_v22 = vld [vmem:[#allocation12_spill] sm:$0xff]  ;;  %v747_v18 = vsel %vm745_vm2, %v726_v39, %v336_v21  ;;  %v315_v15 = vsel %vm310_vm0, %v4032_v48, %v4037_v0  ;;  %v4038_v17 = vld [vmem:[#allocation58_spill] sm:$0xff] }
 0x1a9   : > { %v3269_v27 = vpop.permute.xlu1 %645  ;;  %v766_v41 = vsel %vm760_vm3, %v751_v38, %v380_v61  ;;  %v735_v61 = vsel %vm723_vm1, %v4036_v22, %v314_v35  ;;  %v438_v62 = vsel %vm436_vm15, %v4039_v42, %v4038_v17  ;;  %v463_v21 = vsel %vm461_vm4, %v2854_v36, %v2852_v46  ;;  %v4043_v22 = vld [vmem:[#allocation59_spill] sm:$0xff] }
 0x1aa   : > { %v3271_v29 = vpop.permute.xlu0 %706  ;;  %v753_v25 = vsel %vm745_vm2, %v735_v61, %v339_v33  ;;  %v762_v48 = vsel %vm760_vm3, %v747_v18, %v378_v28  ;;  %v413_v39 = vsel %vm3915_vm5, %v4042_v3, %v4041_v11  ;;  %v382_v33 = vsel %vm377_vm14, %v2808_v14, %v4043_v22  ;;  %v4044_v18 = vld [vmem:[#allocation57_spill] sm:$0xff] }
 0x1ab   : > { %1435 = vrot.lane.b32.xlu1 %v766_v41, %s2109_s27  ;;  %v4040_v41 = vld [vmem:[#allocation52_spill] sm:$0xff]  ;;  %v738_v28 = vsel %vm723_vm1, %v3982_v20, %v315_v15  ;;  %v437_v61 = vsel %vm436_vm15, %v2822_v56, %v4039_v42  ;;  %v412_v14 = vsel %vm3915_vm5, %v2824_v7, %v4042_v3 }
 0x1ac   : > { %1433 = vrot.lane.b32.xlu0 %v764_v58, %s2109_s27  ;;  %v340_v35 = vsel %vm335_vm13, %v2769_v57, %v4040_v41  ;;  %v768_v58 = vsel %vm760_vm3, %v753_v25, %v381_v51  ;;  %v487_v57 = vsel %vm3914_vm7, %v2916_v2, %v2914_v13  ;;  %v780_v51 = vsel %vm723_vm1, %v413_v39, %v438_v62  ;;  %v4045_v42 = vld [vmem:[#allocation56_spill] sm:$0xff] }
 0x1ad   : > { %v3302_v38 = vpop.permute.xlu1 %666  ;;  %v439_v25 = vsel %vm436_vm15, %v4038_v17, %v4044_v18  ;;  %v755_v62 = vsel %vm745_vm2, %v738_v28, %v340_v35  ;;  %v799_v56 = vsel %vm745_vm2, %v780_v51, %v463_v21  ;;  %v414_v7 = vsel %vm3915_vm5, %v4041_v11, %v4045_v42 }
 0x1ae   : > { %v3304_v30 = vpop.permute.xlu0 %647  ;;  %v464_v17 = vsel %vm461_vm4, %v2852_v46, %v2882_v50  ;;  %v770_v3 = vsel %vm760_vm3, %v755_v62, %v382_v33  ;;  %v488_v35 = vsel %vm3914_vm7, %v2914_v13, %v2946_v23  ;;  %v486_v21 = vsel %vm3914_vm7, %v3000_v12, %v2916_v2 }
 0x1af   : > { %1437 = vrot.lane.b32.xlu1 %v768_v58, %s2109_s27  ;;  %v783_v46 = vsel %vm723_vm1, %v414_v7, %v439_v25  ;;  %v440_v39 = vsel %vm436_vm15, %v4044_v18, %v2969_v52  ;;  %v441_v13 = vsel %vm436_vm15, %v2969_v52, %v3002_v53  ;;  %v415_v2 = vsel %vm3915_vm5, %v4045_v42, %v2944_v63 }
 0x1b0   : > { %1431 = vrot.lane.b32.xlu0 %v762_v48, %s2109_s27  ;;  %v462_v48 = vsel %vm461_vm4, %v2880_v54, %v2854_v36  ;;  %v813_v36 = vsel %vm760_vm3, %v799_v56, %v487_v57  ;;  %v777_v54 = vsel %vm723_vm1, %v412_v14, %v437_v61  ;;  %v465_v12 = vsel %vm461_vm4, %v2882_v50, %v3014_v34 }
 0x1b1   : > { %v3341_v58 = vpop.permute.xlu1 %687  ;;  %v797_v11 = vsel %vm745_vm2, %v777_v54, %v462_v48  ;;  %v466_v33 = vsel %vm461_vm4, %v3014_v34, %v3012_v9  ;;  %v801_v51 = vsel %vm745_vm2, %v783_v46, %v464_v17  ;;  %v416_v52 = vsel %vm3915_vm5, %v2944_v63, %v2971_v40 }
 0x1b2   : > { %v3343_v15 = vpop.permute.xlu0 %668  ;;  %v489_v61 = vsel %vm3914_vm7, %v2946_v23, %v3066_v31  ;;  %v815_v50 = vsel %vm760_vm3, %v801_v51, %v488_v35  ;;  %v811_v14 = vsel %vm760_vm3, %v797_v11, %v486_v21  ;;  %v786_v34 = vsel %vm723_vm1, %v415_v2, %v440_v39  ;;  %v4046_v51 = vld [vmem:[#allocation18_spill] sm:$0xff] }
 0x1b3   : > { %1447 = vrot.lane.b32.xlu1 %v813_v36, %s2109_s27  ;;  %v789_v18 = vsel %vm723_vm1, %v416_v52, %v441_v13  ;;  %v490_v25 = vsel %vm3914_vm7, %v3066_v31, %v3064_v32  ;;  %v803_v63 = vsel %vm745_vm2, %v786_v34, %v465_v12  ;;  %v511_v48 = vsel %vm509_vm8, %v3023_v45, %v3021_v16  ;;  %v4047_v52 = vld [vmem:[#allocation19_spill] sm:$0xff] }
 0x1b4   : > { %1439 = vrot.lane.b32.xlu0 %v770_v3, %s2109_s27  ;;  %v805_v23 = vsel %vm745_vm2, %v789_v18, %v466_v33  ;;  %v567_v62 = vsel %vm566_vm10, %v3048_v59, %v3060_v26  ;;  %v568_v31 = vsel %vm566_vm10, %v3060_v26, %v3058_v10  ;;  %v817_v7 = vsel %vm760_vm3, %v803_v63, %v489_v61  ;;  %v4048_v61 = vld [vmem:[#allocation21_spill] sm:$0xff]  ;;  %v4050_v63 = vld [vmem:[#allocation14_spill] sm:$0xff] }
 0x1b5   : > { %v3381_v57 = vpop.permute.xlu1 %708  ;;  %v510_v17 = vsel %vm509_vm8, %v3074_v19, %v3023_v45  ;;  %v608_v3 = vsel %vm607_vm11, %v3072_v37, %v3080_v60  ;;  %v609_v36 = vsel %vm607_vm11, %v3080_v60, %v3078_v44  ;;  %v819_v26 = vsel %vm760_vm3, %v805_v23, %v490_v25  ;;  %v4049_v25 = vld [vmem:[#allocation15_spill] sm:$0xff] }
 0x1b6   : > { %v3383_v28 = vpop.permute.xlu0 %689  ;;  %v512_v54 = vsel %vm509_vm8, %v3021_v16, %v3050_v8  ;;  %v631_v35 = vsel %vm630_vm9, %v3090_v55, %v3088_v6  ;;  %v632_v45 = vsel %vm630_vm9, %v3088_v6, %v3097_v43  ;;  %v829_v19 = vsel %vm723_vm1, %v511_v48, %v567_v62  ;;  %v4051_v62 = vld [vmem:[#allocation10_spill] sm:$0xff] }
 0x1b7   : > { %1445 = vrot.lane.b32.xlu1 %v811_v14, %s2109_s27  ;;  %v832_v60 = vsel %vm723_vm1, %v512_v54, %v568_v31  ;;  %v826_v21 = vsel %vm723_vm1, %v510_v17, %v3048_v59  ;;  %v569_v16 = vsel %vm566_vm10, %v3058_v10, %v3103_v49  ;;  %v848_v6 = vsel %vm745_vm2, %v829_v19, %v608_v3  ;;  %v4052_v31 = vld [vmem:[#allocation13_spill] sm:$0xff]  ;;  %v4054_v3 = vld [vmem:[#allocation4_spill] sm:$0xff] }
 0x1b8   : > { %1449 = vrot.lane.b32.xlu0 %v815_v50, %s2109_s27  ;;  %v850_v39 = vsel %vm745_vm2, %v832_v60, %v609_v36  ;;  %v610_v13 = vsel %vm607_vm11, %v3078_v44, %v3110_v5  ;;  %v862_v2 = vsel %vm760_vm3, %v848_v6, %v631_v35  ;;  %v513_v10 = vsel %vm509_vm8, %v3050_v8, %v3095_v47  ;;  %v4056_v54 = vld [vmem:[#allocation17_spill] sm:$0xff] }
 0x1b9   : > { %v3412_v56 = vpop.permute.xlu1 %1342  ;;  %v864_v59 = vsel %vm760_vm3, %v850_v39, %v632_v45  ;;  %v633_v12 = vsel %vm630_vm9, %v3097_v43, %v3147_v4  ;;  %v835_v44 = vsel %vm723_vm1, %v513_v10, %v569_v16  ;;  %vm653_vm7 = vcmask 146432  }
 0x1ba   : > { %v3414_v42 = vpop.permute.xlu0 %710  ;;  %vm3916_vm5 = vcmask 64512   ;;  %v846_v33 = vsel %vm745_vm2, %v826_v21, %v3072_v37  ;;  %v570_v8 = vsel %vm566_vm10, %v3103_v49, %v4046_v51  ;;  %v675_v43 = vsel %vm674_vm12, %v4048_v61, %v4047_v52  ;;  %v4057_v21 = vld [vmem:[#allocation3_spill] sm:$0xff] }
 0x1bb   : > { %1453 = vrot.lane.b32.xlu1 %v819_v26, %s2109_s27  ;;  %v860_v34 = vsel %vm760_vm3, %v846_v33, %v3090_v55  ;;  %v852_v18 = vsel %vm745_vm2, %v835_v44, %v610_v13  ;;  %v514_v37 = vsel %vm509_vm8, %v3095_v47, %v4049_v25  ;;  %v611_v49 = vsel %vm607_vm11, %v3110_v5, %v4050_v63  ;;  %v4055_v47 = vld [vmem:[#allocation22_spill] sm:$0xff]  ;;  %v4058_v13 = vld [vmem:[#allocation11_spill] sm:$0xff] }
 0x1bc   : > { %1451 = vrot.lane.b32.xlu0 %v817_v7, %s2109_s27  ;;  %v696_v23 = vsel %vm695_vm6, %v3174_v24, %v3205_v1  ;;  %v866_v48 = vsel %vm760_vm3, %v852_v18, %v633_v12  ;;  %v654_v55 = vsel %vm653_vm7, %v4052_v31, %v4051_v62  ;;  %v4053_v7 = vld [vmem:[#allocation20_spill] sm:$0xff]  ;;  %v717_v36 = vsel %vm3916_vm5, %v4055_v47, %v4054_v3 }
 0x1bd   : > { %v3445_v46 = vpop.permute.xlu1 %1346  ;;  %v634_v17 = vsel %vm630_vm9, %v3147_v4, %v4053_v7  ;;  %v838_v5 = vsel %vm723_vm1, %v514_v37, %v570_v8  ;;  %v878_v26 = vsel %vm723_vm1, %v654_v55, %v675_v43  ;;  %v676_v35 = vsel %vm674_vm12, %v4047_v52, %v4056_v54 }
 0x1be   : > { %v3447_v11 = vpop.permute.xlu0 %1344  ;;  %v854_v4 = vsel %vm745_vm2, %v838_v5, %v611_v49  ;;  %v897_v60 = vsel %vm745_vm2, %v878_v26, %v696_v23  ;;  %v697_v16 = vsel %vm695_vm6, %v3205_v1, %v4057_v21  ;;  %v718_v10 = vsel %vm3916_vm5, %v4054_v3, %v3271_v29 }
 0x1bf   : > { %1463 = vrot.lane.b32.xlu1 %v864_v59, %s2109_s27  ;;  %v868_v6 = vsel %vm760_vm3, %v854_v4, %v634_v17  ;;  %v911_v39 = vsel %vm760_vm3, %v897_v60, %v717_v36  ;;  %v875_v59 = vsel %vm723_vm1, %v4052_v31, %v4048_v61  ;;  %v677_v44 = vsel %vm674_vm12, %v4056_v54, %v3302_v38 }
 0x1c0   : > { %1461 = vrot.lane.b32.xlu0 %v862_v2, %s2109_s27  ;;  %v655_v2 = vsel %vm653_vm7, %v4051_v62, %v4058_v13  ;;  %v895_v12 = vsel %vm745_vm2, %v875_v59, %v3174_v24  ;;  %v678_v33 = vsel %vm674_vm12, %v3302_v38, %v3343_v15  ;;  %v698_v24 = vsel %vm695_vm6, %v4057_v21, %v3341_v58 }
 0x1c1   : > { %v3473_v50 = vpop.permute.xlu1 %1350  ;;  %v881_v1 = vsel %vm723_vm1, %v655_v2, %v676_v35  ;;  %v909_v43 = vsel %vm760_vm3, %v895_v12, %v4055_v47  ;;  %v699_v18 = vsel %vm695_vm6, %v3341_v58, %v3383_v28  ;;  %v657_v37 = vsel %vm653_vm7, %v3269_v27, %v3304_v30 }
 0x1c2   : > { %v3475_v14 = vpop.permute.xlu0 %1348  ;;  %v899_v61 = vsel %vm745_vm2, %v881_v1, %v697_v16  ;;  %v719_v49 = vsel %vm3916_vm5, %v3271_v29, %v3381_v57  ;;  %v720_v23 = vsel %vm3916_vm5, %v3381_v57, %v3414_v42  ;;  %vm1384_vm5 = vcmask 56320  }
 0x1c3   : > { %1465 = vrot.lane.b32.xlu1 %v866_v48, %s2109_s27  ;;  %v913_v38 = vsel %vm760_vm3, %v899_v61, %v718_v10  ;;  %v887_v48 = vsel %vm723_vm1, %v657_v37, %v678_v33  ;;  %v1385_v47 = vsel %vm1384_vm5, %v3412_v56, %v3447_v11  ;;  %v1386_v36 = vsel %vm1384_vm5, %v3447_v11, %v3445_v46 }
 0x1c4   : > { %1459 = vrot.lane.b32.xlu0 %v860_v34, %s2109_s27  ;;  %v656_v34 = vsel %vm653_vm7, %v4058_v13, %v3269_v27  ;;  %v903_v55 = vsel %vm745_vm2, %v887_v48, %v699_v18  ;;  %v1387_v54 = vsel %vm1384_vm5, %v3445_v46, %v3475_v14  ;;  %v1388_v11 = vsel %vm1384_vm5, %v3475_v14, %v3473_v50 }
 0x1c5   : > { %v1359_v45 = vpop.permute.xlu1 %1358  ;;  %v884_v58 = vsel %vm723_vm1, %v656_v34, %v677_v44  ;;  %v917_v17 = vsel %vm760_vm3, %v903_v55, %v720_v23  ;;  %v2128_v10 = vmov 0  }
 0x1c6   : > { %v1357_v19 = vpop.permute.xlu0 %1356  ;;  %v901_v27 = vsel %vm745_vm2, %v884_v58, %v698_v24  ;;  %1670 = vmatprep.mubr.bf16.mxu0 %v2128_v10  ;;  %1711 = vmatprep.mubr.bf16.mxu1 %v2128_v10  ;;  %v4059_v24 = vld [vmem:[#allocation16_spill] sm:$0xff] }
 0x1c7   : > { %1475 = vrot.lane.b32.xlu1 %v911_v39, %s2109_s27  ;;  %v915_v29 = vsel %vm760_vm3, %v901_v27, %v719_v49  ;;  %v1391_v60 = vsel %vm1384_vm5, %v1357_v19, %v1359_v45 }
 0x1c8   : > { %1467 = vrot.lane.b32.xlu0 %v868_v6, %s2109_s27 }
 0x1c9   : > { %v1363_v8 = vpop.permute.xlu1 %1362 }
 0x1ca   : > { %v1361_v52 = vpop.permute.xlu0 %1360 }
 0x1cb   : > { %1473 = vrot.lane.b32.xlu1 %v909_v43, %s2109_s27  ;;  %v1392_v16 = vsel %vm1384_vm5, %v1359_v45, %v1361_v52  ;;  %v1393_v39 = vsel %vm1384_vm5, %v1361_v52, %v1363_v8  ;;  %v277_v45 = vcombine.high %v3982_v20, %v3982_v20 }
 0x1cc   : > { %1477 = vrot.lane.b32.xlu0 %v913_v38, %s2109_s27 }
 0x1cd   : > { %v1371_v62 = vpop.permute.xlu1 %1370 }
 0x1ce   : > { %v3559_v31 = vpop.permute.xlu0 %1364 }
 0x1cf   : > { %1481 = vrot.lane.b32.xlu1 %v917_v17, %s2109_s27  ;;  %v1394_v14 = vsel %vm1384_vm5, %v1363_v8, %v3559_v31 }
 0x1d0   : > { %1479 = vrot.lane.b32.xlu0 %v915_v29, %s2109_s27 }
 0x1d1   : > { %v1375_v57 = vpop.permute.xlu1 %1374 }
 0x1d2   : > { %v1373_v3 = vpop.permute.xlu0 %1372 }
 0x1d3   : > { %1491 = vrot.lane.b32.xlu1 %v1386_v36, %s2109_s27  ;;  %v1397_v59 = vsel %vm1384_vm5, %v1371_v62, %v1373_v3  ;;  %v1398_v44 = vsel %vm1384_vm5, %v1373_v3, %v1375_v57 }
 0x1d4   : > { %1489 = vrot.lane.b32.xlu0 %v1385_v47, %s2109_s27 }
 0x1d5   : > { %v334_v5 = vpop.permute.xlu1 %333 }
 0x1d6   : > { %v309_v26 = vpop.permute.xlu0 %308  ;;  %v341_v33 = vsel %vm335_vm13, %v4040_v41, %v334_v5  ;;  %vm4061_vm13 = vcmask 875520  }
 0x1d7   : > { %1493 = vrot.lane.b32.xlu1 %v1387_v54, %s2109_s27  ;;  %v744_v41 = vsel %vm723_vm1, %v4059_v24, %v309_v26 }
 0x1d8   : > { %1487 = vrot.lane.b32.xlu0 %v3412_v56, %s2109_s27  ;;  %v759_v58 = vsel %vm745_vm2, %v744_v41, %v334_v5 }
 0x1d9   : > { %v376_v35 = vpop.permute.xlu1 %375 }
 0x1da   : > { %v374_v4 = vpop.permute.xlu0 %373 }
 0x1db   : > { %1503 = vrot.lane.b32.xlu1 %v1391_v60, %s2109_s27  ;;  %v383_v8 = vsel %vm377_vm14, %v4043_v22, %v374_v4  ;;  %v384_v37 = vsel %vm377_vm14, %v374_v4, %v376_v35 }
 0x1dc   : > { %1495 = vrot.lane.b32.xlu0 %v1388_v11, %s2109_s27 }
 0x1dd   : > { %v3587_v21 = vpop.permute.xlu1 %1378 }
 0x1de   : > { %v1377_v46 = vpop.permute.xlu0 %1376 }
 0x1df   : > { %1501 = vrot.lane.b32.xlu1 %v1357_v19, %s2109_s27  ;;  %v316_v19 = vsel %vm310_vm0, %v4037_v0, %v309_v26  ;;  %v1399_v0 = vsel %vm1384_vm5, %v1375_v57, %v1377_v46  ;;  %v1400_v18 = vsel %vm1384_vm5, %v1377_v46, %v3587_v21  ;;  %vm4060_vm0 = vcmask 957440  }
 0x1e0   : > { %1505 = vrot.lane.b32.xlu0 %v1392_v16, %s2109_s27  ;;  %v741_v20 = vsel %vm723_vm1, %v277_v45, %v316_v19  ;;  %vm4062_vm14 = vmmov %vm4060_vm0 }
 0x1e1   : > { %v410_v56 = vpop.permute.xlu1 %409  ;;  %v757_v34 = vsel %vm745_vm2, %v741_v20, %v341_v33 }
 0x1e2   : > { %v408_v6 = vpop.permute.xlu0 %407  ;;  %v772_v38 = vsel %vm760_vm3, %v757_v34, %v383_v8 }
 0x1e3   : > { %1509 = vrot.lane.b32.xlu1 %v1394_v14, %s2109_s27  ;;  %v418_v29 = vsel %vm4062_vm14, %v408_v6, %v410_v56 }
 0x1e4   : > { %1507 = vrot.lane.b32.xlu0 %v1393_v39, %s2109_s27 }
 0x1e5   : > { %v435_v13 = vpop.permute.xlu1 %434 }
 0x1e6   : > { %v433_v2 = vpop.permute.xlu0 %432 }
 0x1e7   : > { %1517 = vrot.lane.b32.xlu1 %v1397_v59, %s2109_s27  ;;  %v442_v52 = vsel %vm436_vm15, %v3002_v53, %v433_v2  ;;  %v417_v53 = vsel %vm4060_vm0, %v2971_v40, %v408_v6  ;;  %v774_v40 = vsel %vm760_vm3, %v759_v58, %v384_v37  ;;  %vm4063_vm0 = vmmov %vm4061_vm13 }
 0x1e8   : > { %1515 = vrot.lane.b32.xlu0 %v1371_v62, %s2109_s27  ;;  %v792_v23 = vsel %vm723_vm1, %v417_v53, %v442_v52 }
 0x1e9   : > { %v460_v1 = vpop.permute.xlu1 %459 }
 0x1ea   : > { %v458_v12 = vpop.permute.xlu0 %457 }
 0x1eb   : > { %1521 = vrot.lane.b32.xlu1 %v1399_v0, %s2109_s27  ;;  %v467_v22 = vsel %vm461_vm4, %v3012_v9, %v458_v12  ;;  %v443_v9 = vsel %vm436_vm15, %v433_v2, %v435_v13  ;;  %v468_v55 = vsel %vm461_vm4, %v458_v12, %v460_v1 }
 0x1ec   : > { %1519 = vrot.lane.b32.xlu0 %v1398_v44, %s2109_s27  ;;  %v807_v48 = vsel %vm745_vm2, %v792_v23, %v467_v22  ;;  %v795_v57 = vsel %vm723_vm1, %v418_v29, %v443_v9 }
 0x1ed   : > { %v484_v61 = vpop.permute.xlu1 %483  ;;  %v809_v3 = vsel %vm745_vm2, %v795_v57, %v468_v55 }
 0x1ee   : > { %v482_v43 = vpop.permute.xlu0 %481 }
 0x1ef   : > { %v491_v49 = vsel %vm4061_vm13, %v3064_v32, %v482_v43  ;;  %1441 = vrot.lane.b32.xlu1 %v772_v38, %s2109_s27  ;;  %v492_v17 = vsel %vm4063_vm0, %v482_v43, %v484_v61 }
 0x1f0   : > { %1523 = vrot.lane.b32.xlu0 %v1400_v18, %s2109_s27  ;;  %v821_v32 = vsel %vm760_vm3, %v807_v48, %v491_v49  ;;  %v823_v5 = vsel %vm760_vm3, %v809_v3, %v492_v17 }
 0x1f1   : > { %v508_v62 = vpop.permute.xlu1 %507 }
 0x1f2   : > { %v506_v27 = vpop.permute.xlu0 %505 }
 0x1f3   : > { %1455 = vrot.lane.b32.xlu1 %v821_v32, %s2109_s27  ;;  %v515_v46 = vsel %vm509_vm8, %v4049_v25, %v506_v27  ;;  %v516_v16 = vsel %vm509_vm8, %v506_v27, %v508_v62 }
 0x1f4   : > { %1443 = vrot.lane.b32.xlu0 %v774_v40, %s2109_s27 }
 0x1f5   : > { %v565_v47 = vpop.permute.xlu1 %564 }
 0x1f6   : > { %v563_v36 = vpop.permute.xlu0 %562 }
 0x1f7   : > { %v571_v35 = vsel %vm566_vm10, %v4046_v51, %v563_v36  ;;  %v572_v4 = vsel %vm566_vm10, %v563_v36, %v565_v47  ;;  %vm4064_vm10 = vcmask 64512  }
 0x1f8   : > { %1457 = vrot.lane.b32.xlu0 %v823_v5, %s2109_s27  ;;  %v841_v56 = vsel %vm723_vm1, %v515_v46, %v571_v35  ;;  %v844_v6 = vsel %vm723_vm1, %v516_v16, %v572_v4 }
 0x1f9   : > { %v606_v26 = vpop.permute.xlu1 %605 }
 0x1fa   : > { %v604_v54 = vpop.permute.xlu0 %603 }
 0x1fb   : > { %v612_v11 = vsel %vm607_vm11, %v4050_v63, %v604_v54  ;;  %v613_v60 = vsel %vm607_vm11, %v604_v54, %v606_v26  ;;  %vm4065_vm11 = vmmov %vm4064_vm10 }
 0x1fc   : > { %v856_v51 = vsel %vm745_vm2, %v841_v56, %v612_v11  ;;  %v858_v13 = vsel %vm745_vm2, %v844_v6, %v613_v60 }
 0x1fd   : > { %v629_v39 = vpop.permute.xlu1 %628 }
 0x1fe   : > { %v627_v14 = vpop.permute.xlu0 %626 }
 0x1ff   : > { %v635_v63 = vsel %vm630_vm9, %v4053_v7, %v627_v14  ;;  %v636_v2 = vsel %vm630_vm9, %v627_v14, %v629_v39 }
 0x200   : > { %v872_v59 = vsel %vm760_vm3, %v858_v13, %v636_v2  ;;  %v870_v25 = vsel %vm760_vm3, %v856_v51, %v635_v63 }
 0x201   : > { %1471 = vrot.lane.b32.xlu0 %v872_v59, %s2109_s27  ;;  %1469 = vrot.lane.b32.xlu1 %v870_v25, %s2109_s27  ;;  %v652_v45 = vpop.permute.xlu1 %651 }
 0x202   : > { %v650_v19 = vpop.permute.xlu0 %649 }
 0x203   : > { %v658_v52 = vsel %vm653_vm7, %v3304_v30, %v650_v19  ;;  %v659_v61 = vsel %vm653_vm7, %v650_v19, %v652_v45 }
 0x205   : > { %v673_v1 = vpop.permute.xlu1 %672 }
 0x206   : > { %v671_v12 = vpop.permute.xlu0 %670 }
 0x207   : > { %v679_v20 = vsel %vm674_vm12, %v3343_v15, %v671_v12  ;;  %v680_v7 = vsel %vm674_vm12, %v671_v12, %v673_v1 }
 0x208   : > { %v890_v43 = vsel %vm723_vm1, %v658_v52, %v679_v20  ;;  %v893_v34 = vsel %vm723_vm1, %v659_v61, %v680_v7  ;;  %vm4066_vm1 = vcmask 318464  }
 0x209   : > { %v694_v44 = vpop.permute.xlu1 %693  ;;  %vm4069_vm15 = vmmov %vm4066_vm1 }
 0x20a   : > { %v692_v33 = vpop.permute.xlu0 %691  ;;  %vm4071_vm7 = vmmov %vm4066_vm1 }
 0x20b   : > { %v700_v0 = vsel %vm695_vm6, %v3383_v28, %v692_v33  ;;  %v701_v8 = vsel %vm695_vm6, %v692_v33, %v694_v44  ;;  %vm4068_vm6 = vmmov %vm4066_vm1 }
 0x20c   : > { %v905_v15 = vsel %vm745_vm2, %v890_v43, %v700_v0  ;;  %v907_v18 = vsel %vm745_vm2, %v893_v34, %v701_v8  ;;  %vm4067_vm2 = vmmov %vm4066_vm1 }
 0x20d   : > { %v715_v24 = vpop.permute.xlu1 %714  ;;  %vm4072_vm8 = vmmov %vm4066_vm1 }
 0x20e   : > { %v713_v41 = vpop.permute.xlu0 %712  ;;  %vm4073_vm9 = vmmov %vm4066_vm1 }
 0x20f   : > { %v721_v28 = vsel %vm4064_vm10, %v3414_v42, %v713_v41  ;;  %v722_v22 = vsel %vm4065_vm11, %v713_v41, %v715_v24  ;;  %vm4074_vm12 = vmmov %vm4066_vm1 }
 0x210   : > { %v921_v38 = vsel %vm760_vm3, %v907_v18, %v722_v22  ;;  %v919_v30 = vsel %vm760_vm3, %v905_v15, %v721_v28  ;;  %vm4075_vm13 = vmmov %vm4066_vm1 }
 0x211   : > { %1485 = vrot.lane.b32.xlu0 %v921_v38, %s2109_s27  ;;  %1483 = vrot.lane.b32.xlu1 %v919_v30, %s2109_s27  ;;  %v1355_v37 = vpop.permute.xlu1 %1354  ;;  %vm4076_vm14 = vmmov %vm4066_vm1 }
 0x212   : > { %v1353_v53 = vpop.permute.xlu0 %1352  ;;  %vm4077_vm0 = vmmov %vm4066_vm1 }
 0x213   : > { %v1389_v49 = vsel %vm1384_vm5, %v3473_v50, %v1353_v53  ;;  %v1390_v23 = vsel %vm1384_vm5, %v1353_v53, %v1355_v37  ;;  %vm4078_vm10 = vmmov %vm4077_vm0 }
 0x214   : > { %vm4079_vm11 = vmmov %vm4077_vm0 }
 0x215   : > { %1499 = vrot.lane.b32.xlu0 %v1390_v23, %s2109_s27  ;;  %1497 = vrot.lane.b32.xlu1 %v1389_v49, %s2109_s27  ;;  %v1369_v42 = vpop.permute.xlu1 %1368 }
 0x216   : > { %v1367_v58 = vpop.permute.xlu0 %1366 }
 0x217   : > { %v1395_v9 = vsel %vm1384_vm5, %v3559_v31, %v1367_v58  ;;  %v1396_v48 = vsel %vm1384_vm5, %v1367_v58, %v1369_v42 }
 0x219   : > { %1513 = vrot.lane.b32.xlu0 %v1396_v48, %s2109_s27  ;;  %1511 = vrot.lane.b32.xlu1 %v1395_v9, %s2109_s27  ;;  %v1383_v62 = vpop.permute.xlu1 %1382 }
 0x21a   : > { %v1381_v27 = vpop.permute.xlu0 %1380 }
 0x21b   : > { %v1401_v50 = vsel %vm1384_vm5, %v3587_v21, %v1381_v27  ;;  %v1402_v55 = vsel %vm1384_vm5, %v1381_v27, %v1383_v62  ;;  %vm4070_vm5 = vmmov %vm4066_vm1 }
 0x21d   : > { %1527 = vrot.lane.b32.xlu0 %v1402_v55, %s2109_s27  ;;  %1525 = vrot.lane.b32.xlu1 %v1401_v50, %s2109_s27  ;;  %v1436_v40 = vpop.permute.xlu1 %1435  ;;  %v3752_v55 = vld [vmem:[%s3845_s1] sm:$0xf] }
 0x21e   : > { %v1434_v32 = vpop.permute.xlu0 %1433 }
 0x21f   : > { %v1530_v31 = vsel %vm4066_vm1, %v1434_v32, %v1436_v40  ;;  %vm4080_vm1 = vmmov %vm4077_vm0 }
 0x220   : > { %1638 = vmatprep.subr.bf16.mxu0 %v1530_v31 }
 0x221   : > { %v1438_v17 = vpop.permute.xlu1 %1437 }
 0x222   : > { %v1432_v29 = vpop.permute.xlu0 %1431  ;;  %v1531_v36 = vsel %vm4069_vm15, %v1436_v40, %v1438_v17  ;;  %vm4083_vm15 = vmmov %vm4077_vm0 }
 0x223   : > { %v1529_v57 = vsel %vm4067_vm2, %v1432_v29, %v1434_v32  ;;  %vm4081_vm2 = vmmov %vm4077_vm0 }
 0x224   : > { %1639 = vmatpush1.bf16.msra.mxu0 %v1529_v57  ;;  %v2129_v57 = vmov 0.0  }
 0x225   : > { %v1448_v47 = vpop.permute.xlu1 %1447 }
 0x226   : > { %v3704_v3 = vpop.permute.xlu0 %1439 }
 0x227   : > { %v1532_v21 = vsel %vm4068_vm6, %v1438_v17, %v3704_v3  ;;  %vm4082_vm6 = vmmov %vm4077_vm0 }
 0x228   : > { %1679 = vmatprep.subr.bf16.mxu1 %v1532_v21 }
 0x229   : > { %1680 = vmatpush1.bf16.msra.mxu1 %v1531_v36  ;;  %v1446_v26 = vpop.permute.xlu1 %1445 }
 0x22a   : > { %v1450_v5 = vpop.permute.xlu0 %1449  ;;  %v1535_v35 = vsel %vm4071_vm7, %v1446_v26, %v1448_v47  ;;  %vm4085_vm7 = vmmov %vm4077_vm0 }
 0x22b   : > { %v1536_v54 = vsel %vm4070_vm5, %v1448_v47, %v1450_v5  ;;  %vm4084_vm5 = vmmov %vm4077_vm0 }
 0x22c   : > { %1640 = vmatprep.subr.bf16.mxu0 %v1536_v54 }
 0x22d   : > { %1641 = vmatpush1.bf16.msra.mxu0 %v1535_v35  ;;  %v3711_v11 = vpop.permute.xlu1 %1453 }
 0x22e   : > { %v1452_v4 = vpop.permute.xlu0 %1451 }
 0x22f   : > { %v1538_v60 = vsel %vm4072_vm8, %v1452_v4, %v3711_v11  ;;  %v1537_v46 = vsel %vm4073_vm9, %v1450_v5, %v1452_v4  ;;  %vm4086_vm8 = vmmov %vm4077_vm0 }
 0x230   : > { %1681 = vmatprep.subr.bf16.mxu1 %v1538_v60  ;;  %vm4087_vm9 = vmmov %vm4077_vm0 }
 0x231   : > { %1682 = vmatpush1.bf16.msra.mxu1 %v1537_v46  ;;  %v1464_v56 = vpop.permute.xlu1 %1463 }
 0x232   : > { %v1462_v16 = vpop.permute.xlu0 %1461 }
 0x233   : > { %v1542_v6 = vsel %vm4074_vm12, %v1462_v16, %v1464_v56  ;;  %vm4088_vm12 = vmmov %vm4077_vm0 }
 0x234   : > { %1642 = vmatprep.subr.bf16.mxu0 %v1542_v6 }
 0x235   : > { %v1466_v14 = vpop.permute.xlu1 %1465 }
 0x236   : > { %v1460_v39 = vpop.permute.xlu0 %1459  ;;  %v1543_v59 = vsel %vm4077_vm0, %v1464_v56, %v1466_v14 }
 0x237   : > { %v1541_v51 = vsel %vm4075_vm13, %v1460_v39, %v1462_v16  ;;  %vm4089_vm13 = vmmov %vm4077_vm0 }
 0x238   : > { %1643 = vmatpush1.bf16.msra.mxu0 %v1541_v51 }
 0x239   : > { %v1476_v63 = vpop.permute.xlu1 %1475 }
 0x23a   : > { %v3718_v13 = vpop.permute.xlu0 %1467 }
 0x23b   : > { %v1544_v2 = vsel %vm4076_vm14, %v1466_v14, %v3718_v13  ;;  %vm4090_vm14 = vmmov %vm4077_vm0 }
 0x23c   : > { %1683 = vmatprep.subr.bf16.mxu1 %v1544_v2 }
 0x23d   : > { %1684 = vmatpush1.bf16.msra.mxu1 %v1543_v59  ;;  %v1474_v45 = vpop.permute.xlu1 %1473 }
 0x23e   : > { %v1478_v25 = vpop.permute.xlu0 %1477  ;;  %v1547_v1 = vsel %vm4079_vm11, %v1474_v45, %v1476_v63  ;;  %vm4092_vm11 = vmmov %vm4077_vm0 }
 0x23f   : > { %v1548_v19 = vsel %vm4078_vm10, %v1476_v63, %v1478_v25  ;;  %vm4091_vm10 = vmmov %vm4077_vm0 }
 0x240   : > { %1644 = vmatprep.subr.bf16.mxu0 %v1548_v19 }
 0x241   : > { %1645 = vmatpush1.bf16.msra.mxu0 %v1547_v1  ;;  %v3725_v44 = vpop.permute.xlu1 %1481 }
 0x242   : > { %v1480_v12 = vpop.permute.xlu0 %1479 }
 0x243   : > { %v1550_v33 = vsel %vm4080_vm1, %v1480_v12, %v3725_v44  ;;  %v1549_v20 = vsel %vm4081_vm2, %v1478_v25, %v1480_v12  ;;  %vm4093_vm1 = vmmov %vm4077_vm0 }
 0x244   : > { %1685 = vmatprep.subr.bf16.mxu1 %v1550_v33  ;;  %vm4094_vm2 = vmmov %vm4077_vm0 }
 0x245   : > { %1686 = vmatpush1.bf16.msra.mxu1 %v1549_v20  ;;  %v1492_v0 = vpop.permute.xlu1 %1491  ;;  %v235_v20 = vld [vmem:[%s3846_s2] sm:$0x7f] }
 0x246   : > { %v1490_v7 = vpop.permute.xlu0 %1489 }
 0x247   : > { %v1554_v8 = vsel %vm4082_vm6, %v1490_v7, %v1492_v0  ;;  %vm2130_vm6 = vmmov 0  }
 0x248   : > { %1646 = vmatprep.subr.bf16.mxu0 %v1554_v8 }
 0x249   : > { %v1494_v61 = vpop.permute.xlu1 %1493 }
 0x24a   : > { %v1488_v52 = vpop.permute.xlu0 %1487  ;;  %v1555_v15 = vsel %vm4085_vm7, %v1492_v0, %v1494_v61  ;;  %vm4097_vm7 = vmmov %vm4077_vm0 }
 0x24b   : > { %v1553_v43 = vsel %vm4083_vm15, %v1488_v52, %v1490_v7  ;;  %vm4095_vm15 = vmmov %vm4077_vm0 }
 0x24c   : > { %1647 = vmatpush1.bf16.msra.mxu0 %v1553_v43 }
 0x24d   : > { %v1504_v24 = vpop.permute.xlu1 %1503 }
 0x24e   : > { %v3732_v34 = vpop.permute.xlu0 %1495 }
 0x24f   : > { %v1556_v41 = vsel %vm4084_vm5, %v1494_v61, %v3732_v34  ;;  %vm4096_vm5 = vmmov %vm4077_vm0 }
 0x250   : > { %1687 = vmatprep.subr.bf16.mxu1 %v1556_v41 }
 0x251   : > { %1688 = vmatpush1.bf16.msra.mxu1 %v1555_v15  ;;  %v1502_v28 = vpop.permute.xlu1 %1501 }
 0x252   : > { %v1506_v18 = vpop.permute.xlu0 %1505  ;;  %v1559_v38 = vsel %vm4087_vm9, %v1502_v28, %v1504_v24  ;;  %vm4099_vm9 = vmmov %vm4077_vm0 }
 0x253   : > { %v1560_v22 = vsel %vm4086_vm8, %v1504_v24, %v1506_v18  ;;  %vm4098_vm8 = vmmov %vm4077_vm0 }
 0x254   : > { %1648 = vmatprep.subr.bf16.mxu0 %v1560_v22 }
 0x255   : > { %1649 = vmatpush1.bf16.msra.mxu0 %v1559_v38  ;;  %v3739_v37 = vpop.permute.xlu1 %1509 }
 0x256   : > { %v1508_v30 = vpop.permute.xlu0 %1507 }
 0x257   : > { %v1562_v53 = vsel %vm4088_vm12, %v1508_v30, %v3739_v37  ;;  %v1561_v49 = vsel %vm4089_vm13, %v1506_v18, %v1508_v30  ;;  %vm4100_vm12 = vmmov %vm4077_vm0 }
 0x258   : > { %1689 = vmatprep.subr.bf16.mxu1 %v1562_v53  ;;  %vm4101_vm13 = vmmov %vm4077_vm0 }
 0x259   : > { %1690 = vmatpush1.bf16.msra.mxu1 %v1561_v49  ;;  %v1518_v42 = vpop.permute.xlu1 %1517 }
 0x25a   : > { %v1516_v23 = vpop.permute.xlu0 %1515 }
 0x25b   : > { %v1565_v58 = vsel %vm4090_vm14, %v1516_v23, %v1518_v42  ;;  %vm4102_vm14 = vmmov %vm4077_vm0 }
 0x25c   : > { %v1618_v27 = vsel %vm760_vm3, %v1565_v58, 0 }
 0x25d   : > { %v1522_v48 = vpop.permute.xlu1 %1521 }
 0x25e   : > { %v1520_v9 = vpop.permute.xlu0 %1519 }
 0x25f   : > { %v1566_v62 = vsel %vm4077_vm0, %v1518_v42, %v1520_v9  ;;  %v1567_v50 = vsel %vm4091_vm10, %v1520_v9, %v1522_v48  ;;  %vm4103_vm10 = vmmov %vm4077_vm0 }
 0x260   : > { %1979 = vmatprep.subr.msk.bf16.mxu0 %vm760_vm3, %v1566_v62  ;;  %v1624_v29 = vsel %vm760_vm3, %v1567_v50, 0 }
 0x261   : > { %1651 = vmatpush1.bf16.msra.mxu0 %v1618_v27  ;;  %v1442_v31 = vpop.permute.xlu1 %1441 }
 0x262   : > { %v3754_v40 = vpop.permute.xlu0 %1523  ;;  %v1533_v21 = vsel %vm4094_vm2, %v3704_v3, %v1442_v31  ;;  %vm231_vm2 = vcmask 7168  }
 0x263   : > { %v1568_v32 = vsel %vm4092_vm11, %v1522_v48, %v3754_v40  ;;  %vm4104_vm11 = vmmov %vm4077_vm0  ;;  %232 = vst.msk [vmem:[%s3807_s29] sm:$0xff] %vm231_vm2, %v2129_v57 }
 0x264   : > { %1981 = vmatprep.subr.msk.bf16.mxu1 %vm760_vm3, %v1568_v32  ;;  %1980 = vmatmul.mubr.msk.bf16.vlgmr.msra.gmra.mrb[0].mxu0 %vm461_vm4, %v3752_v55  ;;  %233 = vst.msk [vmem:[%s225_s8] sm:$0xff] %vm231_vm2, %v2129_v57 }
 0x265   : > { %1692 = vmatpush1.bf16.msra.mxu1 %v1624_v29  ;;  %1752 = vmatprep.mubr.bf16.mxu0 %v2128_v10  ;;  %v1456_v36 = vpop.permute.xlu1 %1455 }
 0x266   : > { %v1444_v17 = vpop.permute.xlu0 %1443  ;;  %1996 = vmatprep.subr.bf16.mxu1 %v2129_v57  ;;  %v1539_v26 = vsel %vm4096_vm5, %v3711_v11, %v1456_v36 }
 0x267   : > { %v1534_v47 = vsel %vm4093_vm1, %v1442_v31, %v1444_v17  ;;  %vm4105_vm1 = vmmov %vm4077_vm0 }
 0x268   : > { %1720 = vmatprep.subr.bf16.mxu0 %v1534_v47  ;;  %1982 = vmatmul.mubr.msk.bf16.vlgmr.msra.gmra.mrb[0].mxu1 %vm461_vm4, %v3752_v55 }
 0x269   : > { %1721 = vmatpush1.bf16.msra.mxu0 %v1533_v21  ;;  %1997 = vmatpush3.bf16.msra.mxu1 %v1444_v17 }
 0x26a   : > { %v1458_v5 = vpop.permute.xlu0 %1457  ;;  %1998 = vmatprep.subr.bf16.mxu1 %v2129_v57  ;;  %2010 = vmatprep.mubr.msk.bf16.mxu1 %vm2130_vm6, %v2129_v57 }
 0x26b   : > { %v1540_v10 = vsel %vm4095_vm15, %v1456_v36, %v1458_v5 }
 0x26c   : > { %1722 = vmatprep.subr.bf16.mxu0 %v1540_v10 }
 0x26d   : > { %1723 = vmatpush1.bf16.msra.mxu0 %v1539_v26  ;;  %1999 = vmatpush3.bf16.msra.mxu1 %v1458_v5 }
 0x26e   : > { %2000 = vmatprep.subr.bf16.mxu1 %v2129_v57 }
 0x273   : > { %v1472_v3 = vpop.permute.xlu0 %1471  ;;  %v1470_v54 = vpop.permute.xlu1 %1469 }
 0x274   : > { %v1545_v35 = vsel %vm4097_vm7, %v3718_v13, %v1470_v54  ;;  %2001 = vmatpush3.bf16.msra.mxu1 %v1472_v3  ;;  %v1546_v4 = vsel %vm4098_vm8, %v1470_v54, %v1472_v3 }
 0x275   : > { %1724 = vmatprep.subr.bf16.mxu0 %v1546_v4  ;;  %2002 = vmatprep.subr.bf16.mxu1 %v2129_v57 }
 0x276   : > { %1725 = vmatpush1.bf16.msra.mxu0 %v1545_v35 }
 0x283   : > { %v1486_v60 = vpop.permute.xlu0 %1485  ;;  %v1484_v46 = vpop.permute.xlu1 %1483 }
 0x284   : > { %v1551_v11 = vsel %vm4099_vm9, %v3725_v44, %v1484_v46  ;;  %2003 = vmatpush3.bf16.msra.mxu1 %v1486_v60  ;;  %v1552_v16 = vsel %vm4100_vm12, %v1484_v46, %v1486_v60  ;;  %v4106_v44 = vld [vmem:[#allocation2_spill] sm:$0xff] }
 0x285   : > { %1726 = vmatprep.subr.bf16.mxu0 %v1552_v16  ;;  %2004 = vmatprep.subr.bf16.mxu1 %v2129_v57  ;;  %v1804_v33 = vsub.s32 0, %v4106_v44  ;;  %v1808_v7 = vsub.s32 1, %v4106_v44  ;;  %v1812_v8 = vsub.s32 2, %v4106_v44  ;;  %v1816_v61 = vsub.s32 3, %v4106_v44 }
 0x286   : > { %1727 = vmatpush1.bf16.msra.mxu0 %v1551_v11  ;;  %v1828_v31 = vsub.s32 6, %v4106_v44  ;;  %v1820_v29 = vsub.s32 4, %v4106_v44  ;;  %v1824_v17 = vsub.s32 5, %v4106_v44 }
 0x287   : > { %v1500_v56 = vpop.permute.xlu0 %1499  ;;  %v1498_v6 = vpop.permute.xlu1 %1497  ;;  %v1805_v0 = vrot.slane %v235_v20, %v1804_v33  ;;  %v1809_v52 = vrot.slane %v235_v20, %v1808_v7  ;;  %v1813_v41 = vrot.slane %v235_v20, %v1812_v8  ;;  %v1817_v28 = vrot.slane %v235_v20, %v1816_v61 }
 0x288   : > { %v1557_v39 = vsel %vm4101_vm13, %v3732_v34, %v1498_v6  ;;  %2005 = vmatpush3.bf16.msra.mxu1 %v1500_v56  ;;  %v1558_v14 = vsel %vm4102_vm14, %v1498_v6, %v1500_v56  ;;  %v1829_v47 = vrot.slane %v235_v20, %v1828_v31  ;;  %v1821_v21 = vrot.slane %v235_v20, %v1820_v29 }
 0x289   : > { %1728 = vmatprep.subr.bf16.mxu0 %v1558_v14  ;;  %2006 = vmatprep.subr.bf16.mxu1 %v2129_v57  ;;  %v1825_v36 = vrot.slane %v235_v20, %v1824_v17 }
 0x28a   : > { %1729 = vmatpush1.bf16.msra.mxu0 %v1557_v39 }
 0x28b   : > { %v1514_v51 = vpop.permute.xlu0 %1513  ;;  %v1512_v13 = vpop.permute.xlu1 %1511 }
 0x28c   : > { %v1563_v63 = vsel %vm4077_vm0, %v3739_v37, %v1512_v13  ;;  %2007 = vmatpush3.bf16.msra.mxu1 %v1514_v51  ;;  %v1564_v2 = vsel %vm4103_vm10, %v1512_v13, %v1514_v51 }
 0x28d   : > { %1730 = vmatprep.subr.bf16.mxu0 %v1564_v2  ;;  %2008 = vmatprep.subr.bf16.mxu1 %v2129_v57 }
 0x28e   : > { %1731 = vmatpush1.bf16.msra.mxu0 %v1563_v63 }
 0x28f   : > { %v1528_v59 = vpop.permute.xlu0 %1527  ;;  %v1526_v25 = vpop.permute.xlu1 %1525 }
 0x290   : > { %v1636_v45 = vsel %vm760_vm3, %v1528_v59, 0  ;;  %v1569_v19 = vsel %vm4104_vm11, %v3754_v40, %v1526_v25  ;;  %v1570_v1 = vsel %vm4105_vm1, %v1526_v25, %v1528_v59 }
 0x291   : > { %v1630_v12 = vsel %vm760_vm3, %v1569_v19, 0  ;;  %1983 = vmatprep.subr.msk.bf16.mxu0 %vm760_vm3, %v1570_v1  ;;  %2009 = vmatpush3.bf16.msra.mxu1 %v1636_v45  ;;  %vm1849_vm3 = vcmask 261120   ;;  %v1872_v19 = vld [vmem:[%s3807_s29] sm:$0xff] }
 0x292   : > { %1733 = vmatpush1.bf16.msra.mxu0 %v1630_v12  ;;  %v1876_v12 = vld [vmem:[%s225_s8] sm:$0xff] }
 0x294   : > { %2011 = vmatmul.mubr.msk.bf16.vlgmr.msra.gmra.mrb[4].mxu1 %vm461_vm4, %v3752_v55 }
 0x295   : > { %1984 = vmatmul.mubr.msk.bf16.vlgmr.msra.gmra.mrb[4].mxu0 %vm461_vm4, %v3752_v55 }
 0x337   : > { %v1672_v43 = vpop.f32.mrb[0].mxu0 }
 0x338   : > { %v1837_v34 = vmul.f32 %v1805_v0, %v1672_v43  ;;  %v1674_v24 = vpop.f32.mrb[1].mxu0 }
 0x339   : > { %v1838_v15 = vmul.f32 %v1809_v52, %v1674_v24  ;;  %v1676_v18 = vpop.f32.mrb[2].mxu0 }
 0x33a   : > { %v1855_v22 = vmul.f32 %v1837_v34, %v1672_v43  ;;  %v1677_v38 = vpop.f32.mrb[3].mxu0 }
 0x33b   : > { %v1844_v30 = vadd.f32 %v1838_v15, %v1837_v34  ;;  %v1856_v37 = vmul.f32 %v1838_v15, %v1674_v24  ;;  %v1713_v53 = vpop.f32.mrb[0].mxu1 }
 0x33c   : > { %v1839_v49 = vmul.f32 %v1813_v41, %v1713_v53  ;;  %v1715_v23 = vpop.f32.mrb[1].mxu1 }
 0x33d   : > { %v1862_v42 = vadd.f32 %v1856_v37, %v1855_v22  ;;  %v1840_v58 = vmul.f32 %v1817_v28, %v1715_v23  ;;  %v1717_v9 = vpop.f32.mrb[2].mxu1 }
 0x33e   : > { %v1845_v48 = vadd.f32 %v1844_v30, %v1839_v49  ;;  %v1857_v62 = vmul.f32 %v1839_v49, %v1713_v53  ;;  %v1718_v27 = vpop.f32.mrb[3].mxu1 }
 0x33f   : > { %v1858_v50 = vmul.f32 %v1840_v58, %v1715_v23 }
 0x340   : > { %v1863_v55 = vadd.f32 %v1862_v42, %v1857_v62  ;;  %v1846_v40 = vadd.f32 %v1845_v48, %v1840_v58 }
 0x342   : > { %v1864_v32 = vadd.f32 %v1863_v55, %v1858_v50 }
 0x367   : > { %v1795_v5 = vpop.f32.mrb[4].mxu1 }
 0x368   : > { %v1754_v10 = vpop.f32.mrb[4].mxu0  ;;  %v1843_v26 = vmul.f32 %v1829_v47, %v1795_v5  ;;  %v2012_v3 = vpop.f32.mrb[5].mxu1 }
 0x369   : > { %v1841_v54 = vmul.f32 %v1821_v21, %v1754_v10  ;;  %v1756_v35 = vpop.f32.mrb[5].mxu0  ;;  %v1798_v4 = vpop.f32.mrb[6].mxu1 }
 0x36a   : > { %v1842_v60 = vmul.f32 %v1825_v36, %v1756_v35  ;;  %v1758_v46 = vpop.f32.mrb[6].mxu0  ;;  %v2013_v11 = vpop.f32.mrb[7].mxu1  ;;  %v1850_v39 = vsel %vm1849_vm3, %v1843_v26, 0.0  ;;  %v1861_v14 = vmul.f32 %v1843_v26, %v1795_v5 }
 0x36b   : > { %v1847_v16 = vadd.f32 %v1846_v40, %v1841_v54  ;;  %v1859_v56 = vmul.f32 %v1841_v54, %v1754_v10  ;;  %v1759_v6 = vpop.f32.mrb[7].mxu0 }
 0x36c   : > { %v1860_v51 = vmul.f32 %v1842_v60, %v1756_v35  ;;  %v1867_v25 = vsel %vm1849_vm3, %v1861_v14, 0.0 }
 0x36d   : > { %v1865_v13 = vadd.f32 %v1864_v32, %v1859_v56  ;;  %v1848_v63 = vadd.f32 %v1847_v16, %v1842_v60 }
 0x36f   : > { %v1866_v2 = vadd.f32 %v1865_v13, %v1860_v51  ;;  %v1851_v59 = vadd.f32 %v1850_v39, %v1848_v63 }
 0x371   : > { %1852 = vadd.xlane.f32.xlu1 %v1851_v59  ;;  %v1868_v45 = vadd.f32 %v1867_v25, %v1866_v2 }
 0x373   : > { %1869 = vadd.xlane.f32.xlu0 %v1868_v45 }
 0x3fe   : > { %v1853_v1 = vpop.xlane.xlu1 %1852 }
 0x3ff   : > { %v1873_v44 = vadd.f32 %v1872_v19, %v1853_v1 }
 0x400   : > { %v1870_v33 = vpop.xlane.xlu0 %1869 }
 0x401   : > { %1875 = vst.msk [vmem:[%s3807_s29] sm:$0xff] %vm231_vm2, %v1873_v44  ;;  %v1877_v20 = vadd.f32 %v1876_v12, %v1870_v33 }
 0x403   : > { %1878 = vst.msk [vmem:[%s225_s8] sm:$0xff] %vm231_vm2, %v1877_v20 }
 0x404 PF: > { %s15_s17 = sadd.s32 1, %s2102_s17   ;;  %s4107_s15 = smov %s2098_s16 }
 0x405   : > { %p12_p5 = scmp.ge.s32.totalorder %s15_s17, 4   ;;  %s4108_s16 = smov %s4110_s18 }
 0x407   :  { %14 = sbr.rel (!%p12_p5) target bundleno = 2 (0x2), region = 78 }

</bundles_post_ra>
